<compile_context>
chip_gen: v6e
topology: v6e:2x2x1
jax: 0.10.0
libtpu: 0.0.40
codegen_flags: <defaults>
</compile_context>

<pallas_src>
import jax
import jax.numpy as jnp
from jax.experimental import pallas as pl
from jax.experimental.pallas import tpu as pltpu

IN_VAL = 28 * 28          # 784
OUT_VAL = 10
N_HIDDEN_LAYER = 4
LANE = 128
H_PAD = ((IN_VAL + LANE - 1) // LANE) * LANE      # 896  (7*128)
O_PAD = ((OUT_VAL + LANE - 1) // LANE) * LANE     # 128
SMALL_BATCH_MAX = 512     # rows; <= this -> layer-streamed single-tile path


def _round_up(x, m):
    return -(-x // m) * m


# --------------------------------------------------------------------------- kernels
def fused_mlp_kernel(x_ref, wh_ref, bh_ref, wo_ref, bo_ref, out_ref):
    """Large-batch path: all weights VMEM-resident, one batch tile per grid step.

    x_ref : (TB, 784) f32            wh_ref: (4, 896, 896) bf16
    bh_ref: (4, 1, 896) f32          wo_ref: (896, 128) bf16
    bo_ref: (1, 128) f32             out_ref: (TB, 128) f32
    """
    x = x_ref[...].astype(jnp.bfloat16)                       # cast in-kernel (free under MXU)
    # First layer uses the un-padded 784-row slice of the packed weight (static ref slice,
    # 784 is a multiple of the bf16 sublane tile), so x never needs feature padding.
    a = jnp.dot(x, wh_ref[0, :IN_VAL, :], preferred_element_type=jnp.float32) + bh_ref[0]
    h = jnp.maximum(a, 0.0).astype(jnp.bfloat16)
    for l in range(1, N_HIDDEN_LAYER):                         # static unroll
        a = jnp.dot(h, wh_ref[l], preferred_element_type=jnp.float32) + bh_ref[l]
        h = jnp.maximum(a, 0.0).astype(jnp.bfloat16)
    out_ref[...] = jnp.dot(h, wo_ref[...], preferred_element_type=jnp.float32) + bo_ref[...]


def streamed_mlp_kernel(x_ref, wh_ref, bh_ref, wo_ref, bo_ref, out_ref, h_scratch):
    """Small-batch path: grid=(batch_tiles, 4).  One hidden-layer weight slab per step
    (Pallas double-buffers it, so layer l compute overlaps layer l+1 weight DMA).

    x_ref : (TB, 784) f32            wh_ref: (1, 896, 896) bf16   (layer l's slab)
    bh_ref: (1, 1, 896) f32          wo_ref: (896, 128) bf16  (resident)
    bo_ref: (1, 128) f32             out_ref: (TB, 128) f32
    h_scratch: (TB, 896) bf16 VMEM scratch, carries activations across layer steps.
    """
    l = pl.program_id(1)

    @pl.when(l == 0)
    def _():
        x = x_ref[...].astype(jnp.bfloat16)
        a = jnp.dot(x, wh_ref[0, :IN_VAL, :], preferred_element_type=jnp.float32) + bh_ref[0]
        h_scratch[...] = jnp.maximum(a, 0.0).astype(jnp.bfloat16)

    @pl.when(l > 0)
    def _():
        a = jnp.dot(h_scratch[...], wh_ref[0], preferred_element_type=jnp.float32) + bh_ref[0]
        h_scratch[...] = jnp.maximum(a, 0.0).astype(jnp.bfloat16)

    @pl.when(l == pl.num_programs(1) - 1)
    def _():
        out_ref[...] = (jnp.dot(h_scratch[...], wo_ref[...],
                                preferred_element_type=jnp.float32) + bo_ref[...])


# --------------------------------------------------------------------------- wrapper
def connected_rn_forward(x, params, force_fused=False):
    """x: (B, C, H, W) or (B, F).  Flatten(1), run kernel, slice to (B, 10)."""
    wh, bh, wo, bo = params
    b = x.shape[0]
    x2d = x.reshape(b, -1).astype(jnp.float32)        # flatten(1); no host pad / bf16 copy
    assert x2d.shape[1] == IN_VAL

    use_streamed = (not force_fused) and (b <= SMALL_BATCH_MAX)

    if use_streamed:
        TB = min(SMALL_BATCH_MAX, _round_up(b, 16))
    else:
        # Fused path: >= 2 batch tiles so both v7x TensorCores get work; cap at 512.
        TB = min(512, _round_up(_round_up(b, 2) // 2, 16)) if b > 16 else 16

    b_pad = _round_up(b, TB)
    if b_pad != b:                                    # only pad when the tile doesn't divide
        x2d = jnp.pad(x2d, ((0, b_pad - b), (0, 0)))
    nbt = b_pad // TB

    if use_streamed:
        out = pl.pallas_call(
            streamed_mlp_kernel,
            out_shape=jax.ShapeDtypeStruct((b_pad, O_PAD), jnp.float32),
            grid_spec=pltpu.PrefetchScalarGridSpec(
                num_scalar_prefetch=0,
                grid=(nbt, N_HIDDEN_LAYER),
                in_specs=[
                    pl.BlockSpec((TB, IN_VAL), lambda i, l: (i, 0)),             # x tile
                    pl.BlockSpec((1, H_PAD, H_PAD), lambda i, l: (l, 0, 0)),     # layer-l W
                    pl.BlockSpec((1, 1, H_PAD), lambda i, l: (l, 0, 0)),         # layer-l b
                    pl.BlockSpec((H_PAD, O_PAD), lambda i, l: (0, 0)),           # resident
                    pl.BlockSpec((1, O_PAD), lambda i, l: (0, 0)),               # resident
                ],
                out_specs=pl.BlockSpec((TB, O_PAD), lambda i, l: (i, 0)),
                scratch_shapes=[pltpu.VMEM((TB, H_PAD), jnp.bfloat16)],
            ),
            compiler_params=pltpu.CompilerParams(
                dimension_semantics=("parallel", "arbitrary"),
                vmem_limit_bytes=32 << 20,
            ),
        )(x2d, wh, bh, wo, bo)
    else:
        out = pl.pallas_call(
            fused_mlp_kernel,
            out_shape=jax.ShapeDtypeStruct((b_pad, O_PAD), jnp.float32),
            grid_spec=pltpu.PrefetchScalarGridSpec(
                num_scalar_prefetch=0,
                grid=(nbt,),
                in_specs=[
                    pl.BlockSpec((TB, IN_VAL), lambda i: (i, 0)),                        # x tile
                    pl.BlockSpec((N_HIDDEN_LAYER, H_PAD, H_PAD), lambda i: (0, 0, 0)),   # resident
                    pl.BlockSpec((N_HIDDEN_LAYER, 1, H_PAD), lambda i: (0, 0, 0)),       # resident
                    pl.BlockSpec((H_PAD, O_PAD), lambda i: (0, 0)),                      # resident
                    pl.BlockSpec((1, O_PAD), lambda i: (0, 0)),                          # resident
                ],
                out_specs=pl.BlockSpec((TB, O_PAD), lambda i: (i, 0)),
            ),
            compiler_params=pltpu.CompilerParams(
                dimension_semantics=("parallel",),     # batch tiles shard across v7x's 2 TCs
                vmem_limit_bytes=32 << 20,             # ~22 MiB worst case at TB=512
            ),
        )(x2d, wh, bh, wo, bo)

    return out[:b, :OUT_VAL]


# --------------------------------------------------------------------------- params
def init_params(key):
    """PyTorch nn.Linear default init U(-1/sqrt(fan_in), 1/sqrt(fan_in)).

    Weights pre-transposed to (in, out), zero-padded to lane-aligned shapes, hidden
    layers packed into one (4,896,896) bf16 array; biases stay f32.
    (Note: bf16 weights are a deliberate precision trade vs the f32 PyTorch module.)
    """
    fan_specs = [(IN_VAL, IN_VAL)] * N_HIDDEN_LAYER + [(IN_VAL, OUT_VAL)]
    ws, bs = [], []
    for fan_in, fan_out in fan_specs:
        key, kw, kb = jax.random.split(key, 3)
        bound = 1.0 / (fan_in ** 0.5)
        ws.append(jax.random.uniform(kw, (fan_in, fan_out), jnp.float32, -bound, bound))
        bs.append(jax.random.uniform(kb, (1, fan_out), jnp.float32, -bound, bound))

    pad_h = H_PAD - IN_VAL
    wh = jnp.stack([jnp.pad(w, ((0, pad_h), (0, pad_h))) for w in ws[:-1]])
    bh = jnp.stack([jnp.pad(bv, ((0, 0), (0, pad_h))) for bv in bs[:-1]])
    wo = jnp.pad(ws[-1], ((0, pad_h), (0, O_PAD - OUT_VAL)))
    bo = jnp.pad(bs[-1], ((0, 0), (0, O_PAD - OUT_VAL)))
    return (wh.astype(jnp.bfloat16), bh.astype(jnp.float32),
            wo.astype(jnp.bfloat16), bo.astype(jnp.float32))


def reference_forward(x, params):
    """Pure-JAX reference that mirrors the kernel's mixed precision exactly."""
    wh, bh, wo, bo = params
    h = x.reshape(x.shape[0], -1).astype(jnp.bfloat16)            # (B, 784)
    for l in range(N_HIDDEN_LAYER):
        w = wh[l, :IN_VAL, :] if l == 0 else wh[l]
        a = jnp.dot(h, w, preferred_element_type=jnp.float32) + bh[l]
        h = jnp.maximum(a, 0.0).astype(jnp.bfloat16)
    out = jnp.dot(h, wo, preferred_element_type=jnp.float32) + bo
    return out[:, :OUT_VAL]


if __name__ == "__main__":
    key = jax.random.PRNGKey(0)
    key, kx = jax.random.split(key)
    params = init_params(key)

    # MNIST-like input implied by in_val = 28*28: (batch, 1, 28, 28)
    # Small batch -> exercises the layer-streamed kernel.
    x = jax.random.normal(kx, (2, 1, 28, 28), jnp.float32)
    out = jax.block_until_ready(connected_rn_forward(x, params))
    ref = reference_forward(x, params)
    assert out.shape == (2, OUT_VAL)
    assert jnp.allclose(out, ref, atol=1e-2, rtol=1e-2), (
        f"streamed path: max abs err {jnp.max(jnp.abs(out - ref))}")

    # Also exercise the fused large-batch path (forced, at a modest batch).
    key, kx2 = jax.random.split(key)
    x2 = jax.random.normal(kx2, (64, 1, 28, 28), jnp.float32)
    out2 = jax.block_until_ready(connected_rn_forward(x2, params, force_fused=True))
    ref2 = reference_forward(x2, params)
    assert out2.shape == (64, OUT_VAL)
    assert jnp.allclose(out2, ref2, atol=1e-2, rtol=1e-2), (
        f"fused path: max abs err {jnp.max(jnp.abs(out2 - ref2))}")

    print("KERNEL_OK")
</pallas_src>

<mosaic_0001>
module attributes {stable_mosaic.version = 11 : i64} {
  func.func @streamed_mlp_kernel(%arg0: i32, %arg1: i32, %arg2: memref<16x784xf32, #tpu.memory_space<vmem>>, %arg3: memref<1x896x896xbf16, #tpu.memory_space<vmem>>, %arg4: memref<1x1x896xf32, #tpu.memory_space<vmem>>, %arg5: memref<896x128xbf16, #tpu.memory_space<vmem>>, %arg6: memref<1x128xf32, #tpu.memory_space<vmem>>, %arg7: memref<16x128xf32, #tpu.memory_space<vmem>>, %arg8: memref<16x896xbf16, #tpu.memory_space<vmem>>) attributes {dimension_semantics = [#tpu.dimension_semantics<parallel>, #tpu.dimension_semantics<arbitrary>], iteration_bounds = array<i64: 1, 4>, scalar_prefetch = 0 : i64, scratch_operands = 1 : i64, tpu.core_type = #tpu.core_type<tc>, window_params = [{transform_indices = @transform_0, window_bounds = array<i64: 16, 784>}, {transform_indices = @transform_1, window_bounds = array<i64: 1, 896, 896>}, {transform_indices = @transform_2, window_bounds = array<i64: 1, 1, 896>}, {pipeline_mode = #tpu.pipeline_mode<synchronous>, transform_indices = @transform_3, window_bounds = array<i64: 896, 128>}, {pipeline_mode = #tpu.pipeline_mode<synchronous>, transform_indices = @transform_4, window_bounds = array<i64: 1, 128>}, {transform_indices = @transform_5, window_bounds = array<i64: 16, 128>}]} {
    %c0_i32 = arith.constant 0 : i32
    %0 = arith.cmpi eq, %arg1, %c0_i32 : i32
    %1 = arith.extui %0 : i1 to i32
    %c0_i32_0 = arith.constant 0 : i32
    %2 = arith.cmpi ne, %1, %c0_i32_0 : i32
    scf.if %2 {
      %c0 = arith.constant 0 : index
      %c0_4 = arith.constant 0 : index
      %9 = vector.load %arg2[%c0, %c0_4] : memref<16x784xf32, #tpu.memory_space<vmem>>, vector<16x784xf32>
      %10 = arith.truncf %9 : vector<16x784xf32> to vector<16x784xbf16>
      %c0_5 = arith.constant 0 : index
      %c0_6 = arith.constant 0 : index
      %c0_7 = arith.constant 0 : index
      %11 = vector.load %arg3[%c0_5, %c0_6, %c0_7] : memref<1x896x896xbf16, #tpu.memory_space<vmem>>, vector<1x784x896xbf16>
      %12 = vector.shape_cast %11 : vector<1x784x896xbf16> to vector<784x896xbf16>
      %cst = arith.constant dense<0.000000e+00> : vector<16x896xf32>
      %13 = tpu.matmul %10, %12, %cst {dimension_numbers = #tpu.dot_dimension_numbers<[1], [0], [0], [1], [0, 0, 1, 1], [], []>} : vector<16x784xbf16>, vector<784x896xbf16>, vector<16x896xf32> -> vector<16x896xf32>
      %c0_8 = arith.constant 0 : index
      %c0_9 = arith.constant 0 : index
      %c0_10 = arith.constant 0 : index
      %14 = vector.load %arg4[%c0_8, %c0_9, %c0_10] : memref<1x1x896xf32, #tpu.memory_space<vmem>>, vector<1x1x896xf32>
      %15 = vector.shape_cast %14 : vector<1x1x896xf32> to vector<1x896xf32>
      %16 = vector.broadcast %15 : vector<1x896xf32> to vector<16x896xf32>
      %17 = arith.addf %13, %16 : vector<16x896xf32>
      %cst_11 = arith.constant 0.000000e+00 : f32
      %18 = vector.broadcast %cst_11 : f32 to vector<16x896xf32>
      %19 = arith.maximumf %17, %18 : vector<16x896xf32>
      %20 = arith.truncf %19 : vector<16x896xf32> to vector<16x896xbf16>
      %c0_12 = arith.constant 0 : index
      %c0_13 = arith.constant 0 : index
      %21 = vector.load %arg8[%c0_12, %c0_13] : memref<16x896xbf16, #tpu.memory_space<vmem>>, vector<16x896xbf16>
      tpu.vector_store %arg8[%c0_12, %c0_13], %20 {strides = array<i32>} : memref<16x896xbf16, #tpu.memory_space<vmem>>, vector<16x896xbf16>,
    } else {
    }
    %c0_i32_1 = arith.constant 0 : i32
    %3 = arith.cmpi sgt, %arg1, %c0_i32_1 : i32
    %4 = arith.extui %3 : i1 to i32
    %c0_i32_2 = arith.constant 0 : i32
    %5 = arith.cmpi ne, %4, %c0_i32_2 : i32
    scf.if %5 {
      %c0 = arith.constant 0 : index
      %c0_4 = arith.constant 0 : index
      %9 = vector.load %arg8[%c0, %c0_4] : memref<16x896xbf16, #tpu.memory_space<vmem>>, vector<16x896xbf16>
      %c0_5 = arith.constant 0 : index
      %c0_6 = arith.constant 0 : index
      %c0_7 = arith.constant 0 : index
      %10 = vector.load %arg3[%c0_5, %c0_6, %c0_7] : memref<1x896x896xbf16, #tpu.memory_space<vmem>>, vector<1x896x896xbf16>
      %11 = vector.shape_cast %10 : vector<1x896x896xbf16> to vector<896x896xbf16>
      %cst = arith.constant dense<0.000000e+00> : vector<16x896xf32>
      %12 = tpu.matmul %9, %11, %cst {dimension_numbers = #tpu.dot_dimension_numbers<[1], [0], [0], [1], [0, 0, 1, 1], [], []>} : vector<16x896xbf16>, vector<896x896xbf16>, vector<16x896xf32> -> vector<16x896xf32>
      %c0_8 = arith.constant 0 : index
      %c0_9 = arith.constant 0 : index
      %c0_10 = arith.constant 0 : index
      %13 = vector.load %arg4[%c0_8, %c0_9, %c0_10] : memref<1x1x896xf32, #tpu.memory_space<vmem>>, vector<1x1x896xf32>
      %14 = vector.shape_cast %13 : vector<1x1x896xf32> to vector<1x896xf32>
      %15 = vector.broadcast %14 : vector<1x896xf32> to vector<16x896xf32>
      %16 = arith.addf %12, %15 : vector<16x896xf32>
      %cst_11 = arith.constant 0.000000e+00 : f32
      %17 = vector.broadcast %cst_11 : f32 to vector<16x896xf32>
      %18 = arith.maximumf %16, %17 : vector<16x896xf32>
      %19 = arith.truncf %18 : vector<16x896xf32> to vector<16x896xbf16>
      %c0_12 = arith.constant 0 : index
      %c0_13 = arith.constant 0 : index
      %20 = vector.load %arg8[%c0_12, %c0_13] : memref<16x896xbf16, #tpu.memory_space<vmem>>, vector<16x896xbf16>
      tpu.vector_store %arg8[%c0_12, %c0_13], %19 {strides = array<i32>} : memref<16x896xbf16, #tpu.memory_space<vmem>>, vector<16x896xbf16>,
    } else {
    }
    %c3_i32 = arith.constant 3 : i32
    %6 = arith.cmpi eq, %arg1, %c3_i32 : i32
    %7 = arith.extui %6 : i1 to i32
    %c0_i32_3 = arith.constant 0 : i32
    %8 = arith.cmpi ne, %7, %c0_i32_3 : i32
    scf.if %8 {
      %c0 = arith.constant 0 : index
      %c0_4 = arith.constant 0 : index
      %9 = vector.load %arg8[%c0, %c0_4] : memref<16x896xbf16, #tpu.memory_space<vmem>>, vector<16x896xbf16>
      %c0_5 = arith.constant 0 : index
      %c0_6 = arith.constant 0 : index
      %10 = vector.load %arg5[%c0_5, %c0_6] : memref<896x128xbf16, #tpu.memory_space<vmem>>, vector<896x128xbf16>
      %cst = arith.constant dense<0.000000e+00> : vector<16x128xf32>
      %11 = tpu.matmul %9, %10, %cst {dimension_numbers = #tpu.dot_dimension_numbers<[1], [0], [0], [1], [0, 0, 1, 1], [], []>} : vector<16x896xbf16>, vector<896x128xbf16>, vector<16x128xf32> -> vector<16x128xf32>
      %c0_7 = arith.constant 0 : index
      %c0_8 = arith.constant 0 : index
      %12 = vector.load %arg6[%c0_7, %c0_8] : memref<1x128xf32, #tpu.memory_space<vmem>>, vector<1x128xf32>
      %13 = vector.broadcast %12 : vector<1x128xf32> to vector<16x128xf32>
      %14 = arith.addf %11, %13 : vector<16x128xf32>
      %c0_9 = arith.constant 0 : index
      %c0_10 = arith.constant 0 : index
      %15 = vector.load %arg7[%c0_9, %c0_10] : memref<16x128xf32, #tpu.memory_space<vmem>>, vector<16x128xf32>
      tpu.vector_store %arg7[%c0_9, %c0_10], %14 {strides = array<i32>} : memref<16x128xf32, #tpu.memory_space<vmem>>, vector<16x128xf32>,
    } else {
    }
    return
  }
  func.func @transform_0(%arg0: i32, %arg1: i32) -> (i32, i32) {
    %c0_i32 = arith.constant 0 : i32
    %c0_i32_0 = arith.constant 0 : i32
    return %arg0, %c0_i32 : i32, i32
  }
  func.func @transform_1(%arg0: i32, %arg1: i32) -> (i32, i32, i32) {
    %c0_i32 = arith.constant 0 : i32
    %c0_i32_0 = arith.constant 0 : i32
    %c0_i32_1 = arith.constant 0 : i32
    return %arg1, %c0_i32, %c0_i32_0 : i32, i32, i32
  }
  func.func @transform_2(%arg0: i32, %arg1: i32) -> (i32, i32, i32) {
    %c0_i32 = arith.constant 0 : i32
    %c0_i32_0 = arith.constant 0 : i32
    %c0_i32_1 = arith.constant 0 : i32
    return %arg1, %c0_i32, %c0_i32_0 : i32, i32, i32
  }
  func.func @transform_3(%arg0: i32, %arg1: i32) -> (i32, i32) {
    %c0_i32 = arith.constant 0 : i32
    %c0_i32_0 = arith.constant 0 : i32
    %c0_i32_1 = arith.constant 0 : i32
    return %c0_i32, %c0_i32_0 : i32, i32
  }
  func.func @transform_4(%arg0: i32, %arg1: i32) -> (i32, i32) {
    %c0_i32 = arith.constant 0 : i32
    %c0_i32_0 = arith.constant 0 : i32
    %c0_i32_1 = arith.constant 0 : i32
    return %c0_i32, %c0_i32_0 : i32, i32
  }
  func.func @transform_5(%arg0: i32, %arg1: i32) -> (i32, i32) {
    %c0_i32 = arith.constant 0 : i32
    %c0_i32_0 = arith.constant 0 : i32
    return %arg0, %c0_i32 : i32, i32
  }
}

</mosaic_0001>

<bundles_post_ra>
// kernel: tpu_custom_call.1
= control target key start
LH: loop header
LB: loop body
LE: loop exit
PB: predicated region body
PF: predicated region fallthrough
CT: control target
= control target key end

     0   :  { %s11110_s0 = inlined_call_operand.hbm [shape: f32[16,784], index: 0, kind: input, shape index: {}]   ;;  %s11111_s1 = inlined_call_operand.hbm [shape: bf16[4,896,896], index: 1, kind: input, shape index: {}]   ;;  %s11112_s2 = inlined_call_operand.hbm [shape: f32[4,1,896], index: 2, kind: input, shape index: {}]   ;;  %s11113_s3 = inlined_call_operand.hbm [shape: bf16[896,128], index: 3, kind: input, shape index: {}]   ;;  %s11114_s4 = inlined_call_operand.hbm [shape: f32[1,128], index: 4, kind: input, shape index: {}]   ;;  %s11115_s5 = inlined_call_operand.hbm [shape: f32[16,128], index: 5, kind: output, shape index: {}]  }
   0x1   :  { %11118 = sst [smem:[#allocation17_spill]] %s11110_s0 }
   0x2   :  { %10 = vsyncpa [#allocation4], 0 }
   0x3   :  { %11 = vsyncpa [#allocation7], 0 }
   0x4   :  { %13 = vsyncpa [#allocation7 + $0x1], 0 }
   0x5   :  { %14 = vsyncpa [#allocation10], 0 }
   0x6   :  { %15 = vsyncpa [#allocation5], 0  ;;  %s10047_s18 = smov 0   ;;  %s10049_s19 = smov 0  }
   0x7   :  { %s10051_s20 = smov 0   ;;  %s10053_s21 = smov 0  }
   0x8   :  { %s10055_s22 = smov 0   ;;  %s10057_s23 = smov 0  }
   0x9 LB: > { %s10076_s24 = sadd.s32 4294967295, %s9993_s23   ;;  %p79_p0 = scmp.ne.s32.totalorder %s9977_s19, %s9973_s18  ;;  %s9993_s23 = sphi %s10057_s23, %s21_s23   ;;  %s9989_s22 = sphi %s10055_s22, %s11133_s22   ;;  %s9985_s21 = sphi %s10053_s21, %s11132_s21   ;;  %s9981_s20 = sphi %s10051_s20, %s11131_s20   ;;  %s9977_s19 = sphi %s10049_s19, %s11130_s19   ;;  %s9973_s18 = sphi %s10047_s18, %s11129_s18  }
   0xa   : > { %p11116_p1 = scmp.eq.s32.totalorder %s10076_s24, 0  ;;  %p7396_p2 = scmp.ge.s32.totalorder %s9993_s23, 1 }
   0xb   : > { %p184_p3 = scmp.lt.s32.totalorder %s9993_s23, 5  ;;  %s9995_s27 = smov [#allocation9]  }
   0xc   : > { %p10084_p4 = por %p11116_p1, %p79_p0  ;;  %s213_s28 = sshll.u32 %s9995_s27, 4  ;;  %s214_s28 = int_to_ptr.vmem [resolvable:$true] %s213_s28 }
   0xd   : > { %p10088_p5 = pnand %p7396_p2, %p184_p3  ;;  %s30_s30 = sadd.s32 1, %s9989_s22 }
   0xe   : > { %s9784_s6 = scalar_lea.vmem %s214_s28, 7168  ;;  %p9792_p12 = scmp.lt.s32.totalorder %s214_s28, %s214_s28 }
   0xf   : > { %p8546_p6 = pneg %p10088_p5  ;;  %p9785_p9 = scmp.ne.s32.totalorder %s214_s28, %s9784_s6 }
  0x10   : > { %p9793_p13 = scmp.lt.s32.totalorder %s9784_s6, %s9784_s6 }
  0x11   : > { %p10096_p7 = pnand %p8546_p6, %p11116_p1 }
  0x12   : > { %p9794_p0 = por %p9793_p13, %p9792_p12 }
  0x13   : > { %p9775_p8 = pneg %p10096_p7 }
  0x15   : > { %p9787_p10 = pnand %p9785_p9, %p9775_p8 }
  0x17   : > { %p9788_p11 = pneg %p9787_p10 }
  0x19   : > { %p9795_p2 = pnand %p9794_p0, %p9788_p11 }
  0x1b   : > { %9798 = shalt.err (!%p9795_p2)
}
  0x1c   : > { %s9996_s7 = smov 64   ;;  %s9997_s8 = smov 4  }
  0x1d   : > { %8552 = dma.hbm_to_vmem [thread:$0]  (!%p10096_p7), %s11113_s3, 7168, %s214_s28, [#allocation10], %s9996_s7, %s9996_s7, %s9997_s8  }
  0x1e   : > { %p31_p3 = scmp.ge.s32.totalorder %s30_s30, 4  ;;  %s66_s11 = sadd.s32 1, %s9981_s20 }
  0x1f   : > { %p73_p6 = scmp.ne.s32.totalorder %s9981_s20, %s9977_s19  ;;  %p74_p9 = scmp.eq.s32.totalorder %s9993_s23, 0 }
  0x20   : > { %s11135_s30 = smov (%p31_p3, %s30_s30), 0  ;;  %p8566_p11 = scmp.lt.s32.totalorder %s9993_s23, 4 }
  0x21   : > { %p75_p10 = por %p74_p9, %p73_p6  ;;  %s63_s12 = ssub.s32 %s9989_s22, %s11135_s30 }
  0x22   : > { %s238_s13 = sand.u32 1, %s9993_s23   ;;  %p64_p12 = scmp.eq.s32.totalorder %s63_s12, 0 }
  0x23   : > { %s240_s14 = sand.u32 1, %s9981_s20   ;;  %s8521_s15 = smul.u32 50176, %s9989_s22 }
  0x24   : > { %s10124_s16 = scalar_select %p64_p12, %s9981_s20, %s66_s11  }
  0x25   : > { %s8520_s17 = smul.u32 3136, %s240_s14  ;;  %s248_s28 = scalar_lea.hbm %s11111_s1, %s8521_s15 }
  0x26   : > { %p10131_p13 = pnand %p8566_p11, %p75_p10  ;;  %s10135_s9 = scalar_lea.sflag [#allocation7], %s238_s13 }
  0x27   : > { %s242_s7 = scalar_lea.vmem [#allocation6], %s8520_s17  ;;  %s9998_s11 = smov [#allocation6]  }
  0x28   : > { %s249_s8 = sshll.u32 %s242_s7, 4  ;;  %p11117_p0 = pneg %p10131_p13  ;;  %s250_s8 = int_to_ptr.vmem [resolvable:$true] %s249_s8 }
  0x29   : > { %s9812_s10 = scalar_lea.vmem %s250_s8, 50176  ;;  %s9817_s12 = sshll.u32 %s9998_s11, 4  ;;  %s9818_s12 = int_to_ptr.vmem [resolvable:$false] %s9817_s12 }
  0x2a   : > { %p9813_p2 = scmp.ne.s32.totalorder %s250_s8, %s9812_s10  ;;  %s9819_s15 = scalar_lea.vmem %s9818_s12, 100352 }
  0x2b   : > { %p9820_p9 = scmp.lt.s32.totalorder %s250_s8, %s9818_s12  ;;  %p9821_p10 = scmp.lt.s32.totalorder %s9819_s15, %s9812_s10 }
  0x2c   : > { %p9815_p3 = pnand %p9813_p2, %p11117_p0 }
  0x2d   : > { %p9822_p11 = por %p9821_p10, %p9820_p9 }
  0x2e   : > { %p9816_p6 = pneg %p9815_p3 }
  0x30   : > { %p9823_p12 = pnand %p9822_p11, %p9816_p6 }
  0x32   : > { %9826 = shalt.err (!%p9823_p12)
}
  0x33   : > { %s9999_s17 = smov 448   ;;  %s10000_s13 = smov 28  }
  0x34   : > { %8559 = dma.hbm_to_vmem [thread:$0]  (!%p10131_p13), %s248_s28, 50176, %s250_s8, %s10135_s9, %s9999_s17, %s9999_s17, %s10000_s13  }
  0x35   : > { %s10001_s18 = smov [#allocation3]  }
  0x36   : > { %s200_s27 = sshll.u32 %s10001_s18, 4  ;;  %s201_s27 = int_to_ptr.vmem [resolvable:$true] %s200_s27 }
  0x37   : > { %s9838_s7 = scalar_lea.vmem %s201_s27, 1792  ;;  %p9846_p0 = scmp.lt.s32.totalorder %s201_s27, %s201_s27 }
  0x38   : > { %p9839_p2 = scmp.ne.s32.totalorder %s201_s27, %s9838_s7  ;;  %p9847_p9 = scmp.lt.s32.totalorder %s9838_s7, %s9838_s7 }
  0x3a   : > { %p9841_p3 = pnand %p9839_p2, %p9775_p8  ;;  %p9848_p6 = por %p9847_p9, %p9846_p0 }
  0x3c   : > { %p9842_p1 = pneg %p9841_p3 }
  0x3e   : > { %p9849_p10 = pnand %p9848_p6, %p9842_p1 }
  0x40   : > { %9852 = shalt.err (!%p9849_p10)
}
  0x41   : > { %s10002_s10 = smov 896   ;;  %s10003_s28 = smov 56  }
  0x42   : > { %s11123_s0 = sld [smem:[#allocation17_spill]]  ;;  %s8522_s12 = smul.u32 7, %s240_s14 }
  0x43   : > { %s10004_s15 = smov [#allocation11]   ;;  %s8523_s13 = smul.u32 112, %s9989_s22 }
  0x44   : > { %s227_s17 = sshll.u32 %s10004_s15, 4  ;;  %s228_s17 = int_to_ptr.vmem [resolvable:$true] %s227_s17 }
  0x45   : > { %s9864_s18 = scalar_lea.vmem %s228_s17, 16  ;;  %s9871_s7 = scalar_lea.vmem %s228_s17, 32 }
  0x46   : > { %p9865_p1 = scmp.ne.s32.totalorder %s228_s17, %s9864_s18  ;;  %p9872_p12 = scmp.lt.s32.totalorder %s228_s17, %s228_s17 }
  0x47   : > { %p9873_p2 = scmp.lt.s32.totalorder %s9871_s7, %s9864_s18 }
  0x48   : > { %8549 = dma.hbm_to_vmem [thread:$0]  (!%p10096_p7), %s11123_s0, 1792, %s201_s27, [#allocation4], %s10002_s10, %s10002_s10, %s10003_s28  }
  0x49   : > { %p9867_p0 = pnand %p9865_p1, %p9775_p8  ;;  %p9874_p3 = por %p9873_p2, %p9872_p12 }
  0x4b   : > { %p9868_p11 = pneg %p9867_p0 }
  0x4d   : > { %p9875_p9 = pnand %p9874_p3, %p9868_p11 }
  0x4f   : > { %9878 = shalt.err (!%p9875_p9)
}
  0x50   : > { %8555 = dma.hbm_to_vmem [thread:$0]  (!%p10096_p7), %s11114_s4, 16, %s228_s17, [#allocation10]  }
  0x51   : > { %s269_s8 = scalar_lea.hbm %s11112_s2, %s8523_s13  ;;  %s263_s11 = scalar_lea.vmem [#allocation8], %s8522_s12 }
  0x52   : > { %s271_s15 = sshll.u32 %s263_s11, 4  ;;  %p11124_p6 = pneg %p10131_p13  ;;  %s272_s15 = int_to_ptr.vmem [resolvable:$true] %s271_s15 }
  0x53   : > { %s9892_s0 = scalar_lea.vmem %s272_s15, 112  ;;  %s10005_s18 = smov [#allocation8]  }
  0x54   : > { %p9893_p8 = scmp.ne.s32.totalorder %s272_s15, %s9892_s0  ;;  %s9897_s29 = sshll.u32 %s10005_s18, 4  ;;  %s9898_s29 = int_to_ptr.vmem [resolvable:$false] %s9897_s29 }
  0x55   : > { %s9899_s7 = scalar_lea.vmem %s9898_s29, 224  ;;  %p9900_p0 = scmp.lt.s32.totalorder %s272_s15, %s9898_s29 }
  0x56   : > { %p9895_p10 = pnand %p9893_p8, %p11124_p6  ;;  %p9901_p11 = scmp.lt.s32.totalorder %s9899_s7, %s9892_s0 }
  0x58   : > { %p9896_p1 = pneg %p9895_p10  ;;  %p9902_p7 = por %p9901_p11, %p9900_p0 }
  0x5a   : > { %p9903_p12 = pnand %p9902_p7, %p9896_p1 }
  0x5c   : > { %9906 = shalt.err (!%p9903_p12)
}
  0x5d   : > { %8562 = dma.hbm_to_vmem [thread:$0]  (!%p10131_p13), %s269_s8, 112, %s272_s15, %s10135_s9  }
  0x5e   : > { %280 = sbr.rel (%p10088_p5) target bundleno = 1604 (0x644), region = 40  ;;  %p11125_p2 = scmp.eq.s32.totalorder (!%p10088_p5), %s10076_s24, 0 }
  0x63   : > { %9956 = dma.done.wait (%p11125_p2), [#allocation4], 1792   ;;  %p11126_p3 = pmov %p11125_p2 }
  0x64   : > { %s286_s0 = sand.u32 1, %s10076_s24   ;;  %s288_s12 = sand.u32 1, %s9977_s19  }
  0x65   : > { %9958 = vsyncadd (%p11126_p3), [#allocation4], 4294965504  ;;  %s8524_s17 = smul.u32 3136, %s288_s12  ;;  %s287_s13 = scalar_lea.sflag [#allocation7], %s286_s0 }
  0x67   : > { %s10181_s27 = scalar_lea.vmem [#allocation6], %s8524_s17 }
  0x68   : > { %9960 = dma.done.wait (%p10084_p4), %s287_s13, 50288  }
  0x69   : > { %9962 = vsyncadd (%p10084_p4), %s287_s13, 4294917008  ;;  %s10187_s26 = smul.u32 7, %s288_s12  ;;  %p11127_p5 = pmov %p11125_p2 }
  0x6b   : > { %s299_s6 = scalar_lea.vmem [#allocation8], %s10187_s26 }
  0x6c   : > { %9964 = dma.done.wait (%p11127_p5), [#allocation10], 7184   ;;  %p11128_p13 = pmov %p11125_p2 }
  0x6d   : > { %p7407_p9 = scmp.ne.s32.totalorder %s9985_s21, 0 }
  0x6e   : > { %9966 = vsyncadd (%p11128_p13), [#allocation10], 4294960112 }
  0x6f   : > { %340 = sbr.rel (%p7407_p9) target bundleno = 680 (0x2a8), region = 64 }
  0x74   : > { %v8640_v0 = vld [vmem:[%s10181_s27 + $0x18c] ss:$28 sps:$4 sm:$0xff]   ;;  %v8646_v4 = vld [vmem:[%s10181_s27 + $0x154] ss:$28 sps:$4 sm:$0xff]   ;;  %v8652_v8 = vld [vmem:[%s10181_s27 + $0x11c] ss:$28 sps:$4 sm:$0xff]  }
  0x75   : > { %v8642_v1 = vld [vmem:[%s10181_s27 + $0x50c] ss:$28 sps:$4 sm:$0xff]   ;;  %2559 = vmatprep.subr.bf16.mxu0 %v8640_v0  ;;  %v8648_v5 = vld [vmem:[%s10181_s27 + $0x4d4] ss:$28 sps:$4 sm:$0xff]   ;;  %v8654_v9 = vld [vmem:[%s10181_s27 + $0x49c] ss:$28 sps:$4 sm:$0xff]  }
  0x76   : > { %v8644_v2 = vld [vmem:[%s10181_s27 + $0x188] ss:$28 sps:$4 sm:$0xff]   ;;  %2602 = vmatprep.subr.bf16.mxu1 %v8642_v1  ;;  %v8650_v6 = vld [vmem:[%s10181_s27 + $0x150] ss:$28 sps:$4 sm:$0xff]   ;;  %v8656_v10 = vld [vmem:[%s10181_s27 + $0x118] ss:$28 sps:$4 sm:$0xff]  }
  0x77   : > { %v8645_v3 = vld [vmem:[%s10181_s27 + $0x508] ss:$28 sps:$4 sm:$0xff]   ;;  %2560 = vmatpush1.bf16.msra.mxu0 %v8644_v2  ;;  %v8651_v7 = vld [vmem:[%s10181_s27 + $0x4d0] ss:$28 sps:$4 sm:$0xff]   ;;  %v8657_v11 = vld [vmem:[%s10181_s27 + $0x498] ss:$28 sps:$4 sm:$0xff]  }
  0x78   : > { %2603 = vmatpush1.bf16.msra.mxu1 %v8645_v3  ;;  %2561 = vmatprep.subr.bf16.mxu0 %v8646_v4  ;;  %v8658_v12 = vld [vmem:[%s10181_s27 + $0xe4] ss:$28 sps:$4 sm:$0xff]   ;;  %v8664_v16 = vld [vmem:[%s10181_s27 + $0xac] ss:$28 sps:$4 sm:$0xff]   ;;  %v8670_v20 = vld [vmem:[%s10181_s27 + $0x74] ss:$28 sps:$4 sm:$0xff]  }
  0x79   : > { %2604 = vmatprep.subr.bf16.mxu1 %v8648_v5  ;;  %v8660_v13 = vld [vmem:[%s10181_s27 + $0x464] ss:$28 sps:$4 sm:$0xff]   ;;  %v8666_v17 = vld [vmem:[%s10181_s27 + $0x42c] ss:$28 sps:$4 sm:$0xff]   ;;  %v8672_v21 = vld [vmem:[%s10181_s27 + $0x3f4] ss:$28 sps:$4 sm:$0xff]  }
  0x7a   : > { %v8662_v14 = vld [vmem:[%s10181_s27 + $0xe0] ss:$28 sps:$4 sm:$0xff]   ;;  %v8668_v18 = vld [vmem:[%s10181_s27 + $0xa8] ss:$28 sps:$4 sm:$0xff]   ;;  %v8674_v22 = vld [vmem:[%s10181_s27 + $0x70] ss:$28 sps:$4 sm:$0xff]  }
  0x7b   : > { %2562 = vmatpush1.bf16.msra.mxu0 %v8650_v6  ;;  %v8663_v15 = vld [vmem:[%s10181_s27 + $0x460] ss:$28 sps:$4 sm:$0xff]   ;;  %v8669_v19 = vld [vmem:[%s10181_s27 + $0x428] ss:$28 sps:$4 sm:$0xff]   ;;  %v8675_v23 = vld [vmem:[%s10181_s27 + $0x3f0] ss:$28 sps:$4 sm:$0xff]  }
  0x7c   : > { %2605 = vmatpush1.bf16.msra.mxu1 %v8651_v7  ;;  %2563 = vmatprep.subr.bf16.mxu0 %v8652_v8  ;;  %v8676_v24 = vld [vmem:[%s10181_s27 + $0x3c] ss:$28 sps:$4 sm:$0xff]   ;;  %v8682_v28 = vld [vmem:[%s10181_s27 + $0x4] ss:$28 sps:$4 sm:$0xff]   ;;  %v8688_v32 = vld [vmem:[%s10181_s27 + $0x34c] ss:$28 sps:$4 sm:$0xff]  }
  0x7d   : > { %2606 = vmatprep.subr.bf16.mxu1 %v8654_v9  ;;  %v8678_v25 = vld [vmem:[%s10181_s27 + $0x3bc] ss:$28 sps:$4 sm:$0xff]   ;;  %v8684_v29 = vld [vmem:[%s10181_s27 + $0x384] ss:$28 sps:$4 sm:$0xff]   ;;  %v8690_v33 = vld [vmem:[%s10181_s27 + $0x6cc] ss:$28 sps:$4 sm:$0xff]  }
  0x7e   : > { %v8680_v26 = vld [vmem:[%s10181_s27 + $0x38] ss:$28 sps:$4 sm:$0xff]   ;;  %v8686_v30 = vld [vmem:[%s10181_s27] ss:$28 sps:$4 sm:$0xff]   ;;  %v8692_v34 = vld [vmem:[%s10181_s27 + $0x348] ss:$28 sps:$4 sm:$0xff]  }
  0x7f   : > { %2564 = vmatpush1.bf16.msra.mxu0 %v8656_v10  ;;  %v8681_v27 = vld [vmem:[%s10181_s27 + $0x3b8] ss:$28 sps:$4 sm:$0xff]   ;;  %v8687_v31 = vld [vmem:[%s10181_s27 + $0x380] ss:$28 sps:$4 sm:$0xff]   ;;  %v8693_v35 = vld [vmem:[%s10181_s27 + $0x6c8] ss:$28 sps:$4 sm:$0xff]  }
  0x80   : > { %2607 = vmatpush1.bf16.msra.mxu1 %v8657_v11  ;;  %2565 = vmatprep.subr.bf16.mxu0 %v8658_v12  ;;  %v8694_v36 = vld [vmem:[%s10181_s27 + $0x314] ss:$28 sps:$4 sm:$0xff]   ;;  %v8700_v40 = vld [vmem:[%s10181_s27 + $0x2dc] ss:$28 sps:$4 sm:$0xff]   ;;  %v8706_v44 = vld [vmem:[%s10181_s27 + $0x2a4] ss:$28 sps:$4 sm:$0xff]  }
  0x81   : > { %2608 = vmatprep.subr.bf16.mxu1 %v8660_v13  ;;  %v8696_v37 = vld [vmem:[%s10181_s27 + $0x694] ss:$28 sps:$4 sm:$0xff]   ;;  %v8702_v41 = vld [vmem:[%s10181_s27 + $0x65c] ss:$28 sps:$4 sm:$0xff]   ;;  %v8708_v45 = vld [vmem:[%s10181_s27 + $0x624] ss:$28 sps:$4 sm:$0xff]  }
  0x82   : > { %v8698_v38 = vld [vmem:[%s10181_s27 + $0x310] ss:$28 sps:$4 sm:$0xff]   ;;  %v8704_v42 = vld [vmem:[%s10181_s27 + $0x2d8] ss:$28 sps:$4 sm:$0xff]   ;;  %v351_v49 = vld [vmem:[#allocation3 + $0x50] sm:$0xff]  ;;  %vm2555_vm0 = vcmask 130048  }
  0x83   : > { %2566 = vmatpush1.bf16.msra.mxu0 %v8662_v14  ;;  %v8699_v39 = vld [vmem:[%s10181_s27 + $0x690] ss:$28 sps:$4 sm:$0xff]   ;;  %v8705_v43 = vld [vmem:[%s10181_s27 + $0x658] ss:$28 sps:$4 sm:$0xff]   ;;  %v8710_v50 = vld [vmem:[%s10181_s27 + $0x2a0] ss:$28 sps:$4 sm:$0xff]  }
  0x84   : > { %2609 = vmatpush1.bf16.msra.mxu1 %v8663_v15  ;;  %2567 = vmatprep.subr.bf16.mxu0 %v8664_v16  ;;  %v342_v46 = vld [vmem:[#allocation3 + $0x8] sm:$0xff]  ;;  %v349_v47 = vld [vmem:[#allocation3 + $0x40] sm:$0xff]  ;;  %v344_v48 = vld [vmem:[#allocation3 + $0x18] sm:$0xff]  ;;  %vm10008_vm1 = vmmov 0  }
  0x85   : > { %2610 = vmatprep.subr.bf16.mxu1 %v8666_v17  ;;  %v8711_v51 = vld [vmem:[%s10181_s27 + $0x620] ss:$28 sps:$4 sm:$0xff]   ;;  %v8712_v52 = vld [vmem:[%s10181_s27 + $0x26c] ss:$28 sps:$4 sm:$0xff]   ;;  %v10244_v53 = vpack.c.bf16 %v349_v47, %v342_v46  ;;  %v10246_v54 = vpack.c.bf16 %v351_v49, %v344_v48  ;;  %v8718_v58 = vld [vmem:[%s10181_s27 + $0x234] ss:$28 sps:$4 sm:$0xff]  }
  0x86   : > { %v8714_v55 = vld [vmem:[%s10181_s27 + $0x5ec] ss:$28 sps:$4 sm:$0xff]   ;;  %v8720_v59 = vld [vmem:[%s10181_s27 + $0x5b4] ss:$28 sps:$4 sm:$0xff]   ;;  %v8724_v62 = vld [vmem:[%s10181_s27 + $0x1fc] ss:$28 sps:$4 sm:$0xff]  }
  0x87   : > { %2568 = vmatpush1.bf16.msra.mxu0 %v8668_v18  ;;  %2591 = vmatprep.mubr.bf16.mxu0 %v10244_v53  ;;  %v8716_v56 = vld [vmem:[%s10181_s27 + $0x268] ss:$28 sps:$4 sm:$0xff]   ;;  %v8722_v60 = vld [vmem:[%s10181_s27 + $0x230] ss:$28 sps:$4 sm:$0xff]   ;;  %v8726_v63 = vld [vmem:[%s10181_s27 + $0x57c] ss:$28 sps:$4 sm:$0xff]  }
  0x88   : > { %2611 = vmatpush1.bf16.msra.mxu1 %v8669_v19  ;;  %2569 = vmatprep.subr.bf16.mxu0 %v8670_v20  ;;  %v8717_v57 = vld [vmem:[%s10181_s27 + $0x5e8] ss:$28 sps:$4 sm:$0xff]   ;;  %v8723_v61 = vld [vmem:[%s10181_s27 + $0x5b0] ss:$28 sps:$4 sm:$0xff]   ;;  %v8728_v0 = vld [vmem:[%s10181_s27 + $0x1f8] ss:$28 sps:$4 sm:$0xff]  }
  0x89   : > { %2612 = vmatprep.subr.bf16.mxu1 %v8672_v21  ;;  %2634 = vmatprep.mubr.bf16.mxu1 %v10246_v54  ;;  %v8729_v1 = vld [vmem:[%s10181_s27 + $0x578] ss:$28 sps:$4 sm:$0xff]   ;;  %v8730_v2 = vld [vmem:[%s10181_s27 + $0x1c4] ss:$28 sps:$4 sm:$0xff]   ;;  %v348_v7 = vld [vmem:[#allocation3 + $0x38] sm:$0xff]  ;;  %v10006_v21 = vmov 0  }
  0x8a   : > { %v8732_v3 = vld [vmem:[%s10181_s27 + $0x544] ss:$28 sps:$4 sm:$0xff]   ;;  %v341_v6 = vld [vmem:[#allocation3] sm:$0xff]  ;;  %v350_v9 = vld [vmem:[#allocation3 + $0x48] sm:$0xff] }
  0x8b   : > { %2570 = vmatpush1.bf16.msra.mxu0 %v8674_v22  ;;  %v8734_v4 = vld [vmem:[%s10181_s27 + $0x1c0] ss:$28 sps:$4 sm:$0xff]   ;;  %v8738_v10 = vld [vmem:[%s10181_s27 + $0x88c] ss:$28 sps:$4 sm:$0xff]   ;;  %v10267_v12 = vpack.c.bf16 %v348_v7, %v341_v6  ;;  %v8744_v16 = vld [vmem:[%s10181_s27 + $0x854] ss:$28 sps:$4 sm:$0xff]  }
  0x8c   : > { %2613 = vmatpush1.bf16.msra.mxu1 %v8675_v23  ;;  %2571 = vmatprep.subr.bf16.mxu0 %v8676_v24  ;;  %v8735_v5 = vld [vmem:[%s10181_s27 + $0x540] ss:$28 sps:$4 sm:$0xff]   ;;  %v8736_v14 = vld [vmem:[%s10181_s27 + $0x888] ss:$28 sps:$4 sm:$0xff]   ;;  %v8747_v17 = vld [vmem:[%s10181_s27 + $0x194] ss:$28 sps:$4 sm:$0xff]  }
  0x8d   : > { %2614 = vmatprep.subr.bf16.mxu1 %v8678_v25  ;;  %v343_v8 = vld [vmem:[#allocation3 + $0x10] sm:$0xff]  ;;  %v8742_v18 = vld [vmem:[%s10181_s27 + $0x850] ss:$28 sps:$4 sm:$0xff]   ;;  %v354_v20 = vld [vmem:[#allocation3 + $0x68] sm:$0xff] }
  0x8e   : > { %v8741_v11 = vld [vmem:[%s10181_s27 + $0xa84] ss:$28 sps:$4 sm:$0xff]   ;;  %v10269_v13 = vpack.c.bf16 %v350_v9, %v343_v8  ;;  %v8750_v22 = vld [vmem:[%s10181_s27 + $0x81c] ss:$28 sps:$4 sm:$0xff]   ;;  %v8745_v24 = vld [vmem:[%s10181_s27 + $0x190] ss:$28 sps:$4 sm:$0xff]  }
  0x8f   : > { %2572 = vmatpush1.bf16.msra.mxu0 %v8680_v26  ;;  %v8739_v15 = vld [vmem:[%s10181_s27 + $0xa80] ss:$28 sps:$4 sm:$0xff]   ;;  %v8748_v25 = vld [vmem:[%s10181_s27 + $0x818] ss:$28 sps:$4 sm:$0xff]   ;;  %v8808_v6 = vld [vmem:[%s10181_s27 + $0x968] ss:$28 sps:$4 sm:$0xff]  }
  0x90   : > { %2615 = vmatpush1.bf16.msra.mxu1 %v8681_v27  ;;  %2573 = vmatprep.subr.bf16.mxu0 %v8682_v28  ;;  %v347_v19 = vld [vmem:[#allocation3 + $0x30] sm:$0xff]  ;;  %v8753_v26 = vld [vmem:[%s10181_s27 + $0x15c] ss:$28 sps:$4 sm:$0xff]   ;;  %v8813_v7 = vld [vmem:[%s10181_s27 + $0x2ac] ss:$28 sps:$4 sm:$0xff]  }
  0x91   : > { %2616 = vmatprep.subr.bf16.mxu1 %v8684_v29  ;;  %v10280_v23 = vpack.c.bf16 %v354_v20, %v347_v19  ;;  %v8756_v27 = vld [vmem:[%s10181_s27 + $0x7e4] ss:$28 sps:$4 sm:$0xff]   ;;  %v8751_v28 = vld [vmem:[%s10181_s27 + $0x158] ss:$28 sps:$4 sm:$0xff]  }
  0x92   : > { %v8754_v29 = vld [vmem:[%s10181_s27 + $0x7e0] ss:$28 sps:$4 sm:$0xff]   ;;  %v8775_v47 = vld [vmem:[%s10181_s27 + $0x78] ss:$28 sps:$4 sm:$0xff]   ;;  %v8811_v9 = vld [vmem:[%s10181_s27 + $0x2a8] ss:$28 sps:$4 sm:$0xff]  }
  0x93   : > { %2574 = vmatpush1.bf16.msra.mxu0 %v8686_v30  ;;  %v8759_v30 = vld [vmem:[%s10181_s27 + $0x124] ss:$28 sps:$4 sm:$0xff]   ;;  %v8816_v8 = vld [vmem:[%s10181_s27 + $0x934] ss:$28 sps:$4 sm:$0xff]  }
  0x94   : > { %2617 = vmatpush1.bf16.msra.mxu1 %v8687_v31  ;;  %2575 = vmatprep.subr.bf16.mxu0 %v8688_v32  ;;  %v8762_v31 = vld [vmem:[%s10181_s27 + $0x7ac] ss:$28 sps:$4 sm:$0xff]   ;;  %v8757_v32 = vld [vmem:[%s10181_s27 + $0x120] ss:$28 sps:$4 sm:$0xff]   ;;  %v8823_v19 = vld [vmem:[%s10181_s27 + $0x238] ss:$28 sps:$4 sm:$0xff]  }
  0x95   : > { %2618 = vmatprep.subr.bf16.mxu1 %v8690_v33  ;;  %v8760_v33 = vld [vmem:[%s10181_s27 + $0x7a8] ss:$28 sps:$4 sm:$0xff]   ;;  %v8778_v48 = vld [vmem:[%s10181_s27 + $0x700] ss:$28 sps:$4 sm:$0xff]  }
  0x96   : > { %v8780_v46 = vld [vmem:[%s10181_s27 + $0x704] ss:$28 sps:$4 sm:$0xff]  }
  0x97   : > { %2576 = vmatpush2.bf16.msra.mxu0 %v8692_v34  ;;  %v8765_v34 = vld [vmem:[%s10181_s27 + $0xec] ss:$28 sps:$4 sm:$0xff]   ;;  %v8783_v49 = vld [vmem:[%s10181_s27 + $0x44] ss:$28 sps:$4 sm:$0xff]  }
  0x98   : > { %2619 = vmatpush2.bf16.msra.mxu1 %v8693_v35  ;;  %2577 = vmatprep.subr.bf16.mxu0 %v8694_v36  ;;  %v8768_v35 = vld [vmem:[%s10181_s27 + $0x774] ss:$28 sps:$4 sm:$0xff]   ;;  %v8763_v36 = vld [vmem:[%s10181_s27 + $0xe8] ss:$28 sps:$4 sm:$0xff]   ;;  %v8826_v20 = vld [vmem:[%s10181_s27 + $0x8c0] ss:$28 sps:$4 sm:$0xff]  }
  0x99   : > { %2620 = vmatprep.subr.bf16.mxu1 %v8696_v37  ;;  %v8766_v37 = vld [vmem:[%s10181_s27 + $0x770] ss:$28 sps:$4 sm:$0xff]  }
  0x9b   : > { %2578 = vmatpush2.bf16.msra.mxu0 %v8698_v38  ;;  %v8771_v38 = vld [vmem:[%s10181_s27 + $0xb4] ss:$28 sps:$4 sm:$0xff]  }
  0x9c   : > { %2621 = vmatpush2.bf16.msra.mxu1 %v8699_v39  ;;  %2579 = vmatprep.subr.bf16.mxu0 %v8700_v40  ;;  %v8774_v39 = vld [vmem:[%s10181_s27 + $0x73c] ss:$28 sps:$4 sm:$0xff]   ;;  %v8769_v40 = vld [vmem:[%s10181_s27 + $0xb0] ss:$28 sps:$4 sm:$0xff]  }
  0x9d   : > { %2622 = vmatprep.subr.bf16.mxu1 %v8702_v41  ;;  %v346_v41 = vld [vmem:[#allocation3 + $0x28] sm:$0xff] }
  0x9f   : > { %2580 = vmatpush2.bf16.msra.mxu0 %v8704_v42  ;;  %v353_v42 = vld [vmem:[#allocation3 + $0x60] sm:$0xff] }
  0xa0   : > { %2623 = vmatpush2.bf16.msra.mxu1 %v8705_v43  ;;  %2581 = vmatprep.subr.bf16.mxu0 %v8706_v44  ;;  %v8772_v43 = vld [vmem:[%s10181_s27 + $0x738] ss:$28 sps:$4 sm:$0xff]   ;;  %v10303_v44 = vpack.c.bf16 %v353_v42, %v346_v41  ;;  %v8850_v41 = vld [vmem:[%s10181_s27 + $0x468] ss:$28 sps:$4 sm:$0xff]  }
  0xa1   : > { %2624 = vmatprep.subr.bf16.mxu1 %v8708_v45  ;;  %v8777_v45 = vld [vmem:[%s10181_s27 + $0x7c] ss:$28 sps:$4 sm:$0xff]   ;;  %v8855_v42 = vld [vmem:[%s10181_s27 + $0x824] ss:$28 sps:$4 sm:$0xff]  }
  0xa3   : > { %2582 = vmatpush2.bf16.msra.mxu0 %v8710_v50  ;;  %v8786_v50 = vld [vmem:[%s10181_s27 + $0xa4c] ss:$28 sps:$4 sm:$0xff]  }
  0xa4   : > { %2625 = vmatpush2.bf16.msra.mxu1 %v8711_v51  ;;  %2583 = vmatprep.subr.bf16.mxu0 %v8712_v52  ;;  %v8781_v51 = vld [vmem:[%s10181_s27 + $0x40] ss:$28 sps:$4 sm:$0xff]   ;;  %v8784_v52 = vld [vmem:[%s10181_s27 + $0xa48] ss:$28 sps:$4 sm:$0xff]  }
  0xa5   : > { %2626 = vmatprep.subr.bf16.mxu1 %v8714_v55  ;;  %v8789_v55 = vld [vmem:[%s10181_s27 + $0xc] ss:$28 sps:$4 sm:$0xff]  }
  0xa7   : > { %2584 = vmatpush2.bf16.msra.mxu0 %v8716_v56  ;;  %v8792_v56 = vld [vmem:[%s10181_s27 + $0xa14] ss:$28 sps:$4 sm:$0xff]  }
  0xa8   : > { %2627 = vmatpush2.bf16.msra.mxu1 %v8717_v57  ;;  %2585 = vmatprep.subr.bf16.mxu0 %v8718_v58  ;;  %v8787_v57 = vld [vmem:[%s10181_s27 + $0x8] ss:$28 sps:$4 sm:$0xff]   ;;  %v8790_v58 = vld [vmem:[%s10181_s27 + $0xa10] ss:$28 sps:$4 sm:$0xff]  }
  0xa9   : > { %2628 = vmatprep.subr.bf16.mxu1 %v8720_v59  ;;  %v8795_v59 = vld [vmem:[%s10181_s27 + $0x354] ss:$28 sps:$4 sm:$0xff]  }
  0xab   : > { %2586 = vmatpush2.bf16.msra.mxu0 %v8722_v60  ;;  %v8798_v60 = vld [vmem:[%s10181_s27 + $0x9dc] ss:$28 sps:$4 sm:$0xff]  }
  0xac   : > { %2629 = vmatpush2.bf16.msra.mxu1 %v8723_v61  ;;  %2587 = vmatprep.subr.bf16.mxu0 %v8724_v62  ;;  %v8793_v61 = vld [vmem:[%s10181_s27 + $0x350] ss:$28 sps:$4 sm:$0xff]   ;;  %v8796_v62 = vld [vmem:[%s10181_s27 + $0x9d8] ss:$28 sps:$4 sm:$0xff]  }
  0xad   : > { %2630 = vmatprep.subr.bf16.mxu1 %v8726_v63  ;;  %v8801_v63 = vld [vmem:[%s10181_s27 + $0x31c] ss:$28 sps:$4 sm:$0xff]  }
  0xaf   : > { %2588 = vmatpush2.bf16.msra.mxu0 %v8728_v0  ;;  %v8804_v0 = vld [vmem:[%s10181_s27 + $0x9a4] ss:$28 sps:$4 sm:$0xff]  }
  0xb0   : > { %2631 = vmatpush2.bf16.msra.mxu1 %v8729_v1  ;;  %2589 = vmatprep.subr.bf16.mxu0 %v8730_v2  ;;  %v8799_v1 = vld [vmem:[%s10181_s27 + $0x318] ss:$28 sps:$4 sm:$0xff]   ;;  %v8802_v2 = vld [vmem:[%s10181_s27 + $0x9a0] ss:$28 sps:$4 sm:$0xff]  }
  0xb1   : > { %2632 = vmatprep.subr.bf16.mxu1 %v8732_v3  ;;  %v8807_v3 = vld [vmem:[%s10181_s27 + $0x2e4] ss:$28 sps:$4 sm:$0xff]  }
  0xb3   : > { %2590 = vmatpush2.bf16.msra.mxu0 %v8734_v4  ;;  %v8810_v4 = vld [vmem:[%s10181_s27 + $0x96c] ss:$28 sps:$4 sm:$0xff]  }
  0xb4   : > { %2633 = vmatpush2.bf16.msra.mxu1 %v8735_v5  ;;  %2645 = vmatprep.subr.bf16.mxu0 %v8738_v10  ;;  %v8805_v5 = vld [vmem:[%s10181_s27 + $0x2e0] ss:$28 sps:$4 sm:$0xff]   ;;  %v8814_v10 = vld [vmem:[%s10181_s27 + $0x930] ss:$28 sps:$4 sm:$0xff]  }
  0xb5   : > { %2702 = vmatprep.subr.bf16.mxu1 %v8741_v11  ;;  %v8819_v11 = vld [vmem:[%s10181_s27 + $0x274] ss:$28 sps:$4 sm:$0xff]  }
  0xb6   : > { %2592 = vmatmul.mubr.bf16.vlgmr.msra.gmra.mxu0 %v10267_v12 }
  0xb7   : > { %2635 = vmatmul.mubr.bf16.vlgmr.msra.gmra.mxu1 %v10269_v13  ;;  %2646 = vmatpush1.bf16.msra.mxu0 %v8736_v14  ;;  %v8822_v14 = vld [vmem:[%s10181_s27 + $0x8fc] ss:$28 sps:$4 sm:$0xff]  }
  0xb8   : > { %2703 = vmatpush1.bf16.msra.mxu1 %v8739_v15  ;;  %2647 = vmatprep.subr.bf16.mxu0 %v8744_v16  ;;  %v8817_v15 = vld [vmem:[%s10181_s27 + $0x270] ss:$28 sps:$4 sm:$0xff]   ;;  %v8820_v16 = vld [vmem:[%s10181_s27 + $0x8f8] ss:$28 sps:$4 sm:$0xff]  }
  0xb9   : > { %2720 = vmatprep.mubr.bf16.mxu1 %v10006_v21  ;;  %2731 = vmatprep.subr.bf16.mxu1 %v8747_v17  ;;  %v8825_v17 = vld [vmem:[%s10181_s27 + $0x23c] ss:$28 sps:$4 sm:$0xff]  }
  0xba   : > { %2677 = vmatprep.mubr.bf16.mxu0 %v10303_v44 }
  0xbb   : > { %2648 = vmatpush1.bf16.msra.mxu0 %v8742_v18  ;;  %v8828_v18 = vld [vmem:[%s10181_s27 + $0x8c4] ss:$28 sps:$4 sm:$0xff]  }
  0xbc   : > { %2649 = vmatprep.subr.bf16.mxu0 %v8750_v22  ;;  %v345_v22 = vld [vmem:[#allocation3 + $0x20] sm:$0xff] }
  0xbf   : > { %7751 = vmatmul.mubr.msk.bf16.vlgmr.msra.gmra.mxu1 %vm2555_vm0, %v10280_v23  ;;  %2650 = vmatpush1.bf16.msra.mxu0 %v8748_v25  ;;  %v8831_v25 = vld [vmem:[%s10181_s27 + $0x204] ss:$28 sps:$4 sm:$0xff]  }
  0xc0   : > { %2732 = vmatpush1.bf16.msra.mxu1 %v8745_v24  ;;  %2651 = vmatprep.subr.bf16.mxu0 %v8756_v27  ;;  %v352_v24 = vld [vmem:[#allocation3 + $0x58] sm:$0xff] }
  0xc1   : > { %2733 = vmatprep.subr.bf16.mxu1 %v8753_v26  ;;  %2763 = vmatprep.mubr.bf16.mxu1 %v10244_v53  ;;  %v8834_v26 = vld [vmem:[%s10181_s27 + $0x514] ss:$28 sps:$4 sm:$0xff]   ;;  %v10344_v27 = vpack.c.bf16 %v352_v24, %v345_v22  ;;  %v8907_v22 = vld [vmem:[%s10181_s27 + $0x9a8] ss:$28 sps:$4 sm:$0xff]  }
  0xc2   : > { %v8910_v24 = vld [vmem:[%s10181_s27 + $0x5b8] ss:$28 sps:$4 sm:$0xff]  }
  0xc3   : > { %2652 = vmatpush1.bf16.msra.mxu0 %v8754_v29  ;;  %v8832_v29 = vld [vmem:[%s10181_s27 + $0x510] ss:$28 sps:$4 sm:$0xff]  }
  0xc4   : > { %2734 = vmatpush1.bf16.msra.mxu1 %v8751_v28  ;;  %2653 = vmatprep.subr.bf16.mxu0 %v8762_v31  ;;  %v8829_v28 = vld [vmem:[%s10181_s27 + $0x200] ss:$28 sps:$4 sm:$0xff]  }
  0xc5   : > { %2735 = vmatprep.subr.bf16.mxu1 %v8759_v30  ;;  %v8837_v30 = vld [vmem:[%s10181_s27 + $0x1cc] ss:$28 sps:$4 sm:$0xff]   ;;  %v8840_v31 = vld [vmem:[%s10181_s27 + $0x4dc] ss:$28 sps:$4 sm:$0xff]  }
  0xc7   : > { %2654 = vmatpush1.bf16.msra.mxu0 %v8760_v33  ;;  %v8838_v33 = vld [vmem:[%s10181_s27 + $0x4d8] ss:$28 sps:$4 sm:$0xff]  }
  0xc8   : > { %2736 = vmatpush1.bf16.msra.mxu1 %v8757_v32  ;;  %2655 = vmatprep.subr.bf16.mxu0 %v8768_v35  ;;  %v8835_v32 = vld [vmem:[%s10181_s27 + $0x1c8] ss:$28 sps:$4 sm:$0xff]  }
  0xc9   : > { %2737 = vmatprep.subr.bf16.mxu1 %v8765_v34  ;;  %v8843_v34 = vld [vmem:[%s10181_s27 + $0x894] ss:$28 sps:$4 sm:$0xff]   ;;  %v8846_v35 = vld [vmem:[%s10181_s27 + $0x4a4] ss:$28 sps:$4 sm:$0xff]  }
  0xcb   : > { %2656 = vmatpush1.bf16.msra.mxu0 %v8766_v37  ;;  %v8844_v37 = vld [vmem:[%s10181_s27 + $0x4a0] ss:$28 sps:$4 sm:$0xff]  }
  0xcc   : > { %2738 = vmatpush1.bf16.msra.mxu1 %v8763_v36  ;;  %2657 = vmatprep.subr.bf16.mxu0 %v8774_v39  ;;  %v8841_v36 = vld [vmem:[%s10181_s27 + $0x890] ss:$28 sps:$4 sm:$0xff]  }
  0xcd   : > { %2739 = vmatprep.subr.bf16.mxu1 %v8771_v38  ;;  %v8849_v38 = vld [vmem:[%s10181_s27 + $0x85c] ss:$28 sps:$4 sm:$0xff]   ;;  %v8852_v39 = vld [vmem:[%s10181_s27 + $0x46c] ss:$28 sps:$4 sm:$0xff]  }
  0xcf   : > { %2658 = vmatpush1.bf16.msra.mxu0 %v8772_v43  ;;  %v8858_v43 = vld [vmem:[%s10181_s27 + $0x434] ss:$28 sps:$4 sm:$0xff]  }
  0xd0   : > { %2740 = vmatpush1.bf16.msra.mxu1 %v8769_v40  ;;  %2659 = vmatprep.subr.bf16.mxu0 %v8780_v46  ;;  %v8847_v40 = vld [vmem:[%s10181_s27 + $0x858] ss:$28 sps:$4 sm:$0xff]   ;;  %v8856_v46 = vld [vmem:[%s10181_s27 + $0x430] ss:$28 sps:$4 sm:$0xff]  }
  0xd1   : > { %2741 = vmatprep.subr.bf16.mxu1 %v8777_v45  ;;  %v8853_v45 = vld [vmem:[%s10181_s27 + $0x820] ss:$28 sps:$4 sm:$0xff]  }
  0xd3   : > { %2660 = vmatpush1.bf16.msra.mxu0 %v8778_v48  ;;  %v8864_v48 = vld [vmem:[%s10181_s27 + $0x3fc] ss:$28 sps:$4 sm:$0xff]  }
  0xd4   : > { %2742 = vmatpush1.bf16.msra.mxu1 %v8775_v47  ;;  %2661 = vmatprep.subr.bf16.mxu0 %v8786_v50  ;;  %v8861_v47 = vld [vmem:[%s10181_s27 + $0x7ec] ss:$28 sps:$4 sm:$0xff]   ;;  %v8862_v50 = vld [vmem:[%s10181_s27 + $0x3f8] ss:$28 sps:$4 sm:$0xff]  }
  0xd5   : > { %2743 = vmatprep.subr.bf16.mxu1 %v8783_v49  ;;  %v8859_v49 = vld [vmem:[%s10181_s27 + $0x7e8] ss:$28 sps:$4 sm:$0xff]  }
  0xd7   : > { %2662 = vmatpush2.bf16.msra.mxu0 %v8784_v52  ;;  %v8870_v52 = vld [vmem:[%s10181_s27 + $0x3c4] ss:$28 sps:$4 sm:$0xff]  }
  0xd8   : > { %2744 = vmatpush1.bf16.msra.mxu1 %v8781_v51  ;;  %2663 = vmatprep.subr.bf16.mxu0 %v8792_v56  ;;  %v8867_v51 = vld [vmem:[%s10181_s27 + $0x7b4] ss:$28 sps:$4 sm:$0xff]   ;;  %v8868_v56 = vld [vmem:[%s10181_s27 + $0x3c0] ss:$28 sps:$4 sm:$0xff]  }
  0xd9   : > { %2745 = vmatprep.subr.bf16.mxu1 %v8789_v55  ;;  %v8865_v55 = vld [vmem:[%s10181_s27 + $0x7b0] ss:$28 sps:$4 sm:$0xff]  }
  0xdb   : > { %2664 = vmatpush2.bf16.msra.mxu0 %v8790_v58  ;;  %v8876_v58 = vld [vmem:[%s10181_s27 + $0x38c] ss:$28 sps:$4 sm:$0xff]  }
  0xdc   : > { %2746 = vmatpush1.bf16.msra.mxu1 %v8787_v57  ;;  %2665 = vmatprep.subr.bf16.mxu0 %v8798_v60  ;;  %v8873_v57 = vld [vmem:[%s10181_s27 + $0x77c] ss:$28 sps:$4 sm:$0xff]   ;;  %v8874_v60 = vld [vmem:[%s10181_s27 + $0x388] ss:$28 sps:$4 sm:$0xff]  }
  0xdd   : > { %2747 = vmatprep.subr.bf16.mxu1 %v8795_v59  ;;  %v8871_v59 = vld [vmem:[%s10181_s27 + $0x778] ss:$28 sps:$4 sm:$0xff]  }
  0xdf   : > { %2666 = vmatpush2.bf16.msra.mxu0 %v8796_v62  ;;  %v8882_v62 = vld [vmem:[%s10181_s27 + $0x6d4] ss:$28 sps:$4 sm:$0xff]  }
  0xe0   : > { %2748 = vmatpush2.bf16.msra.mxu1 %v8793_v61  ;;  %2667 = vmatprep.subr.bf16.mxu0 %v8804_v0  ;;  %v8879_v61 = vld [vmem:[%s10181_s27 + $0x744] ss:$28 sps:$4 sm:$0xff]   ;;  %v8880_v0 = vld [vmem:[%s10181_s27 + $0x6d0] ss:$28 sps:$4 sm:$0xff]  }
  0xe1   : > { %2749 = vmatprep.subr.bf16.mxu1 %v8801_v63  ;;  %v8877_v63 = vld [vmem:[%s10181_s27 + $0x740] ss:$28 sps:$4 sm:$0xff]  }
  0xe3   : > { %2668 = vmatpush2.bf16.msra.mxu0 %v8802_v2  ;;  %v8888_v2 = vld [vmem:[%s10181_s27 + $0x69c] ss:$28 sps:$4 sm:$0xff]  }
  0xe4   : > { %2750 = vmatpush2.bf16.msra.mxu1 %v8799_v1  ;;  %2669 = vmatprep.subr.bf16.mxu0 %v8810_v4  ;;  %v8885_v1 = vld [vmem:[%s10181_s27 + $0x70c] ss:$28 sps:$4 sm:$0xff]   ;;  %v8886_v4 = vld [vmem:[%s10181_s27 + $0x698] ss:$28 sps:$4 sm:$0xff]  }
  0xe5   : > { %2751 = vmatprep.subr.bf16.mxu1 %v8807_v3  ;;  %v8883_v3 = vld [vmem:[%s10181_s27 + $0x708] ss:$28 sps:$4 sm:$0xff]  }
  0xe7   : > { %2670 = vmatpush2.bf16.msra.mxu0 %v8808_v6  ;;  %v8894_v6 = vld [vmem:[%s10181_s27 + $0x664] ss:$28 sps:$4 sm:$0xff]  }
  0xe8   : > { %2752 = vmatpush2.bf16.msra.mxu1 %v8805_v5  ;;  %2671 = vmatprep.subr.bf16.mxu0 %v8816_v8  ;;  %v8891_v5 = vld [vmem:[%s10181_s27 + $0xa54] ss:$28 sps:$4 sm:$0xff]   ;;  %v8892_v8 = vld [vmem:[%s10181_s27 + $0x660] ss:$28 sps:$4 sm:$0xff]  }
  0xe9   : > { %2753 = vmatprep.subr.bf16.mxu1 %v8813_v7  ;;  %v8889_v7 = vld [vmem:[%s10181_s27 + $0xa50] ss:$28 sps:$4 sm:$0xff]  }
  0xeb   : > { %2672 = vmatpush2.bf16.msra.mxu0 %v8814_v10  ;;  %v8900_v10 = vld [vmem:[%s10181_s27 + $0x62c] ss:$28 sps:$4 sm:$0xff]  }
  0xec   : > { %2754 = vmatpush2.bf16.msra.mxu1 %v8811_v9  ;;  %2673 = vmatprep.subr.bf16.mxu0 %v8822_v14  ;;  %v8897_v9 = vld [vmem:[%s10181_s27 + $0xa1c] ss:$28 sps:$4 sm:$0xff]   ;;  %v8898_v14 = vld [vmem:[%s10181_s27 + $0x628] ss:$28 sps:$4 sm:$0xff]  }
  0xed   : > { %2755 = vmatprep.subr.bf16.mxu1 %v8819_v11  ;;  %v8895_v11 = vld [vmem:[%s10181_s27 + $0xa18] ss:$28 sps:$4 sm:$0xff]  }
  0xef   : > { %2674 = vmatpush2.bf16.msra.mxu0 %v8820_v16  ;;  %v8906_v16 = vld [vmem:[%s10181_s27 + $0x5f4] ss:$28 sps:$4 sm:$0xff]  }
  0xf0   : > { %2756 = vmatpush2.bf16.msra.mxu1 %v8817_v15  ;;  %2675 = vmatprep.subr.bf16.mxu0 %v8828_v18  ;;  %v8903_v15 = vld [vmem:[%s10181_s27 + $0x9e4] ss:$28 sps:$4 sm:$0xff]   ;;  %v8904_v18 = vld [vmem:[%s10181_s27 + $0x5f0] ss:$28 sps:$4 sm:$0xff]  }
  0xf1   : > { %2757 = vmatprep.subr.bf16.mxu1 %v8825_v17  ;;  %v8901_v17 = vld [vmem:[%s10181_s27 + $0x9e0] ss:$28 sps:$4 sm:$0xff]  }
  0xf3   : > { %2676 = vmatpush2.bf16.msra.mxu0 %v8826_v20  ;;  %v8912_v20 = vld [vmem:[%s10181_s27 + $0x5bc] ss:$28 sps:$4 sm:$0xff]  }
  0xf4   : > { %2758 = vmatpush2.bf16.msra.mxu1 %v8823_v19  ;;  %2774 = vmatprep.subr.bf16.mxu0 %v8834_v26  ;;  %v8909_v19 = vld [vmem:[%s10181_s27 + $0x9ac] ss:$28 sps:$4 sm:$0xff]   ;;  %v8918_v26 = vld [vmem:[%s10181_s27 + $0x584] ss:$28 sps:$4 sm:$0xff]  }
  0xf5   : > { %2759 = vmatprep.subr.bf16.mxu1 %v8831_v25  ;;  %v8915_v25 = vld [vmem:[%s10181_s27 + $0x974] ss:$28 sps:$4 sm:$0xff]  }
  0xf6   : > { %2678 = vmatmul.mubr.bf16.vlgmr.msra.gmra.mxu0 %v10344_v27 }
  0xf7   : > { %2775 = vmatpush1.bf16.msra.mxu0 %v8832_v29  ;;  %2806 = vmatprep.mubr.bf16.mxu0 %v10246_v54  ;;  %v8916_v29 = vld [vmem:[%s10181_s27 + $0x580] ss:$28 sps:$4 sm:$0xff]  }
  0xf8   : > { %2760 = vmatpush2.bf16.msra.mxu1 %v8829_v28  ;;  %2776 = vmatprep.subr.bf16.mxu0 %v8840_v31  ;;  %v8913_v28 = vld [vmem:[%s10181_s27 + $0x970] ss:$28 sps:$4 sm:$0xff]  }
  0xf9   : > { %2761 = vmatprep.subr.bf16.mxu1 %v8837_v30  ;;  %v8921_v30 = vld [vmem:[%s10181_s27 + $0x93c] ss:$28 sps:$4 sm:$0xff]   ;;  %v8924_v31 = vld [vmem:[%s10181_s27 + $0x54c] ss:$28 sps:$4 sm:$0xff]  }
  0xfb   : > { %2777 = vmatpush1.bf16.msra.mxu0 %v8838_v33  ;;  %v8922_v33 = vld [vmem:[%s10181_s27 + $0x548] ss:$28 sps:$4 sm:$0xff]  }
  0xfc   : > { %2762 = vmatpush2.bf16.msra.mxu1 %v8835_v32  ;;  %2778 = vmatprep.subr.bf16.mxu0 %v8846_v35  ;;  %v8919_v32 = vld [vmem:[%s10181_s27 + $0x938] ss:$28 sps:$4 sm:$0xff]  }
  0xfd   : > { %2817 = vmatprep.subr.bf16.mxu1 %v8843_v34  ;;  %v8927_v34 = vld [vmem:[%s10181_s27 + $0x904] ss:$28 sps:$4 sm:$0xff]   ;;  %v8930_v35 = vld [vmem:[%s10181_s27 + $0x19c] ss:$28 sps:$4 sm:$0xff]  }
  0xff   : > { %2764 = vmatmul.mubr.bf16.vlgmr.msra.gmra.mxu1 %v10267_v12  ;;  %2779 = vmatpush1.bf16.msra.mxu0 %v8844_v37  ;;  %v8928_v37 = vld [vmem:[%s10181_s27 + $0x198] ss:$28 sps:$4 sm:$0xff]  }
 0x100   : > { %2818 = vmatpush1.bf16.msra.mxu1 %v8841_v36  ;;  %2780 = vmatprep.subr.bf16.mxu0 %v8852_v39  ;;  %v8925_v36 = vld [vmem:[%s10181_s27 + $0x900] ss:$28 sps:$4 sm:$0xff]  }
 0x101   : > { %2819 = vmatprep.subr.bf16.mxu1 %v8849_v38  ;;  %2849 = vmatprep.mubr.bf16.mxu1 %v10303_v44  ;;  %v8933_v38 = vld [vmem:[%s10181_s27 + $0x8cc] ss:$28 sps:$4 sm:$0xff]   ;;  %v8936_v39 = vld [vmem:[%s10181_s27 + $0x164] ss:$28 sps:$4 sm:$0xff]  }
 0x103   : > { %2781 = vmatpush1.bf16.msra.mxu0 %v8850_v41  ;;  %v8934_v41 = vld [vmem:[%s10181_s27 + $0x160] ss:$28 sps:$4 sm:$0xff]  }
 0x104   : > { %2820 = vmatpush1.bf16.msra.mxu1 %v8847_v40  ;;  %2782 = vmatprep.subr.bf16.mxu0 %v8858_v43  ;;  %v8931_v40 = vld [vmem:[%s10181_s27 + $0x8c8] ss:$28 sps:$4 sm:$0xff]  }
 0x105   : > { %2821 = vmatprep.subr.bf16.mxu1 %v8855_v42  ;;  %v8939_v42 = vld [vmem:[%s10181_s27 + $0x12c] ss:$28 sps:$4 sm:$0xff]  }
 0x106   : > { %v8942_v43 = vld [vmem:[%s10181_s27 + $0xa8c] ss:$28 sps:$4 sm:$0xff]  }
 0x107   : > { %2783 = vmatpush1.bf16.msra.mxu0 %v8856_v46  ;;  %v8940_v46 = vld [vmem:[%s10181_s27 + $0xa88] ss:$28 sps:$4 sm:$0xff]  }
 0x108   : > { %2822 = vmatpush1.bf16.msra.mxu1 %v8853_v45  ;;  %2784 = vmatprep.subr.bf16.mxu0 %v8864_v48  ;;  %v8937_v45 = vld [vmem:[%s10181_s27 + $0x128] ss:$28 sps:$4 sm:$0xff]   ;;  %v8948_v48 = vld [vmem:[%s10181_s27 + $0x51c] ss:$28 sps:$4 sm:$0xff]  }
 0x109   : > { %2823 = vmatprep.subr.bf16.mxu1 %v8861_v47  ;;  %v8945_v47 = vld [vmem:[%s10181_s27 + $0xf4] ss:$28 sps:$4 sm:$0xff]  }
 0x10b   : > { %2785 = vmatpush1.bf16.msra.mxu0 %v8862_v50  ;;  %v8951_v50 = vld [vmem:[%s10181_s27 + $0xbc] ss:$28 sps:$4 sm:$0xff]  }
 0x10c   : > { %2824 = vmatpush1.bf16.msra.mxu1 %v8859_v49  ;;  %2786 = vmatprep.subr.bf16.mxu0 %v8870_v52  ;;  %v8943_v49 = vld [vmem:[%s10181_s27 + $0xf0] ss:$28 sps:$4 sm:$0xff]   ;;  %v8949_v52 = vld [vmem:[%s10181_s27 + $0xb8] ss:$28 sps:$4 sm:$0xff]  }
 0x10d   : > { %2825 = vmatprep.subr.bf16.mxu1 %v8867_v51  ;;  %v8946_v51 = vld [vmem:[%s10181_s27 + $0x518] ss:$28 sps:$4 sm:$0xff]  }
 0x10f   : > { %2787 = vmatpush1.bf16.msra.mxu0 %v8868_v56  ;;  %v8957_v56 = vld [vmem:[%s10181_s27 + $0x84] ss:$28 sps:$4 sm:$0xff]  }
 0x110   : > { %2826 = vmatpush1.bf16.msra.mxu1 %v8865_v55  ;;  %2788 = vmatprep.subr.bf16.mxu0 %v8876_v58  ;;  %v8954_v55 = vld [vmem:[%s10181_s27 + $0x4e4] ss:$28 sps:$4 sm:$0xff]  }
 0x111   : > { %2827 = vmatprep.subr.bf16.mxu1 %v8873_v57  ;;  %v8952_v57 = vld [vmem:[%s10181_s27 + $0x4e0] ss:$28 sps:$4 sm:$0xff]  }
 0x112   : > { %v8955_v58 = vld [vmem:[%s10181_s27 + $0x80] ss:$28 sps:$4 sm:$0xff]  }
 0x113   : > { %2789 = vmatpush1.bf16.msra.mxu0 %v8874_v60  ;;  %v8963_v60 = vld [vmem:[%s10181_s27 + $0x4c] ss:$28 sps:$4 sm:$0xff]  }
 0x114   : > { %2828 = vmatpush1.bf16.msra.mxu1 %v8871_v59  ;;  %2790 = vmatprep.subr.bf16.mxu0 %v8882_v62  ;;  %v8960_v59 = vld [vmem:[%s10181_s27 + $0x4ac] ss:$28 sps:$4 sm:$0xff]  }
 0x115   : > { %2829 = vmatprep.subr.bf16.mxu1 %v8879_v61  ;;  %v8958_v61 = vld [vmem:[%s10181_s27 + $0x4a8] ss:$28 sps:$4 sm:$0xff]  }
 0x116   : > { %v8961_v62 = vld [vmem:[%s10181_s27 + $0x48] ss:$28 sps:$4 sm:$0xff]  }
 0x117   : > { %2791 = vmatpush2.bf16.msra.mxu0 %v8880_v0  ;;  %v8969_v0 = vld [vmem:[%s10181_s27 + $0x14] ss:$28 sps:$4 sm:$0xff]  }
 0x118   : > { %2830 = vmatpush1.bf16.msra.mxu1 %v8877_v63  ;;  %2792 = vmatprep.subr.bf16.mxu0 %v8888_v2  ;;  %v8966_v63 = vld [vmem:[%s10181_s27 + $0x474] ss:$28 sps:$4 sm:$0xff]  }
 0x119   : > { %2831 = vmatprep.subr.bf16.mxu1 %v8885_v1  ;;  %v8964_v1 = vld [vmem:[%s10181_s27 + $0x470] ss:$28 sps:$4 sm:$0xff]  }
 0x11a   : > { %v8967_v2 = vld [vmem:[%s10181_s27 + $0x10] ss:$28 sps:$4 sm:$0xff]  }
 0x11b   : > { %2793 = vmatpush2.bf16.msra.mxu0 %v8886_v4  ;;  %v8975_v4 = vld [vmem:[%s10181_s27 + $0x35c] ss:$28 sps:$4 sm:$0xff]  }
 0x11c   : > { %2832 = vmatpush1.bf16.msra.mxu1 %v8883_v3  ;;  %2794 = vmatprep.subr.bf16.mxu0 %v8894_v6  ;;  %v8972_v3 = vld [vmem:[%s10181_s27 + $0x43c] ss:$28 sps:$4 sm:$0xff]  }
 0x11d   : > { %2833 = vmatprep.subr.bf16.mxu1 %v8891_v5  ;;  %v8970_v5 = vld [vmem:[%s10181_s27 + $0x438] ss:$28 sps:$4 sm:$0xff]  }
 0x11e   : > { %v8973_v6 = vld [vmem:[%s10181_s27 + $0x358] ss:$28 sps:$4 sm:$0xff]  }
 0x11f   : > { %2795 = vmatpush2.bf16.msra.mxu0 %v8892_v8  ;;  %v8981_v8 = vld [vmem:[%s10181_s27 + $0x324] ss:$28 sps:$4 sm:$0xff]  }
 0x120   : > { %2834 = vmatpush2.bf16.msra.mxu1 %v8889_v7  ;;  %2796 = vmatprep.subr.bf16.mxu0 %v8900_v10  ;;  %v8978_v7 = vld [vmem:[%s10181_s27 + $0x404] ss:$28 sps:$4 sm:$0xff]  }
 0x121   : > { %2835 = vmatprep.subr.bf16.mxu1 %v8897_v9  ;;  %v8976_v9 = vld [vmem:[%s10181_s27 + $0x400] ss:$28 sps:$4 sm:$0xff]  }
 0x122   : > { %v8979_v10 = vld [vmem:[%s10181_s27 + $0x320] ss:$28 sps:$4 sm:$0xff]  }
 0x123   : > { %2797 = vmatpush2.bf16.msra.mxu0 %v8898_v14  ;;  %v8987_v14 = vld [vmem:[%s10181_s27 + $0x2ec] ss:$28 sps:$4 sm:$0xff]  }
 0x124   : > { %2836 = vmatpush2.bf16.msra.mxu1 %v8895_v11  ;;  %2798 = vmatprep.subr.bf16.mxu0 %v8906_v16  ;;  %v8984_v11 = vld [vmem:[%s10181_s27 + $0x3cc] ss:$28 sps:$4 sm:$0xff]  }
 0x125   : > { %2837 = vmatprep.subr.bf16.mxu1 %v8903_v15  ;;  %v8982_v15 = vld [vmem:[%s10181_s27 + $0x3c8] ss:$28 sps:$4 sm:$0xff]  }
 0x126   : > { %v8985_v16 = vld [vmem:[%s10181_s27 + $0x2e8] ss:$28 sps:$4 sm:$0xff]  }
 0x127   : > { %2799 = vmatpush2.bf16.msra.mxu0 %v8904_v18  ;;  %v8993_v18 = vld [vmem:[%s10181_s27 + $0x2b4] ss:$28 sps:$4 sm:$0xff]  }
 0x128   : > { %2838 = vmatpush2.bf16.msra.mxu1 %v8901_v17  ;;  %2800 = vmatprep.subr.bf16.mxu0 %v8912_v20  ;;  %v8990_v17 = vld [vmem:[%s10181_s27 + $0x394] ss:$28 sps:$4 sm:$0xff]  }
 0x129   : > { %2839 = vmatprep.subr.bf16.mxu1 %v8909_v19  ;;  %v8988_v19 = vld [vmem:[%s10181_s27 + $0x390] ss:$28 sps:$4 sm:$0xff]  }
 0x12a   : > { %v8991_v20 = vld [vmem:[%s10181_s27 + $0x2b0] ss:$28 sps:$4 sm:$0xff]  }
 0x12b   : > { %2801 = vmatpush2.bf16.msra.mxu0 %v8910_v24  ;;  %v8999_v24 = vld [vmem:[%s10181_s27 + $0x27c] ss:$28 sps:$4 sm:$0xff]  }
 0x12c   : > { %2840 = vmatpush2.bf16.msra.mxu1 %v8907_v22  ;;  %2802 = vmatprep.subr.bf16.mxu0 %v8918_v26  ;;  %v8996_v22 = vld [vmem:[%s10181_s27 + $0x6dc] ss:$28 sps:$4 sm:$0xff]  }
 0x12d   : > { %2841 = vmatprep.subr.bf16.mxu1 %v8915_v25  ;;  %v8994_v25 = vld [vmem:[%s10181_s27 + $0x6d8] ss:$28 sps:$4 sm:$0xff]  }
 0x12e   : > { %v8997_v26 = vld [vmem:[%s10181_s27 + $0x278] ss:$28 sps:$4 sm:$0xff]  }
 0x12f   : > { %2803 = vmatpush2.bf16.msra.mxu0 %v8916_v29  ;;  %v9005_v29 = vld [vmem:[%s10181_s27 + $0x244] ss:$28 sps:$4 sm:$0xff]  }
 0x130   : > { %2842 = vmatpush2.bf16.msra.mxu1 %v8913_v28  ;;  %2804 = vmatprep.subr.bf16.mxu0 %v8924_v31  ;;  %v9002_v28 = vld [vmem:[%s10181_s27 + $0x6a4] ss:$28 sps:$4 sm:$0xff]  }
 0x131   : > { %2843 = vmatprep.subr.bf16.mxu1 %v8921_v30  ;;  %v9000_v30 = vld [vmem:[%s10181_s27 + $0x6a0] ss:$28 sps:$4 sm:$0xff]  }
 0x132   : > { %v9003_v31 = vld [vmem:[%s10181_s27 + $0x240] ss:$28 sps:$4 sm:$0xff]  }
 0x133   : > { %2805 = vmatpush2.bf16.msra.mxu0 %v8922_v33  ;;  %v9011_v33 = vld [vmem:[%s10181_s27 + $0x20c] ss:$28 sps:$4 sm:$0xff]  }
 0x134   : > { %2844 = vmatpush2.bf16.msra.mxu1 %v8919_v32  ;;  %2903 = vmatprep.subr.bf16.mxu0 %v8930_v35  ;;  %v9008_v32 = vld [vmem:[%s10181_s27 + $0x66c] ss:$28 sps:$4 sm:$0xff]  }
 0x135   : > { %2845 = vmatprep.subr.bf16.mxu1 %v8927_v34  ;;  %v9006_v34 = vld [vmem:[%s10181_s27 + $0x668] ss:$28 sps:$4 sm:$0xff]  }
 0x136   : > { %2807 = vmatmul.mubr.bf16.vlgmr.msra.gmra.mxu0 %v10269_v13  ;;  %v9009_v35 = vld [vmem:[%s10181_s27 + $0x208] ss:$28 sps:$4 sm:$0xff]  }
 0x137   : > { %2904 = vmatpush1.bf16.msra.mxu0 %v8928_v37  ;;  %2935 = vmatprep.mubr.bf16.mxu0 %v10244_v53  ;;  %v9017_v37 = vld [vmem:[%s10181_s27 + $0x1d4] ss:$28 sps:$4 sm:$0xff]  }
 0x138   : > { %2846 = vmatpush2.bf16.msra.mxu1 %v8925_v36  ;;  %2905 = vmatprep.subr.bf16.mxu0 %v8936_v39  ;;  %v9014_v36 = vld [vmem:[%s10181_s27 + $0x634] ss:$28 sps:$4 sm:$0xff]  }
 0x139   : > { %2847 = vmatprep.subr.bf16.mxu1 %v8933_v38  ;;  %v9012_v38 = vld [vmem:[%s10181_s27 + $0x630] ss:$28 sps:$4 sm:$0xff]  }
 0x13a   : > { %v9015_v39 = vld [vmem:[%s10181_s27 + $0x1d0] ss:$28 sps:$4 sm:$0xff]  }
 0x13b   : > { %2906 = vmatpush1.bf16.msra.mxu0 %v8934_v41  ;;  %v9023_v41 = vld [vmem:[%s10181_s27 + $0x89c] ss:$28 sps:$4 sm:$0xff]  }
 0x13c   : > { %2848 = vmatpush2.bf16.msra.mxu1 %v8931_v40  ;;  %2907 = vmatprep.subr.bf16.mxu0 %v8939_v42  ;;  %v9020_v40 = vld [vmem:[%s10181_s27 + $0x5fc] ss:$28 sps:$4 sm:$0xff]  }
 0x13d   : > { %2874 = vmatprep.subr.bf16.mxu1 %v8942_v43  ;;  %v9018_v42 = vld [vmem:[%s10181_s27 + $0x5f8] ss:$28 sps:$4 sm:$0xff]  }
 0x13e   : > { %v9021_v43 = vld [vmem:[%s10181_s27 + $0x898] ss:$28 sps:$4 sm:$0xff]  }
 0x13f   : > { %2850 = vmatmul.mubr.bf16.vlgmr.msra.gmra.mxu1 %v10344_v27  ;;  %2908 = vmatpush1.bf16.msra.mxu0 %v8937_v45  ;;  %v9026_v45 = vld [vmem:[%s10181_s27 + $0x5c4] ss:$28 sps:$4 sm:$0xff]  }
 0x140   : > { %2875 = vmatpush1.bf16.msra.mxu1 %v8940_v46  ;;  %2909 = vmatprep.subr.bf16.mxu0 %v8945_v47  ;;  %v9029_v46 = vld [vmem:[%s10181_s27 + $0x864] ss:$28 sps:$4 sm:$0xff]  }
 0x141   : > { %2892 = vmatprep.mubr.bf16.mxu1 %v10006_v21  ;;  %2946 = vmatprep.subr.bf16.mxu1 %v8948_v48  ;;  %v9024_v47 = vld [vmem:[%s10181_s27 + $0x5c0] ss:$28 sps:$4 sm:$0xff]  }
 0x142   : > { %v9027_v48 = vld [vmem:[%s10181_s27 + $0x860] ss:$28 sps:$4 sm:$0xff]  }
 0x143   : > { %2910 = vmatpush1.bf16.msra.mxu0 %v8943_v49  ;;  %v9032_v49 = vld [vmem:[%s10181_s27 + $0x58c] ss:$28 sps:$4 sm:$0xff]  }
 0x144   : > { %2911 = vmatprep.subr.bf16.mxu0 %v8951_v50  ;;  %v9035_v50 = vld [vmem:[%s10181_s27 + $0x82c] ss:$28 sps:$4 sm:$0xff]  }
 0x147   : > { %7752 = vmatmul.mubr.msk.bf16.vlgmr.msra.gmra.mxu1 %vm2555_vm0, %v10280_v23  ;;  %2912 = vmatpush1.bf16.msra.mxu0 %v8949_v52  ;;  %v9033_v52 = vld [vmem:[%s10181_s27 + $0x828] ss:$28 sps:$4 sm:$0xff]  }
 0x148   : > { %2947 = vmatpush1.bf16.msra.mxu1 %v8946_v51  ;;  %2913 = vmatprep.subr.bf16.mxu0 %v8957_v56  ;;  %v9030_v51 = vld [vmem:[%s10181_s27 + $0x588] ss:$28 sps:$4 sm:$0xff]   ;;  %v9041_v56 = vld [vmem:[%s10181_s27 + $0x7f4] ss:$28 sps:$4 sm:$0xff]  }
 0x149   : > { %2948 = vmatprep.subr.bf16.mxu1 %v8954_v55  ;;  %2978 = vmatprep.mubr.bf16.mxu1 %v10246_v54  ;;  %v9038_v55 = vld [vmem:[%s10181_s27 + $0x554] ss:$28 sps:$4 sm:$0xff]  }
 0x14b   : > { %2914 = vmatpush1.bf16.msra.mxu0 %v8955_v58  ;;  %v9039_v58 = vld [vmem:[%s10181_s27 + $0x7f0] ss:$28 sps:$4 sm:$0xff]  }
 0x14c   : > { %2949 = vmatpush1.bf16.msra.mxu1 %v8952_v57  ;;  %2915 = vmatprep.subr.bf16.mxu0 %v8963_v60  ;;  %v9036_v57 = vld [vmem:[%s10181_s27 + $0x550] ss:$28 sps:$4 sm:$0xff]  }
 0x14d   : > { %2950 = vmatprep.subr.bf16.mxu1 %v8960_v59  ;;  %v9044_v59 = vld [vmem:[%s10181_s27 + $0x7bc] ss:$28 sps:$4 sm:$0xff]   ;;  %v9047_v60 = vld [vmem:[%s10181_s27 + $0xa94] ss:$28 sps:$4 sm:$0xff]  }
 0x14f   : > { %2916 = vmatpush1.bf16.msra.mxu0 %v8961_v62  ;;  %v9045_v62 = vld [vmem:[%s10181_s27 + $0xa90] ss:$28 sps:$4 sm:$0xff]  }
 0x150   : > { %2951 = vmatpush1.bf16.msra.mxu1 %v8958_v61  ;;  %2917 = vmatprep.subr.bf16.mxu0 %v8969_v0  ;;  %v9042_v61 = vld [vmem:[%s10181_s27 + $0x7b8] ss:$28 sps:$4 sm:$0xff]   ;;  %v9051_v0 = vld [vmem:[%s10181_s27 + $0x360] ss:$28 sps:$4 sm:$0xff]  }
 0x151   : > { %2952 = vmatprep.subr.bf16.mxu1 %v8966_v63  ;;  %v9050_v63 = vld [vmem:[%s10181_s27 + $0x784] ss:$28 sps:$4 sm:$0xff]  }
 0x153   : > { %2918 = vmatpush1.bf16.msra.mxu0 %v8967_v2  ;;  %v9055_v2 = vld [vmem:[%s10181_s27 + $0x74c] ss:$28 sps:$4 sm:$0xff]  }
 0x154   : > { %2953 = vmatpush1.bf16.msra.mxu1 %v8964_v1  ;;  %2919 = vmatprep.subr.bf16.mxu0 %v8975_v4  ;;  %v9048_v1 = vld [vmem:[%s10181_s27 + $0x780] ss:$28 sps:$4 sm:$0xff]   ;;  %v9053_v4 = vld [vmem:[%s10181_s27 + $0x748] ss:$28 sps:$4 sm:$0xff]  }
 0x155   : > { %2954 = vmatprep.subr.bf16.mxu1 %v8972_v3  ;;  %v9052_v3 = vld [vmem:[%s10181_s27 + $0x1a0] ss:$28 sps:$4 sm:$0xff]  }
 0x157   : > { %2920 = vmatpush2.bf16.msra.mxu0 %v8973_v6  ;;  %v9060_v6 = vld [vmem:[%s10181_s27 + $0x714] ss:$28 sps:$4 sm:$0xff]  }
 0x158   : > { %2955 = vmatpush1.bf16.msra.mxu1 %v8970_v5  ;;  %2921 = vmatprep.subr.bf16.mxu0 %v8981_v8  ;;  %v9056_v5 = vld [vmem:[%s10181_s27 + $0x328] ss:$28 sps:$4 sm:$0xff]   ;;  %v9061_v8 = vld [vmem:[%s10181_s27 + $0x2f0] ss:$28 sps:$4 sm:$0xff]  }
 0x159   : > { %2956 = vmatprep.subr.bf16.mxu1 %v8978_v7  ;;  %v9058_v7 = vld [vmem:[%s10181_s27 + $0x710] ss:$28 sps:$4 sm:$0xff]  }
 0x15b   : > { %2922 = vmatpush2.bf16.msra.mxu0 %v8979_v10  ;;  %v9062_v10 = vld [vmem:[%s10181_s27 + $0x130] ss:$28 sps:$4 sm:$0xff]  }
 0x15c   : > { %2957 = vmatpush1.bf16.msra.mxu1 %v8976_v9  ;;  %2923 = vmatprep.subr.bf16.mxu0 %v8987_v14  ;;  %v9065_v9 = vld [vmem:[%s10181_s27 + $0xa5c] ss:$28 sps:$4 sm:$0xff]  }
 0x15d   : > { %2958 = vmatprep.subr.bf16.mxu1 %v8984_v11  ;;  %v9063_v11 = vld [vmem:[%s10181_s27 + $0xa58] ss:$28 sps:$4 sm:$0xff]  }
 0x15e   : > { %v9066_v14 = vld [vmem:[%s10181_s27 + $0x2b8] ss:$28 sps:$4 sm:$0xff]  }
 0x15f   : > { %2924 = vmatpush2.bf16.msra.mxu0 %v8985_v16  ;;  %v9067_v16 = vld [vmem:[%s10181_s27 + $0xf8] ss:$28 sps:$4 sm:$0xff]  }
 0x160   : > { %2959 = vmatpush1.bf16.msra.mxu1 %v8982_v15  ;;  %2925 = vmatprep.subr.bf16.mxu0 %v8993_v18  ;;  %v9070_v15 = vld [vmem:[%s10181_s27 + $0xa24] ss:$28 sps:$4 sm:$0xff]   ;;  %v9075_v18 = vld [vmem:[%s10181_s27 + $0x9ec] ss:$28 sps:$4 sm:$0xff]  }
 0x161   : > { %2960 = vmatprep.subr.bf16.mxu1 %v8990_v17  ;;  %v9068_v17 = vld [vmem:[%s10181_s27 + $0xa20] ss:$28 sps:$4 sm:$0xff]  }
 0x163   : > { %2926 = vmatpush2.bf16.msra.mxu0 %v8991_v20  ;;  %v9073_v20 = vld [vmem:[%s10181_s27 + $0x9e8] ss:$28 sps:$4 sm:$0xff]  }
 0x164   : > { %2961 = vmatpush1.bf16.msra.mxu1 %v8988_v19  ;;  %2927 = vmatprep.subr.bf16.mxu0 %v8999_v24  ;;  %v9072_v19 = vld [vmem:[%s10181_s27 + $0xc0] ss:$28 sps:$4 sm:$0xff]   ;;  %v9080_v24 = vld [vmem:[%s10181_s27 + $0x9b4] ss:$28 sps:$4 sm:$0xff]  }
 0x165   : > { %2962 = vmatprep.subr.bf16.mxu1 %v8996_v22  ;;  %v9076_v22 = vld [vmem:[%s10181_s27 + $0x248] ss:$28 sps:$4 sm:$0xff]  }
 0x167   : > { %2928 = vmatpush2.bf16.msra.mxu0 %v8997_v26  ;;  %v9078_v26 = vld [vmem:[%s10181_s27 + $0x9b0] ss:$28 sps:$4 sm:$0xff]  }
 0x168   : > { %2963 = vmatpush2.bf16.msra.mxu1 %v8994_v25  ;;  %2929 = vmatprep.subr.bf16.mxu0 %v9005_v29  ;;  %v9077_v25 = vld [vmem:[%s10181_s27 + $0x88] ss:$28 sps:$4 sm:$0xff]   ;;  %v9085_v29 = vld [vmem:[%s10181_s27 + $0x97c] ss:$28 sps:$4 sm:$0xff]  }
 0x169   : > { %2964 = vmatprep.subr.bf16.mxu1 %v9002_v28  ;;  %v9081_v28 = vld [vmem:[%s10181_s27 + $0x210] ss:$28 sps:$4 sm:$0xff]  }
 0x16b   : > { %2930 = vmatpush2.bf16.msra.mxu0 %v9003_v31 }
 0x16c   : > { %2965 = vmatpush2.bf16.msra.mxu1 %v9000_v30  ;;  %2931 = vmatprep.subr.bf16.mxu0 %v9011_v33  ;;  %v756_v30 = vlaneseq  ;;  %v9083_v33 = vld [vmem:[%s10181_s27 + $0x978] ss:$28 sps:$4 sm:$0xff]  }
 0x16d   : > { %2966 = vmatprep.subr.bf16.mxu1 %v9008_v32  ;;  %v9082_v32 = vld [vmem:[%s10181_s27 + $0x50] ss:$28 sps:$4 sm:$0xff]  }
 0x16f   : > { %2932 = vmatpush2.bf16.msra.mxu0 %v9009_v35  ;;  %v9090_v35 = vld [vmem:[%s10181_s27 + $0x944] ss:$28 sps:$4 sm:$0xff]  }
 0x170   : > { %2967 = vmatpush2.bf16.msra.mxu1 %v9006_v34  ;;  %2933 = vmatprep.subr.bf16.mxu0 %v9017_v37  ;;  %v9086_v34 = vld [vmem:[%s10181_s27 + $0x1d8] ss:$28 sps:$4 sm:$0xff]  }
 0x171   : > { %2968 = vmatprep.subr.bf16.mxu1 %v9014_v36  ;;  %v10540_v36 = vshrl.u32 %v756_v30, 7 }
 0x173   : > { %2934 = vmatpush2.bf16.msra.mxu0 %v9015_v39  ;;  %v9088_v39 = vld [vmem:[%s10181_s27 + $0x940] ss:$28 sps:$4 sm:$0xff]  }
 0x174   : > { %2969 = vmatpush2.bf16.msra.mxu1 %v9012_v38  ;;  %2989 = vmatprep.subr.bf16.mxu0 %v9023_v41  ;;  %v9087_v38 = vld [vmem:[%s10181_s27 + $0x18] ss:$28 sps:$4 sm:$0xff]   ;;  %v9091_v41 = vld [vmem:[%s10181_s27 + $0x6e0] ss:$28 sps:$4 sm:$0xff]  }
 0x175   : > { %2970 = vmatprep.subr.bf16.mxu1 %v9020_v40 }
 0x176   : > { %2936 = vmatmul.mubr.bf16.vlgmr.msra.gmra.mxu0 %v10267_v12  ;;  %v2593_v40 = vpop.f32.mrf.mxu0 }
 0x177   : > { %2990 = vmatpush1.bf16.msra.mxu0 %v9021_v43  ;;  %3021 = vmatprep.mubr.bf16.mxu0 %v10303_v44  ;;  %v2636_v31 = vpop.f32.mrf.mxu1  ;;  %v758_v43 = vsub.s32 0, %v10540_v36 }
 0x178   : > { %2971 = vmatpush2.bf16.msra.mxu1 %v9018_v42  ;;  %2991 = vmatprep.subr.bf16.mxu0 %v9029_v46  ;;  %v9095_v42 = vld [vmem:[%s10181_s27 + $0x90c] ss:$28 sps:$4 sm:$0xff]  }
 0x179   : > { %2972 = vmatprep.subr.bf16.mxu1 %v9026_v45  ;;  %v2638_v37 = vpop.f32.mrf.mxu1  ;;  %v10549_v45 = vld [vmem:[%s299_s6] sm:$0xff] }
 0x17b   : > { %2992 = vmatpush1.bf16.msra.mxu0 %v9027_v48  ;;  %v2640_v46 = vpop.f32.mrf.mxu1  ;;  %v9092_v48 = vld [vmem:[%s10181_s27 + $0x520] ss:$28 sps:$4 sm:$0xff]  }
 0x17c   : > { %2973 = vmatpush2.bf16.msra.mxu1 %v9024_v47  ;;  %2993 = vmatprep.subr.bf16.mxu0 %v9035_v50  ;;  %v762_v47 = vsub.s32 1, %v10540_v36  ;;  %v2595_v50 = vpop.f32.mrf.mxu0 }
 0x17d   : > { %2974 = vmatprep.subr.bf16.mxu1 %v9032_v49  ;;  %v9093_v49 = vld [vmem:[%s10181_s27 + $0x908] ss:$28 sps:$4 sm:$0xff]  }
 0x17f   : > { %2994 = vmatpush1.bf16.msra.mxu0 %v9033_v52  ;;  %v9100_v52 = vld [vmem:[%s10181_s27 + $0x8d4] ss:$28 sps:$4 sm:$0xff]  }
 0x180   : > { %2975 = vmatpush2.bf16.msra.mxu1 %v9030_v51  ;;  %2995 = vmatprep.subr.bf16.mxu0 %v9041_v56  ;;  %v9096_v51 = vld [vmem:[%s10181_s27 + $0x6a8] ss:$28 sps:$4 sm:$0xff]   ;;  %v2642_v56 = vpop.f32.mrf.mxu1 }
 0x181   : > { %2976 = vmatprep.subr.bf16.mxu1 %v9038_v55  ;;  %v759_v55 = vrot.slane %v10549_v45, %v758_v43  ;;  %v9119_v43 = vld [vmem:[%s10181_s27 + $0x980] ss:$28 sps:$4 sm:$0xff]  }
 0x183   : > { %2996 = vmatpush1.bf16.msra.mxu0 %v9039_v58  ;;  %v9097_v58 = vld [vmem:[%s10181_s27 + $0x4e8] ss:$28 sps:$4 sm:$0xff]  }
 0x184   : > { %2977 = vmatpush2.bf16.msra.mxu1 %v9036_v57  ;;  %2997 = vmatprep.subr.bf16.mxu0 %v9044_v59  ;;  %v763_v57 = vrot.slane %v10549_v45, %v762_v47  ;;  %v9098_v59 = vld [vmem:[%s10181_s27 + $0x8d0] ss:$28 sps:$4 sm:$0xff]  }
 0x185   : > { %3046 = vmatprep.subr.bf16.mxu1 %v9047_v60  ;;  %v2597_v60 = vpop.f32.mrf.mxu0 }
 0x187   : > { %2979 = vmatmul.mubr.bf16.vlgmr.msra.gmra.mxu1 %v10269_v13  ;;  %2998 = vmatpush1.bf16.msra.mxu0 %v9042_v61  ;;  %v9101_v61 = vld [vmem:[%s10181_s27 + $0x670] ss:$28 sps:$4 sm:$0xff]  }
 0x188   : > { %3047 = vmatpush1.bf16.msra.mxu1 %v9045_v62  ;;  %2999 = vmatprep.subr.bf16.mxu0 %v9050_v63  ;;  %v9103_v62 = vld [vmem:[%s10181_s27 + $0xa60] ss:$28 sps:$4 sm:$0xff]   ;;  %v2594_v63 = vadd.f32 %v2593_v40, %v759_v55  ;;  %v9114_v40 = vld [vmem:[%s10181_s27 + $0x408] ss:$28 sps:$4 sm:$0xff]  }
 0x189   : > { %3064 = vmatprep.mubr.bf16.mxu1 %v10006_v21  ;;  %8256 = vmatprep.subr.bf16.mxu1 %v9051_v0  ;;  %v9057_v21 = vld [vmem:[%s10181_s27 + $0x168] ss:$28 sps:$4 sm:$0xff]   ;;  %v2722_v0 = vpop.f32.mrf.mxu1 }
 0x18b   : > { %3000 = vmatpush1.bf16.msra.mxu0 %v9048_v1  ;;  %v9102_v1 = vld [vmem:[%s10181_s27 + $0x4b0] ss:$28 sps:$4 sm:$0xff]  }
 0x18c   : > { %3001 = vmatprep.subr.bf16.mxu0 %v9055_v2  ;;  %v9105_v2 = vld [vmem:[%s10181_s27 + $0x8a0] ss:$28 sps:$4 sm:$0xff]  }
 0x18f   : > { %7753 = vmatmul.mubr.msk.bf16.vlgmr.msra.gmra.mxu1 %vm2555_vm0, %v10280_v23  ;;  %3002 = vmatpush1.bf16.msra.mxu0 %v9053_v4  ;;  %v9104_v4 = vld [vmem:[%s10181_s27 + $0x638] ss:$28 sps:$4 sm:$0xff]  }
 0x190   : > { %8257 = vmatpush3.bf16.msra.mxu1 %v9052_v3  ;;  %3003 = vmatprep.subr.bf16.mxu0 %v9060_v6  ;;  %v2599_v3 = vpop.f32.mrf.mxu0  ;;  %v2637_v6 = vadd.f32 %v2636_v31, %v2594_v63  ;;  %v9112_v31 = vld [vmem:[%s10181_s27 + $0x5c8] ss:$28 sps:$4 sm:$0xff]  }
 0x191   : > { %8258 = vmatprep.subr.bf16.mxu1 %v9056_v5  ;;  %3107 = vmatprep.mubr.bf16.mxu1 %v10244_v53  ;;  %v9071_v53 = vld [vmem:[%s10181_s27 + $0x280] ss:$28 sps:$4 sm:$0xff]   ;;  %v9107_v5 = vld [vmem:[%s10181_s27 + $0xa28] ss:$28 sps:$4 sm:$0xff]  }
 0x193   : > { %3004 = vmatpush1.bf16.msra.mxu0 %v9058_v7  ;;  %v2724_v7 = vpop.f32.mrf.mxu1 }
 0x194   : > { %8259 = vmatpush3.bf16.msra.mxu1 %v9057_v21  ;;  %3005 = vmatprep.subr.bf16.mxu0 %v9065_v9  ;;  %v2598_v21 = vadd.f32 %v2597_v60, %v759_v55  ;;  %v2600_v9 = vadd.f32 %v2599_v3, %v763_v57  ;;  %v9122_v55 = vld [vmem:[%s10181_s27 + $0x398] ss:$28 sps:$4 sm:$0xff]  }
 0x195   : > { %8260 = vmatprep.subr.bf16.mxu1 %v9061_v8  ;;  %v9127_v60 = vld [vmem:[%s10181_s27 + $0x8d8] ss:$28 sps:$4 sm:$0xff]  }
 0x197   : > { %3006 = vmatpush2.bf16.msra.mxu0 %v9063_v11  ;;  %v9106_v11 = vld [vmem:[%s10181_s27 + $0x478] ss:$28 sps:$4 sm:$0xff]  }
 0x198   : > { %8261 = vmatpush3.bf16.msra.mxu1 %v9062_v10  ;;  %3007 = vmatprep.subr.bf16.mxu0 %v9070_v15 }
 0x199   : > { %8262 = vmatprep.subr.bf16.mxu1 %v9066_v14  ;;  %v9109_v14 = vld [vmem:[%s10181_s27 + $0x868] ss:$28 sps:$4 sm:$0xff]  }
 0x19b   : > { %3008 = vmatpush2.bf16.msra.mxu0 %v9068_v17  ;;  %v9111_v17 = vld [vmem:[%s10181_s27 + $0x9f0] ss:$28 sps:$4 sm:$0xff]  }
 0x19c   : > { %8263 = vmatpush3.bf16.msra.mxu1 %v9067_v16  ;;  %3009 = vmatprep.subr.bf16.mxu0 %v9075_v18  ;;  %v9108_v16 = vld [vmem:[%s10181_s27 + $0x600] ss:$28 sps:$4 sm:$0xff]  }
 0x19d   : > { %8264 = vmatprep.subr.bf16.mxu1 %v9071_v53  ;;  %v2641_v53 = vadd.f32 %v2640_v46, %v2598_v21 }
 0x19f   : > { %3010 = vmatpush2.bf16.msra.mxu0 %v9073_v20  ;;  %v2726_v20 = vpop.f32.mrf.mxu1 }
 0x1a0   : > { %8265 = vmatpush3.bf16.msra.mxu1 %v9072_v19  ;;  %3011 = vmatprep.subr.bf16.mxu0 %v9080_v24  ;;  %v2643_v24 = vadd.f32 %v2642_v56, %v2600_v9  ;;  %v9124_v56 = vld [vmem:[%s10181_s27 + $0x788] ss:$28 sps:$4 sm:$0xff]  }
 0x1a1   : > { %8266 = vmatprep.subr.bf16.mxu1 %v9076_v22 }
 0x1a3   : > { %3012 = vmatpush2.bf16.msra.mxu0 %v9078_v26 }
 0x1a4   : > { %8267 = vmatpush3.bf16.msra.mxu1 %v9077_v25  ;;  %3013 = vmatprep.subr.bf16.mxu0 %v9085_v29  ;;  %v9113_v29 = vld [vmem:[%s10181_s27 + $0x830] ss:$28 sps:$4 sm:$0xff]  }
 0x1a5   : > { %8268 = vmatprep.subr.bf16.mxu1 %v9081_v28  ;;  %v9110_v28 = vld [vmem:[%s10181_s27 + $0x440] ss:$28 sps:$4 sm:$0xff]  }
 0x1a7   : > { %3014 = vmatpush2.bf16.msra.mxu0 %v9083_v33 }
 0x1a8   : > { %8269 = vmatpush3.bf16.msra.mxu1 %v9082_v32  ;;  %3015 = vmatprep.subr.bf16.mxu0 %v9090_v35  ;;  %v9115_v32 = vld [vmem:[%s10181_s27 + $0x9b8] ss:$28 sps:$4 sm:$0xff]  }
 0x1a9   : > { %8270 = vmatprep.subr.bf16.mxu1 %v9086_v34 }
 0x1ab   : > { %3016 = vmatpush2.bf16.msra.mxu0 %v9088_v39 }
 0x1ac   : > { %8271 = vmatpush3.bf16.msra.mxu1 %v9087_v38  ;;  %3017 = vmatprep.subr.bf16.mxu0 %v9095_v42  ;;  %v9116_v42 = vld [vmem:[%s10181_s27 + $0x590] ss:$28 sps:$4 sm:$0xff]  }
 0x1ad   : > { %8278 = vmatprep.subr.bf16.mxu1 %v9091_v41  ;;  %v9117_v41 = vld [vmem:[%s10181_s27 + $0x7f8] ss:$28 sps:$4 sm:$0xff]  }
 0x1af   : > { %3108 = vmatmul.mubr.bf16.vlgmr.msra.gmra.mxu1 %v10267_v12  ;;  %3018 = vmatpush2.bf16.msra.mxu0 %v9093_v49  ;;  %v2596_v12 = vadd.f32 %v2595_v50, %v763_v57  ;;  %v9118_v49 = vld [vmem:[%s10181_s27 + $0x3d0] ss:$28 sps:$4 sm:$0xff]   ;;  %v9121_v50 = vld [vmem:[%s10181_s27 + $0x7c0] ss:$28 sps:$4 sm:$0xff]  }
 0x1b0   : > { %8279 = vmatpush3.bf16.msra.mxu1 %v9092_v48  ;;  %3019 = vmatprep.subr.bf16.mxu0 %v9100_v52  ;;  %v9123_v52 = vld [vmem:[%s10181_s27 + $0x948] ss:$28 sps:$4 sm:$0xff]   ;;  %v9125_v57 = vld [vmem:[%s10181_s27 + $0x910] ss:$28 sps:$4 sm:$0xff]  }
 0x1b1   : > { %8280 = vmatprep.subr.bf16.mxu1 %v9096_v51  ;;  %3148 = vmatprep.mubr.bf16.mxu1 %v10246_v54  ;;  %v2639_v54 = vadd.f32 %v2638_v37, %v2596_v12  ;;  %v2728_v37 = vpop.f32.mrf.mxu1  ;;  %v9120_v51 = vld [vmem:[%s10181_s27 + $0x558] ss:$28 sps:$4 sm:$0xff]  }
 0x1b3   : > { %3020 = vmatpush2.bf16.msra.mxu0 %v9098_v59  ;;  %v9129_v59 = vld [vmem:[%s10181_s27 + $0xa98] ss:$28 sps:$4 sm:$0xff]  }
 0x1b4   : > { %8281 = vmatpush3.bf16.msra.mxu1 %v9097_v58  ;;  %8300 = vmatprep.subr.bf16.mxu0 %v9103_v62  ;;  %v9126_v58 = vld [vmem:[%s10181_s27 + $0x750] ss:$28 sps:$4 sm:$0xff]   ;;  %v9128_v62 = vld [vmem:[%s10181_s27 + $0x718] ss:$28 sps:$4 sm:$0xff]  }
 0x1b5   : > { %8282 = vmatprep.subr.bf16.mxu1 %v9101_v61  ;;  %v10007_v61 = vmov 0.0  }
 0x1b6   : > { %v2679_v8 = vpop.f32.mrf.mxu0  ;;  %3022 = vmatmul.mubr.bf16.vlgmr.msra.gmra.mxu0 %v10344_v27 }
 0x1b7   : > { %v2680_v10 = vadd.f32 %v2679_v8, %v2637_v6  ;;  %8301 = vmatpush3.bf16.msra.mxu0 %v9105_v2  ;;  %3189 = vmatprep.mubr.bf16.mxu0 %v10303_v44 }
 0x1b8   : > { %8283 = vmatpush3.bf16.msra.mxu1 %v9102_v1  ;;  %v2681_v15 = vpop.f32.mrf.mxu0  ;;  %8302 = vmatprep.subr.bf16.mxu0 %v9107_v5  ;;  %v766_v1 = vsub.s32 2, %v10540_v36 }
 0x1b9   : > { %8284 = vmatprep.subr.bf16.mxu1 %v9104_v4  ;;  %v2723_v18 = vadd.f32 %v2722_v0, %v2680_v10  ;;  %v2682_v19 = vadd.f32 %v2681_v15, %v2639_v54 }
 0x1ba   : > { %v2683_v22 = vpop.f32.mrf.mxu0  ;;  %v767_v4 = vrot.slane %v10549_v45, %v766_v1 }
 0x1bb   : > { %v2725_v25 = vadd.f32 %v2724_v7, %v2682_v19  ;;  %v2684_v26 = vadd.f32 %v2683_v22, %v2641_v53  ;;  %8303 = vmatpush3.bf16.msra.mxu0 %v9109_v14  ;;  %v3239_v33 = vmax.f32 %v2723_v18, 0.0 }
 0x1bc   : > { %8285 = vmatpush3.bf16.msra.mxu1 %v9106_v11  ;;  %v2685_v30 = vpop.f32.mrf.mxu0  ;;  %8304 = vmatprep.subr.bf16.mxu0 %v9111_v17 }
 0x1bd   : > { %8286 = vmatprep.subr.bf16.mxu1 %v9108_v16  ;;  %v3240_v44 = vmax.f32 %v2725_v25, 0.0  ;;  %v2727_v34 = vadd.f32 %v2726_v20, %v2684_v26  ;;  %v2686_v35 = vadd.f32 %v2685_v30, %v2643_v24 }
 0x1bf   : > { %v8240_v38 = vpack.c.bf16 %v3240_v44, %v3239_v33  ;;  %v2729_v39 = vadd.f32 %v2728_v37, %v2686_v35  ;;  %8305 = vmatpush3.bf16.msra.mxu0 %v9113_v29  ;;  %v3246_v46 = vmax.f32 %v2727_v34, 0.0  ;;  %v2765_v63 = vpop.f32.mrf.mxu1 }
 0x1c0   : > { %8287 = vmatpush3.bf16.msra.mxu1 %v9110_v28  ;;  %8306 = vmatprep.subr.bf16.mxu0 %v9115_v32 }
 0x1c1   : > { %8288 = vmatprep.subr.bf16.mxu1 %v9112_v31  ;;  %3297 = vst [vmem:[#allocation2] sm:$0xff] %v8240_v38  ;;  %v3247_v47 = vmax.f32 %v2729_v39, 0.0  ;;  %v2767_v0 = vpop.f32.mrf.mxu1 }
 0x1c3   : > { %v8244_v48 = vpack.c.bf16 %v3247_v47, %v3246_v46  ;;  %8307 = vmatpush3.bf16.msra.mxu0 %v9117_v41  ;;  %v2769_v12 = vpop.f32.mrf.mxu1  ;;  %v778_v47 = vsub.s32 5, %v10540_v36 }
 0x1c4   : > { %8289 = vmatpush3.bf16.msra.mxu1 %v9114_v40  ;;  %8308 = vmatprep.subr.bf16.mxu0 %v9119_v43  ;;  %v2770_v11 = vadd.f32 %v2769_v12, %v767_v4 }
 0x1c5   : > { %8290 = vmatprep.subr.bf16.mxu1 %v9116_v42  ;;  %3301 = vst [vmem:[#allocation2 + $0x1c] sm:$0xff] %v8244_v48  ;;  %v2771_v3 = vpop.f32.mrf.mxu1  ;;  %v774_v42 = vsub.s32 4, %v10540_v36 }
 0x1c7   : > { %8309 = vmatpush3.bf16.msra.mxu0 %v9121_v50  ;;  %v775_v48 = vrot.slane %v10549_v45, %v774_v42 }
 0x1c8   : > { %8291 = vmatpush3.bf16.msra.mxu1 %v9118_v49  ;;  %8310 = vmatprep.subr.bf16.mxu0 %v9123_v52 }
 0x1c9   : > { %8292 = vmatprep.subr.bf16.mxu1 %v9120_v51  ;;  %v779_v51 = vrot.slane %v10549_v45, %v778_v47 }
 0x1cb   : > { %8311 = vmatpush3.bf16.msra.mxu0 %v9124_v56 }
 0x1cc   : > { %8293 = vmatpush3.bf16.msra.mxu1 %v9122_v55  ;;  %8312 = vmatprep.subr.bf16.mxu0 %v9125_v57 }
 0x1cd   : > { %8474 = vmatprep.subr.bf16.mxu1 %v10007_v61 }
 0x1cf   : > { %3149 = vmatmul.mubr.bf16.vlgmr.msra.gmra.mxu1 %v10269_v13  ;;  %8313 = vmatpush3.bf16.msra.mxu0 %v9126_v58  ;;  %v770_v13 = vsub.s32 3, %v10540_v36 }
 0x1d0   : > { %8475 = vmatpush3.bf16.msra.mxu1 %v9129_v59  ;;  %8314 = vmatprep.subr.bf16.mxu0 %v9127_v60 }
 0x1d1   : > { %8476 = vmatprep.mubr.msk.bf16.mxu1 %vm10008_vm1, %v10007_v61  ;;  %v771_v21 = vrot.slane %v10549_v45, %v770_v13 }
 0x1d3   : > { %8315 = vmatpush3.bf16.msra.mxu0 %v9128_v62  ;;  %v2772_v53 = vadd.f32 %v2771_v3, %v771_v21 }
 0x1d6   : > { %3190 = vmatmul.mubr.bf16.vlgmr.msra.gmra.mxu0 %v10344_v27  ;;  %v2766_v27 = vadd.f32 %v2765_v63, %v767_v4 }
 0x1d7   : > { %8477 = vmatmul.mubr.msk.bf16.vlgmr.msra.gmra.mxu1 %vm2555_vm0, %v10280_v23  ;;  %v2768_v23 = vadd.f32 %v2767_v0, %v771_v21 }
 0x1f6   : > { %v2808_v2 = vpop.f32.mrf.mxu0 }
 0x1f7   : > { %v2809_v9 = vadd.f32 %v2808_v2, %v2766_v27 }
 0x1f8   : > { %v2810_v5 = vpop.f32.mrf.mxu0 }
 0x1f9   : > { %v2811_v14 = vadd.f32 %v2810_v5, %v2768_v23 }
 0x1fa   : > { %v2812_v8 = vpop.f32.mrf.mxu0 }
 0x1fb   : > { %v2813_v18 = vadd.f32 %v2812_v8, %v2770_v11 }
 0x1fc   : > { %v2814_v16 = vpop.f32.mrf.mxu0 }
 0x1fd   : > { %v2815_v24 = vadd.f32 %v2814_v16, %v2772_v53 }
 0x1ff   : > { %v2851_v6 = vpop.f32.mrf.mxu1 }
 0x200   : > { %v2852_v15 = vadd.f32 %v2851_v6, %v2809_v9 }
 0x201   : > { %v2853_v7 = vpop.f32.mrf.mxu1 }
 0x202   : > { %v2854_v19 = vadd.f32 %v2853_v7, %v2811_v14 }
 0x203   : > { %v2855_v54 = vpop.f32.mrf.mxu1 }
 0x204   : > { %v2856_v25 = vadd.f32 %v2855_v54, %v2813_v18 }
 0x205   : > { %v2857_v10 = vpop.f32.mrf.mxu1 }
 0x206   : > { %v2858_v29 = vadd.f32 %v2857_v10, %v2815_v24 }
 0x207   : > { %v2894_v17 = vpop.f32.mrf.mxu1 }
 0x208   : > { %v2895_v20 = vadd.f32 %v2894_v17, %v2852_v15 }
 0x209   : > { %v2896_v22 = vpop.f32.mrf.mxu1 }
 0x20a   : > { %v2897_v26 = vadd.f32 %v2896_v22, %v2854_v19  ;;  %v3241_v30 = vmax.f32 %v2895_v20, 0.0  ;;  %v782_v22 = vsub.s32 6, %v10540_v36 }
 0x20b   : > { %v2898_v28 = vpop.f32.mrf.mxu1 }
 0x20c   : > { %v3242_v31 = vmax.f32 %v2897_v26, 0.0  ;;  %v2899_v32 = vadd.f32 %v2898_v28, %v2856_v25  ;;  %v783_v26 = vrot.slane %v10549_v45, %v782_v22 }
 0x20d   : > { %v2900_v33 = vpop.f32.mrf.mxu1 }
 0x20e   : > { %v8241_v44 = vpack.c.bf16 %v3242_v31, %v3241_v30  ;;  %v2901_v34 = vadd.f32 %v2900_v33, %v2858_v29  ;;  %v3248_v35 = vmax.f32 %v2899_v32, 0.0 }
 0x210   : > { %3298 = vst [vmem:[#allocation2 + $0x8] sm:$0xff] %v8241_v44  ;;  %v3249_v37 = vmax.f32 %v2901_v34, 0.0 }
 0x212   : > { %v8245_v38 = vpack.c.bf16 %v3249_v37, %v3248_v35 }
 0x214   : > { %3302 = vst [vmem:[#allocation2 + $0x24] sm:$0xff] %v8245_v38 }
 0x236   : > { %v2937_v40 = vpop.f32.mrf.mxu0 }
 0x237   : > { %v2938_v55 = vadd.f32 %v2937_v40, %v775_v48 }
 0x238   : > { %v2939_v43 = vpop.f32.mrf.mxu0 }
 0x239   : > { %v2940_v57 = vadd.f32 %v2939_v43, %v779_v51 }
 0x23a   : > { %v2941_v49 = vpop.f32.mrf.mxu0 }
 0x23b   : > { %v2942_v61 = vadd.f32 %v2941_v49, %v775_v48 }
 0x23c   : > { %v2943_v56 = vpop.f32.mrf.mxu0 }
 0x23d   : > { %v2944_v12 = vadd.f32 %v2943_v56, %v779_v51 }
 0x247   : > { %v2980_v39 = vpop.f32.mrf.mxu1 }
 0x248   : > { %v2981_v58 = vadd.f32 %v2980_v39, %v2938_v55 }
 0x249   : > { %v2982_v41 = vpop.f32.mrf.mxu1 }
 0x24a   : > { %v2983_v62 = vadd.f32 %v2982_v41, %v2940_v57 }
 0x24b   : > { %v2984_v46 = vpop.f32.mrf.mxu1 }
 0x24c   : > { %v2985_v1 = vadd.f32 %v2984_v46, %v2942_v61 }
 0x24d   : > { %v2986_v50 = vpop.f32.mrf.mxu1 }
 0x24e   : > { %v2987_v5 = vadd.f32 %v2986_v50, %v2944_v12 }
 0x24f   : > { %v3066_v52 = vpop.f32.mrf.mxu1 }
 0x251   : > { %v3068_v59 = vpop.f32.mrf.mxu1 }
 0x253   : > { %v3070_v3 = vpop.f32.mrf.mxu1 }
 0x255   : > { %v3072_v9 = vpop.f32.mrf.mxu1 }
 0x26f   : > { %v8272_v14 = vpop.f32.mrf.mxu1 }
 0x271   : > { %v8273_v53 = vpop.f32.mrf.mxu1 }
 0x272   : > { %v8274_v28 = vadd.f32 %v8273_v53, %v8272_v14 }
 0x273   : > { %v8275_v18 = vpop.f32.mrf.mxu1 }
 0x274   : > { %v3110_v33 = vadd.f32 %v8274_v28, %v783_v26 }
 0x275   : > { %v8276_v19 = vpop.f32.mrf.mxu1 }
 0x276   : > { %v3023_v60 = vpop.f32.mrf.mxu0  ;;  %v8277_v44 = vadd.f32 %v8276_v19, %v8275_v18 }
 0x277   : > { %v3024_v63 = vadd.f32 %v3023_v60, %v2981_v58 }
 0x278   : > { %v3025_v0 = vpop.f32.mrf.mxu0  ;;  %v3113_v42 = vadd.f32 %v8277_v44, %v783_v26 }
 0x279   : > { %v3067_v2 = vadd.f32 %v3066_v52, %v3024_v63  ;;  %v3026_v13 = vadd.f32 %v3025_v0, %v2983_v62 }
 0x27a   : > { %v3027_v4 = vpop.f32.mrf.mxu0 }
 0x27b   : > { %v3069_v6 = vadd.f32 %v3068_v59, %v3026_v13  ;;  %v3028_v21 = vadd.f32 %v3027_v4, %v2985_v1  ;;  %v3243_v27 = vmax.f32 %v3067_v2, 0.0 }
 0x27c   : > { %v3029_v7 = vpop.f32.mrf.mxu0 }
 0x27d   : > { %v3244_v8 = vmax.f32 %v3069_v6, 0.0  ;;  %v3071_v54 = vadd.f32 %v3070_v3, %v3028_v21  ;;  %v3030_v23 = vadd.f32 %v3029_v7, %v2987_v5 }
 0x27f   : > { %v8242_v10 = vpack.c.bf16 %v3244_v8, %v3243_v27  ;;  %v3073_v11 = vadd.f32 %v3072_v9, %v3030_v23  ;;  %v3250_v15 = vmax.f32 %v3071_v54, 0.0 }
 0x281   : > { %3299 = vst [vmem:[#allocation2 + $0x10] sm:$0xff] %v8242_v10  ;;  %v3251_v16 = vmax.f32 %v3073_v11, 0.0 }
 0x283   : > { %v8246_v17 = vpack.c.bf16 %v3251_v16, %v3250_v15 }
 0x285   : > { %3303 = vst [vmem:[#allocation2 + $0x2c] sm:$0xff] %v8246_v17 }
 0x28f   : > { %v8294_v20 = vpop.f32.mrf.mxu1 }
 0x291   : > { %v8295_v24 = vpop.f32.mrf.mxu1 }
 0x292   : > { %v8296_v30 = vadd.f32 %v8295_v24, %v8294_v20 }
 0x293   : > { %v8297_v25 = vpop.f32.mrf.mxu1 }
 0x294   : > { %v3151_v37 = vadd.f32 %v8296_v30, %v3110_v33 }
 0x295   : > { %v8298_v29 = vpop.f32.mrf.mxu1 }
 0x296   : > { %v8316_v31 = vpop.f32.mrf.mxu0  ;;  %v8299_v38 = vadd.f32 %v8298_v29, %v8297_v25 }
 0x297   : > { %v3232_v32 = vpop.f32.mrf.mxu1 }
 0x298   : > { %v8317_v34 = vpop.f32.mrf.mxu0  ;;  %v3154_v47 = vadd.f32 %v8299_v38, %v3113_v42 }
 0x299   : > { %v8478_v35 = vpop.f32.mrf.mxu1  ;;  %v8318_v39 = vadd.f32 %v8317_v34, %v8316_v31 }
 0x29a   : > { %v8319_v40 = vpop.f32.mrf.mxu0 }
 0x29b   : > { %v3235_v41 = vpop.f32.mrf.mxu1  ;;  %v3192_v36 = vadd.f32 %v8318_v39, %v3151_v37 }
 0x29c   : > { %v8320_v43 = vpop.f32.mrf.mxu0 }
 0x29d   : > { %v8479_v46 = vpop.f32.mrf.mxu1  ;;  %v3233_v45 = vadd.f32 %v3232_v32, %v3192_v36  ;;  %v8321_v48 = vadd.f32 %v8320_v43, %v8319_v40 }
 0x29f   : > { %v3245_v49 = vmax.f32 %v3233_v45, 0.0  ;;  %v3195_v50 = vadd.f32 %v8321_v48, %v3154_v47 }
 0x2a1   : > { %v8243_v51 = vpack.c.bf16 %v3245_v49, %v3245_v49  ;;  %v3236_v52 = vadd.f32 %v3235_v41, %v3195_v50 }
 0x2a3   : > { %3300 = vst [vmem:[#allocation2 + $0x18] sm:$0xf] %v8243_v51  ;;  %v3252_v55 = vmax.f32 %v3236_v52, 0.0 }
 0x2a5   : > { %v8247_v56 = vpack.c.bf16 %v3252_v55, %v3252_v55 }
 0x2a7   : > { %3304 = vst [vmem:[#allocation2 + $0x34] sm:$0xf] %v8247_v56 }
 0x2a8 PF: > { %p7763_p4 = scmp.le.s32.totalorder %s9985_s21, 0 }
 0x2aa   : > { %3308 = sbr.rel (%p7763_p4) target bundleno = 1309 (0x51d), region = 68 }
 0x2af   : > { %v9130_v57 = vld [vmem:[%s10181_s27 + $0x18c] ss:$28 sps:$4 sm:$0xff]   ;;  %v9136_v61 = vld [vmem:[%s10181_s27 + $0x154] ss:$28 sps:$4 sm:$0xff]   ;;  %v9142_v12 = vld [vmem:[%s10181_s27 + $0x11c] ss:$28 sps:$4 sm:$0xff]  }
 0x2b0   : > { %v9132_v58 = vld [vmem:[%s10181_s27 + $0x50c] ss:$28 sps:$4 sm:$0xff]   ;;  %5854 = vmatprep.subr.bf16.mxu0 %v9130_v57  ;;  %v9138_v62 = vld [vmem:[%s10181_s27 + $0x4d4] ss:$28 sps:$4 sm:$0xff]   ;;  %v9144_v1 = vld [vmem:[%s10181_s27 + $0x49c] ss:$28 sps:$4 sm:$0xff]  }
 0x2b1   : > { %v9134_v59 = vld [vmem:[%s10181_s27 + $0x188] ss:$28 sps:$4 sm:$0xff]   ;;  %5897 = vmatprep.subr.bf16.mxu1 %v9132_v58  ;;  %v9140_v63 = vld [vmem:[%s10181_s27 + $0x150] ss:$28 sps:$4 sm:$0xff]   ;;  %v9146_v2 = vld [vmem:[%s10181_s27 + $0x118] ss:$28 sps:$4 sm:$0xff]  }
 0x2b2   : > { %v9135_v60 = vld [vmem:[%s10181_s27 + $0x508] ss:$28 sps:$4 sm:$0xff]   ;;  %5855 = vmatpush1.bf16.msra.mxu0 %v9134_v59  ;;  %v9141_v0 = vld [vmem:[%s10181_s27 + $0x4d0] ss:$28 sps:$4 sm:$0xff]   ;;  %v9147_v13 = vld [vmem:[%s10181_s27 + $0x498] ss:$28 sps:$4 sm:$0xff]  }
 0x2b3   : > { %5898 = vmatpush1.bf16.msra.mxu1 %v9135_v60  ;;  %5856 = vmatprep.subr.bf16.mxu0 %v9136_v61  ;;  %v9148_v3 = vld [vmem:[%s10181_s27 + $0xe4] ss:$28 sps:$4 sm:$0xff]   ;;  %v9154_v21 = vld [vmem:[%s10181_s27 + $0xac] ss:$28 sps:$4 sm:$0xff]   ;;  %v9160_v54 = vld [vmem:[%s10181_s27 + $0x74] ss:$28 sps:$4 sm:$0xff]  }
 0x2b4   : > { %5899 = vmatprep.subr.bf16.mxu1 %v9138_v62  ;;  %v9150_v4 = vld [vmem:[%s10181_s27 + $0x464] ss:$28 sps:$4 sm:$0xff]   ;;  %v9156_v7 = vld [vmem:[%s10181_s27 + $0x42c] ss:$28 sps:$4 sm:$0xff]   ;;  %v9162_v23 = vld [vmem:[%s10181_s27 + $0x3f4] ss:$28 sps:$4 sm:$0xff]  }
 0x2b5   : > { %v9152_v5 = vld [vmem:[%s10181_s27 + $0xe0] ss:$28 sps:$4 sm:$0xff]   ;;  %v9158_v27 = vld [vmem:[%s10181_s27 + $0xa8] ss:$28 sps:$4 sm:$0xff]   ;;  %v9164_v9 = vld [vmem:[%s10181_s27 + $0x70] ss:$28 sps:$4 sm:$0xff]  }
 0x2b6   : > { %5857 = vmatpush1.bf16.msra.mxu0 %v9140_v63  ;;  %v9153_v6 = vld [vmem:[%s10181_s27 + $0x460] ss:$28 sps:$4 sm:$0xff]   ;;  %v9159_v8 = vld [vmem:[%s10181_s27 + $0x428] ss:$28 sps:$4 sm:$0xff]   ;;  %v9165_v10 = vld [vmem:[%s10181_s27 + $0x3f0] ss:$28 sps:$4 sm:$0xff]  }
 0x2b7   : > { %5900 = vmatpush1.bf16.msra.mxu1 %v9141_v0  ;;  %5858 = vmatprep.subr.bf16.mxu0 %v9142_v12  ;;  %v9166_v11 = vld [vmem:[%s10181_s27 + $0x3c] ss:$28 sps:$4 sm:$0xff]   ;;  %v9172_v17 = vld [vmem:[%s10181_s27 + $0x4] ss:$28 sps:$4 sm:$0xff]   ;;  %v9178_v20 = vld [vmem:[%s10181_s27 + $0x34c] ss:$28 sps:$4 sm:$0xff]  }
 0x2b8   : > { %5901 = vmatprep.subr.bf16.mxu1 %v9144_v1  ;;  %v9168_v14 = vld [vmem:[%s10181_s27 + $0x3bc] ss:$28 sps:$4 sm:$0xff]   ;;  %v9174_v53 = vld [vmem:[%s10181_s27 + $0x384] ss:$28 sps:$4 sm:$0xff]   ;;  %v9180_v22 = vld [vmem:[%s10181_s27 + $0x6cc] ss:$28 sps:$4 sm:$0xff]  }
 0x2b9   : > { %v9170_v15 = vld [vmem:[%s10181_s27 + $0x38] ss:$28 sps:$4 sm:$0xff]   ;;  %v9176_v18 = vld [vmem:[%s10181_s27] ss:$28 sps:$4 sm:$0xff]   ;;  %v9182_v24 = vld [vmem:[%s10181_s27 + $0x348] ss:$28 sps:$4 sm:$0xff]  }
 0x2ba   : > { %5859 = vmatpush1.bf16.msra.mxu0 %v9146_v2  ;;  %v9171_v16 = vld [vmem:[%s10181_s27 + $0x3b8] ss:$28 sps:$4 sm:$0xff]   ;;  %v9177_v19 = vld [vmem:[%s10181_s27 + $0x380] ss:$28 sps:$4 sm:$0xff]   ;;  %v9183_v25 = vld [vmem:[%s10181_s27 + $0x6c8] ss:$28 sps:$4 sm:$0xff]  }
 0x2bb   : > { %5902 = vmatpush1.bf16.msra.mxu1 %v9147_v13  ;;  %5860 = vmatprep.subr.bf16.mxu0 %v9148_v3  ;;  %v9184_v26 = vld [vmem:[%s10181_s27 + $0x314] ss:$28 sps:$4 sm:$0xff]   ;;  %v9190_v31 = vld [vmem:[%s10181_s27 + $0x2dc] ss:$28 sps:$4 sm:$0xff]   ;;  %v9196_v34 = vld [vmem:[%s10181_s27 + $0x2a4] ss:$28 sps:$4 sm:$0xff]  }
 0x2bc   : > { %5903 = vmatprep.subr.bf16.mxu1 %v9150_v4  ;;  %v9186_v28 = vld [vmem:[%s10181_s27 + $0x694] ss:$28 sps:$4 sm:$0xff]   ;;  %v9192_v32 = vld [vmem:[%s10181_s27 + $0x65c] ss:$28 sps:$4 sm:$0xff]   ;;  %v9198_v35 = vld [vmem:[%s10181_s27 + $0x624] ss:$28 sps:$4 sm:$0xff]  }
 0x2bd   : > { %v9188_v29 = vld [vmem:[%s10181_s27 + $0x310] ss:$28 sps:$4 sm:$0xff]   ;;  %v9194_v33 = vld [vmem:[%s10181_s27 + $0x2d8] ss:$28 sps:$4 sm:$0xff]   ;;  %v9200_v37 = vld [vmem:[%s10181_s27 + $0x2a0] ss:$28 sps:$4 sm:$0xff]  }
 0x2be   : > { %5861 = vmatpush1.bf16.msra.mxu0 %v9152_v5  ;;  %v9189_v30 = vld [vmem:[%s10181_s27 + $0x690] ss:$28 sps:$4 sm:$0xff]   ;;  %v9195_v44 = vld [vmem:[%s10181_s27 + $0x658] ss:$28 sps:$4 sm:$0xff]   ;;  %v9201_v38 = vld [vmem:[%s10181_s27 + $0x620] ss:$28 sps:$4 sm:$0xff]  }
 0x2bf   : > { %5904 = vmatpush1.bf16.msra.mxu1 %v9153_v6  ;;  %5862 = vmatprep.subr.bf16.mxu0 %v9154_v21  ;;  %v9202_v39 = vld [vmem:[%s10181_s27 + $0x26c] ss:$28 sps:$4 sm:$0xff]   ;;  %v10657_v40 = vld [vmem:[#allocation2 + $0x4] ss:$28 sps:$4 sm:$0xff]   ;;  %v10659_v41 = vld [vmem:[#allocation2 + $0xc] ss:$28 sps:$4 sm:$0xff]  }
 0x2c0   : > { %5905 = vmatprep.subr.bf16.mxu1 %v9156_v7  ;;  %v9204_v42 = vld [vmem:[%s10181_s27 + $0x5ec] ss:$28 sps:$4 sm:$0xff]   ;;  %5886 = vmatprep.mubr.bf16.mxu0 %v10657_v40  ;;  %v9208_v46 = vld [vmem:[%s10181_s27 + $0x234] ss:$28 sps:$4 sm:$0xff]   ;;  %v9214_v49 = vld [vmem:[%s10181_s27 + $0x1fc] ss:$28 sps:$4 sm:$0xff]  }
 0x2c1   : > { %5929 = vmatprep.mubr.bf16.mxu1 %v10659_v41  ;;  %v9206_v36 = vld [vmem:[%s10181_s27 + $0x268] ss:$28 sps:$4 sm:$0xff]   ;;  %v9210_v47 = vld [vmem:[%s10181_s27 + $0x5b4] ss:$28 sps:$4 sm:$0xff]   ;;  %v9216_v50 = vld [vmem:[%s10181_s27 + $0x57c] ss:$28 sps:$4 sm:$0xff]  }
 0x2c2   : > { %5863 = vmatpush1.bf16.msra.mxu0 %v9158_v27  ;;  %v9207_v43 = vld [vmem:[%s10181_s27 + $0x5e8] ss:$28 sps:$4 sm:$0xff]   ;;  %v9212_v45 = vld [vmem:[%s10181_s27 + $0x230] ss:$28 sps:$4 sm:$0xff]   ;;  %v9218_v51 = vld [vmem:[%s10181_s27 + $0x1f8] ss:$28 sps:$4 sm:$0xff]  }
 0x2c3   : > { %5906 = vmatpush1.bf16.msra.mxu1 %v9159_v8  ;;  %5864 = vmatprep.subr.bf16.mxu0 %v9160_v54  ;;  %v9213_v48 = vld [vmem:[%s10181_s27 + $0x5b0] ss:$28 sps:$4 sm:$0xff]   ;;  %v9219_v52 = vld [vmem:[%s10181_s27 + $0x578] ss:$28 sps:$4 sm:$0xff]   ;;  %v9220_v55 = vld [vmem:[%s10181_s27 + $0x1c4] ss:$28 sps:$4 sm:$0xff]  }
 0x2c4   : > { %5907 = vmatprep.subr.bf16.mxu1 %v9162_v23  ;;  %v9222_v56 = vld [vmem:[%s10181_s27 + $0x544] ss:$28 sps:$4 sm:$0xff]   ;;  %v9233_v59 = vld [vmem:[%s10181_s27 + $0x88c] ss:$28 sps:$4 sm:$0xff]   ;;  %v10680_v61 = vld [vmem:[#allocation2] ss:$28 sps:$4 sm:$0xff]  }
 0x2c5   : > { %v9224_v57 = vld [vmem:[%s10181_s27 + $0x1c0] ss:$28 sps:$4 sm:$0xff]   ;;  %v9236_v60 = vld [vmem:[%s10181_s27 + $0xc0c] ss:$28 sps:$4 sm:$0xff]   ;;  %v9240_v12 = vld [vmem:[%s10181_s27 + $0x854] ss:$28 sps:$4 sm:$0xff]  }
 0x2c6   : > { %5865 = vmatpush1.bf16.msra.mxu0 %v9164_v9  ;;  %v9225_v58 = vld [vmem:[%s10181_s27 + $0x540] ss:$28 sps:$4 sm:$0xff]   ;;  %v9231_v62 = vld [vmem:[%s10181_s27 + $0x888] ss:$28 sps:$4 sm:$0xff]   ;;  %v9243_v1 = vld [vmem:[%s10181_s27 + $0xbd4] ss:$28 sps:$4 sm:$0xff]  }
 0x2c7   : > { %5908 = vmatpush1.bf16.msra.mxu1 %v9165_v10  ;;  %5866 = vmatprep.subr.bf16.mxu0 %v9166_v11  ;;  %v9234_v63 = vld [vmem:[%s10181_s27 + $0xc08] ss:$28 sps:$4 sm:$0xff]   ;;  %v10684_v0 = vld [vmem:[#allocation2 + $0x8] ss:$28 sps:$4 sm:$0xff]   ;;  %v9238_v2 = vld [vmem:[%s10181_s27 + $0x850] ss:$28 sps:$4 sm:$0xff]  }
 0x2c8   : > { %5909 = vmatprep.subr.bf16.mxu1 %v9168_v14  ;;  %v9241_v13 = vld [vmem:[%s10181_s27 + $0xbd0] ss:$28 sps:$4 sm:$0xff]   ;;  %v9246_v3 = vld [vmem:[%s10181_s27 + $0x81c] ss:$28 sps:$4 sm:$0xff]   ;;  %v10009_v5 = vmov 0   ;;  %vm10011_vm2 = vmmov 0  }
 0x2c9   : > { %v9249_v4 = vld [vmem:[%s10181_s27 + $0xb9c] ss:$28 sps:$4 sm:$0xff]   ;;  %v9252_v7 = vld [vmem:[%s10181_s27 + $0x7e4] ss:$28 sps:$4 sm:$0xff]   ;;  %v9258_v23 = vld [vmem:[%s10181_s27 + $0x7ac] ss:$28 sps:$4 sm:$0xff]  }
 0x2ca   : > { %5867 = vmatpush1.bf16.msra.mxu0 %v9170_v15  ;;  %v9244_v6 = vld [vmem:[%s10181_s27 + $0x818] ss:$28 sps:$4 sm:$0xff]   ;;  %v9255_v27 = vld [vmem:[%s10181_s27 + $0xb64] ss:$28 sps:$4 sm:$0xff]   ;;  %v9261_v9 = vld [vmem:[%s10181_s27 + $0xb2c] ss:$28 sps:$4 sm:$0xff]  }
 0x2cb   : > { %5910 = vmatpush1.bf16.msra.mxu1 %v9171_v16  ;;  %5868 = vmatprep.subr.bf16.mxu0 %v9172_v17  ;;  %v9247_v21 = vld [vmem:[%s10181_s27 + $0xb98] ss:$28 sps:$4 sm:$0xff]   ;;  %v9250_v8 = vld [vmem:[%s10181_s27 + $0x7e0] ss:$28 sps:$4 sm:$0xff]   ;;  %v9256_v10 = vld [vmem:[%s10181_s27 + $0x7a8] ss:$28 sps:$4 sm:$0xff]  }
 0x2cc   : > { %5911 = vmatprep.subr.bf16.mxu1 %v9174_v53  ;;  %v9253_v54 = vld [vmem:[%s10181_s27 + $0xb60] ss:$28 sps:$4 sm:$0xff]   ;;  %v9259_v11 = vld [vmem:[%s10181_s27 + $0xb28] ss:$28 sps:$4 sm:$0xff]   ;;  %v9264_v14 = vld [vmem:[%s10181_s27 + $0x774] ss:$28 sps:$4 sm:$0xff]  }
 0x2cd   : > { %v9267_v15 = vld [vmem:[%s10181_s27 + $0xaf4] ss:$28 sps:$4 sm:$0xff]   ;;  %v9270_v53 = vld [vmem:[%s10181_s27 + $0x73c] ss:$28 sps:$4 sm:$0xff]  }
 0x2ce   : > { %5869 = vmatpush1.bf16.msra.mxu0 %v9176_v18  ;;  %v9262_v16 = vld [vmem:[%s10181_s27 + $0x770] ss:$28 sps:$4 sm:$0xff]   ;;  %v9273_v18 = vld [vmem:[%s10181_s27 + $0xabc] ss:$28 sps:$4 sm:$0xff]  }
 0x2cf   : > { %5912 = vmatpush1.bf16.msra.mxu1 %v9177_v19  ;;  %5870 = vmatprep.subr.bf16.mxu0 %v9178_v20  ;;  %v9265_v17 = vld [vmem:[%s10181_s27 + $0xaf0] ss:$28 sps:$4 sm:$0xff]   ;;  %v9268_v19 = vld [vmem:[%s10181_s27 + $0x738] ss:$28 sps:$4 sm:$0xff]  }
 0x2d0   : > { %5913 = vmatprep.subr.bf16.mxu1 %v9180_v22  ;;  %v9271_v20 = vld [vmem:[%s10181_s27 + $0xab8] ss:$28 sps:$4 sm:$0xff]   ;;  %v9276_v22 = vld [vmem:[%s10181_s27 + $0x704] ss:$28 sps:$4 sm:$0xff]  }
 0x2d2   : > { %5871 = vmatpush2.bf16.msra.mxu0 %v9182_v24  ;;  %v9279_v24 = vld [vmem:[%s10181_s27 + $0xa84] ss:$28 sps:$4 sm:$0xff]  }
 0x2d3   : > { %5914 = vmatpush2.bf16.msra.mxu1 %v9183_v25  ;;  %5872 = vmatprep.subr.bf16.mxu0 %v9184_v26  ;;  %v10715_v25 = vld [vmem:[#allocation2 + $0x14] ss:$28 sps:$4 sm:$0xff]   ;;  %v9274_v26 = vld [vmem:[%s10181_s27 + $0x700] ss:$28 sps:$4 sm:$0xff]  }
 0x2d4   : > { %5915 = vmatprep.subr.bf16.mxu1 %v9186_v28  ;;  %v9277_v28 = vld [vmem:[%s10181_s27 + $0xa80] ss:$28 sps:$4 sm:$0xff]  }
 0x2d6   : > { %5873 = vmatpush2.bf16.msra.mxu0 %v9188_v29  ;;  %v9282_v29 = vld [vmem:[%s10181_s27 + $0xa4c] ss:$28 sps:$4 sm:$0xff]  }
 0x2d7   : > { %5916 = vmatpush2.bf16.msra.mxu1 %v9189_v30  ;;  %5874 = vmatprep.subr.bf16.mxu0 %v9190_v31  ;;  %v9285_v30 = vld [vmem:[%s10181_s27 + $0x194] ss:$28 sps:$4 sm:$0xff]   ;;  %v9280_v31 = vld [vmem:[%s10181_s27 + $0xa48] ss:$28 sps:$4 sm:$0xff]  }
 0x2d8   : > { %5917 = vmatprep.subr.bf16.mxu1 %v9192_v32  ;;  %v10723_v32 = vld [vmem:[#allocation2 + $0x18] ss:$28 sps:$4 sm:$0xff]  }
 0x2da   : > { %5875 = vmatpush2.bf16.msra.mxu0 %v9194_v33  ;;  %v9283_v33 = vld [vmem:[%s10181_s27 + $0x190] ss:$28 sps:$4 sm:$0xff]  }
 0x2db   : > { %5918 = vmatpush2.bf16.msra.mxu1 %v9195_v44  ;;  %5876 = vmatprep.subr.bf16.mxu0 %v9196_v34  ;;  %v9289_v44 = vld [vmem:[%s10181_s27 + $0xa14] ss:$28 sps:$4 sm:$0xff]   ;;  %v9292_v34 = vld [vmem:[%s10181_s27 + $0x15c] ss:$28 sps:$4 sm:$0xff]  }
 0x2dc   : > { %5919 = vmatprep.subr.bf16.mxu1 %v9198_v35  ;;  %v9287_v35 = vld [vmem:[%s10181_s27 + $0xa10] ss:$28 sps:$4 sm:$0xff]  }
 0x2de   : > { %5877 = vmatpush2.bf16.msra.mxu0 %v9200_v37  ;;  %v9290_v37 = vld [vmem:[%s10181_s27 + $0x158] ss:$28 sps:$4 sm:$0xff]  }
 0x2df   : > { %5920 = vmatpush2.bf16.msra.mxu1 %v9201_v38  ;;  %5878 = vmatprep.subr.bf16.mxu0 %v9202_v39  ;;  %v9295_v38 = vld [vmem:[%s10181_s27 + $0x9dc] ss:$28 sps:$4 sm:$0xff]   ;;  %v9298_v39 = vld [vmem:[%s10181_s27 + $0x124] ss:$28 sps:$4 sm:$0xff]  }
 0x2e0   : > { %5921 = vmatprep.subr.bf16.mxu1 %v9204_v42  ;;  %v9293_v42 = vld [vmem:[%s10181_s27 + $0x9d8] ss:$28 sps:$4 sm:$0xff]  }
 0x2e2   : > { %5879 = vmatpush2.bf16.msra.mxu0 %v9206_v36  ;;  %v9296_v36 = vld [vmem:[%s10181_s27 + $0x120] ss:$28 sps:$4 sm:$0xff]  }
 0x2e3   : > { %5922 = vmatpush2.bf16.msra.mxu1 %v9207_v43  ;;  %5880 = vmatprep.subr.bf16.mxu0 %v9208_v46  ;;  %v9301_v43 = vld [vmem:[%s10181_s27 + $0x9a4] ss:$28 sps:$4 sm:$0xff]   ;;  %v9304_v46 = vld [vmem:[%s10181_s27 + $0xec] ss:$28 sps:$4 sm:$0xff]  }
 0x2e4   : > { %5923 = vmatprep.subr.bf16.mxu1 %v9210_v47  ;;  %v9299_v47 = vld [vmem:[%s10181_s27 + $0x9a0] ss:$28 sps:$4 sm:$0xff]  }
 0x2e6   : > { %5881 = vmatpush2.bf16.msra.mxu0 %v9212_v45  ;;  %v9302_v45 = vld [vmem:[%s10181_s27 + $0xe8] ss:$28 sps:$4 sm:$0xff]  }
 0x2e7   : > { %5924 = vmatpush2.bf16.msra.mxu1 %v9213_v48  ;;  %5882 = vmatprep.subr.bf16.mxu0 %v9214_v49  ;;  %v9310_v48 = vld [vmem:[%s10181_s27 + $0xb4] ss:$28 sps:$4 sm:$0xff]   ;;  %v9305_v49 = vld [vmem:[%s10181_s27 + $0x968] ss:$28 sps:$4 sm:$0xff]  }
 0x2e8   : > { %5925 = vmatprep.subr.bf16.mxu1 %v9216_v50  ;;  %v9308_v50 = vld [vmem:[%s10181_s27 + $0xb0] ss:$28 sps:$4 sm:$0xff]  }
 0x2ea   : > { %5883 = vmatpush2.bf16.msra.mxu0 %v9218_v51  ;;  %v9313_v51 = vld [vmem:[%s10181_s27 + $0x934] ss:$28 sps:$4 sm:$0xff]  }
 0x2eb   : > { %5926 = vmatpush2.bf16.msra.mxu1 %v9219_v52  ;;  %5884 = vmatprep.subr.bf16.mxu0 %v9220_v55  ;;  %v9316_v52 = vld [vmem:[%s10181_s27 + $0x7c] ss:$28 sps:$4 sm:$0xff]   ;;  %v9311_v55 = vld [vmem:[%s10181_s27 + $0x930] ss:$28 sps:$4 sm:$0xff]  }
 0x2ec   : > { %5927 = vmatprep.subr.bf16.mxu1 %v9222_v56  ;;  %v9314_v56 = vld [vmem:[%s10181_s27 + $0x78] ss:$28 sps:$4 sm:$0xff]  }
 0x2ee   : > { %5885 = vmatpush2.bf16.msra.mxu0 %v9224_v57  ;;  %v9319_v57 = vld [vmem:[%s10181_s27 + $0x8fc] ss:$28 sps:$4 sm:$0xff]  }
 0x2ef   : > { %5928 = vmatpush2.bf16.msra.mxu1 %v9225_v58  ;;  %5940 = vmatprep.subr.bf16.mxu0 %v9233_v59  ;;  %v9322_v58 = vld [vmem:[%s10181_s27 + $0x44] ss:$28 sps:$4 sm:$0xff]   ;;  %v9317_v59 = vld [vmem:[%s10181_s27 + $0x8f8] ss:$28 sps:$4 sm:$0xff]  }
 0x2f0   : > { %5983 = vmatprep.subr.bf16.mxu1 %v9236_v60  ;;  %v9320_v60 = vld [vmem:[%s10181_s27 + $0x40] ss:$28 sps:$4 sm:$0xff]  }
 0x2f1   : > { %5887 = vmatmul.mubr.bf16.vlgmr.msra.gmra.mxu0 %v10680_v61 }
 0x2f2   : > { %5930 = vmatmul.mubr.bf16.vlgmr.msra.gmra.mxu1 %v10684_v0  ;;  %5941 = vmatpush1.bf16.msra.mxu0 %v9231_v62  ;;  %v9325_v62 = vld [vmem:[%s10181_s27 + $0x8c4] ss:$28 sps:$4 sm:$0xff]  }
 0x2f3   : > { %5984 = vmatpush1.bf16.msra.mxu1 %v9234_v63  ;;  %5942 = vmatprep.subr.bf16.mxu0 %v9240_v12  ;;  %v9328_v63 = vld [vmem:[%s10181_s27 + $0xc] ss:$28 sps:$4 sm:$0xff]   ;;  %v9323_v12 = vld [vmem:[%s10181_s27 + $0x8c0] ss:$28 sps:$4 sm:$0xff]  }
 0x2f4   : > { %5985 = vmatprep.subr.bf16.mxu1 %v9243_v1  ;;  %6015 = vmatprep.mubr.bf16.mxu1 %v10009_v5  ;;  %v9326_v1 = vld [vmem:[%s10181_s27 + $0x8] ss:$28 sps:$4 sm:$0xff]  }
 0x2f5   : > { %5972 = vmatprep.mubr.bf16.mxu0 %v10715_v25 }
 0x2f6   : > { %5943 = vmatpush1.bf16.msra.mxu0 %v9238_v2  ;;  %v9334_v2 = vld [vmem:[%s10181_s27 + $0x354] ss:$28 sps:$4 sm:$0xff]  }
 0x2f7   : > { %5986 = vmatpush1.bf16.msra.mxu1 %v9241_v13  ;;  %5944 = vmatprep.subr.bf16.mxu0 %v9246_v3  ;;  %v9337_v13 = vld [vmem:[%s10181_s27 + $0x514] ss:$28 sps:$4 sm:$0xff]   ;;  %v10758_v3 = vld [vmem:[#allocation2 + $0x10] ss:$28 sps:$4 sm:$0xff]  }
 0x2f8   : > { %5987 = vmatprep.subr.bf16.mxu1 %v9249_v4  ;;  %v9332_v4 = vld [vmem:[%s10181_s27 + $0x350] ss:$28 sps:$4 sm:$0xff]  }
 0x2fa   : > { %5945 = vmatpush1.bf16.msra.mxu0 %v9244_v6  ;;  %v9335_v6 = vld [vmem:[%s10181_s27 + $0x510] ss:$28 sps:$4 sm:$0xff]  }
 0x2fb   : > { %5988 = vmatpush1.bf16.msra.mxu1 %v9247_v21  ;;  %5946 = vmatprep.subr.bf16.mxu0 %v9252_v7  ;;  %v9340_v21 = vld [vmem:[%s10181_s27 + $0x31c] ss:$28 sps:$4 sm:$0xff]  }
 0x2fc   : > { %5989 = vmatprep.subr.bf16.mxu1 %v9255_v27  ;;  %v9343_v7 = vld [vmem:[%s10181_s27 + $0x4dc] ss:$28 sps:$4 sm:$0xff]  }
 0x2fd   : > { %v9338_v27 = vld [vmem:[%s10181_s27 + $0x318] ss:$28 sps:$4 sm:$0xff]  }
 0x2fe   : > { %5947 = vmatpush1.bf16.msra.mxu0 %v9250_v8  ;;  %v9341_v8 = vld [vmem:[%s10181_s27 + $0x4d8] ss:$28 sps:$4 sm:$0xff]  }
 0x2ff   : > { %5990 = vmatpush1.bf16.msra.mxu1 %v9253_v54  ;;  %5948 = vmatprep.subr.bf16.mxu0 %v9258_v23  ;;  %v9346_v54 = vld [vmem:[%s10181_s27 + $0x2e4] ss:$28 sps:$4 sm:$0xff]  }
 0x300   : > { %5991 = vmatprep.subr.bf16.mxu1 %v9261_v9  ;;  %v9349_v23 = vld [vmem:[%s10181_s27 + $0x4a4] ss:$28 sps:$4 sm:$0xff]  }
 0x301   : > { %v9344_v9 = vld [vmem:[%s10181_s27 + $0x2e0] ss:$28 sps:$4 sm:$0xff]  }
 0x302   : > { %5949 = vmatpush1.bf16.msra.mxu0 %v9256_v10  ;;  %v9347_v10 = vld [vmem:[%s10181_s27 + $0x4a0] ss:$28 sps:$4 sm:$0xff]  }
 0x303   : > { %5992 = vmatpush1.bf16.msra.mxu1 %v9259_v11  ;;  %5950 = vmatprep.subr.bf16.mxu0 %v9264_v14  ;;  %v9352_v11 = vld [vmem:[%s10181_s27 + $0x2ac] ss:$28 sps:$4 sm:$0xff]  }
 0x304   : > { %5993 = vmatprep.subr.bf16.mxu1 %v9267_v15  ;;  %v9355_v14 = vld [vmem:[%s10181_s27 + $0x46c] ss:$28 sps:$4 sm:$0xff]  }
 0x305   : > { %v9350_v15 = vld [vmem:[%s10181_s27 + $0x2a8] ss:$28 sps:$4 sm:$0xff]  }
 0x306   : > { %5951 = vmatpush1.bf16.msra.mxu0 %v9262_v16  ;;  %v9353_v16 = vld [vmem:[%s10181_s27 + $0x468] ss:$28 sps:$4 sm:$0xff]  }
 0x307   : > { %5994 = vmatpush1.bf16.msra.mxu1 %v9265_v17  ;;  %5952 = vmatprep.subr.bf16.mxu0 %v9270_v53  ;;  %v9361_v17 = vld [vmem:[%s10181_s27 + $0x434] ss:$28 sps:$4 sm:$0xff]  }
 0x308   : > { %5995 = vmatprep.subr.bf16.mxu1 %v9273_v18  ;;  %v9356_v53 = vld [vmem:[%s10181_s27 + $0x270] ss:$28 sps:$4 sm:$0xff]  }
 0x309   : > { %v9359_v18 = vld [vmem:[%s10181_s27 + $0x430] ss:$28 sps:$4 sm:$0xff]  }
 0x30a   : > { %5953 = vmatpush1.bf16.msra.mxu0 %v9268_v19  ;;  %v9364_v19 = vld [vmem:[%s10181_s27 + $0x23c] ss:$28 sps:$4 sm:$0xff]  }
 0x30b   : > { %5996 = vmatpush1.bf16.msra.mxu1 %v9271_v20  ;;  %5954 = vmatprep.subr.bf16.mxu0 %v9276_v22  ;;  %v9367_v20 = vld [vmem:[%s10181_s27 + $0x3fc] ss:$28 sps:$4 sm:$0xff]  }
 0x30c   : > { %5997 = vmatprep.subr.bf16.mxu1 %v9279_v24  ;;  %v9362_v22 = vld [vmem:[%s10181_s27 + $0x238] ss:$28 sps:$4 sm:$0xff]  }
 0x30d   : > { %v9365_v24 = vld [vmem:[%s10181_s27 + $0x3f8] ss:$28 sps:$4 sm:$0xff]  }
 0x30e   : > { %5955 = vmatpush1.bf16.msra.mxu0 %v9274_v26  ;;  %v9370_v26 = vld [vmem:[%s10181_s27 + $0x204] ss:$28 sps:$4 sm:$0xff]  }
 0x30f   : > { %5998 = vmatpush1.bf16.msra.mxu1 %v9277_v28  ;;  %5956 = vmatprep.subr.bf16.mxu0 %v9282_v29  ;;  %v9373_v28 = vld [vmem:[%s10181_s27 + $0x3c4] ss:$28 sps:$4 sm:$0xff]  }
 0x310   : > { %6026 = vmatprep.subr.bf16.mxu1 %v9285_v30  ;;  %v9368_v29 = vld [vmem:[%s10181_s27 + $0x200] ss:$28 sps:$4 sm:$0xff]  }
 0x311   : > { %v9371_v30 = vld [vmem:[%s10181_s27 + $0x3c0] ss:$28 sps:$4 sm:$0xff]  }
 0x312   : > { %6016 = vmatmul.mubr.bf16.vlgmr.msra.gmra.mxu1 %v10723_v32  ;;  %5957 = vmatpush2.bf16.msra.mxu0 %v9280_v31  ;;  %v9376_v31 = vld [vmem:[%s10181_s27 + $0x1cc] ss:$28 sps:$4 sm:$0xff]  }
 0x313   : > { %6027 = vmatpush1.bf16.msra.mxu1 %v9283_v33  ;;  %5958 = vmatprep.subr.bf16.mxu0 %v9289_v44  ;;  %v9379_v33 = vld [vmem:[%s10181_s27 + $0x38c] ss:$28 sps:$4 sm:$0xff]  }
 0x314   : > { %6028 = vmatprep.subr.bf16.mxu1 %v9292_v34  ;;  %6058 = vmatprep.mubr.bf16.mxu1 %v10657_v40  ;;  %v9307_v40 = vld [vmem:[%s10181_s27 + $0x96c] ss:$28 sps:$4 sm:$0xff]  }
 0x315   : > { %v9374_v44 = vld [vmem:[%s10181_s27 + $0x1c8] ss:$28 sps:$4 sm:$0xff]  }
 0x316   : > { %5959 = vmatpush2.bf16.msra.mxu0 %v9287_v35  ;;  %v9377_v34 = vld [vmem:[%s10181_s27 + $0x388] ss:$28 sps:$4 sm:$0xff]   ;;  %v9382_v35 = vld [vmem:[%s10181_s27 + $0x6d4] ss:$28 sps:$4 sm:$0xff]  }
 0x317   : > { %6029 = vmatpush1.bf16.msra.mxu1 %v9290_v37  ;;  %5960 = vmatprep.subr.bf16.mxu0 %v9295_v38  ;;  %v9385_v37 = vld [vmem:[%s10181_s27 + $0x894] ss:$28 sps:$4 sm:$0xff]  }
 0x318   : > { %6030 = vmatprep.subr.bf16.mxu1 %v9298_v39  ;;  %v9380_v38 = vld [vmem:[%s10181_s27 + $0x6d0] ss:$28 sps:$4 sm:$0xff]  }
 0x319   : > { %v9383_v39 = vld [vmem:[%s10181_s27 + $0x890] ss:$28 sps:$4 sm:$0xff]  }
 0x31a   : > { %5961 = vmatpush2.bf16.msra.mxu0 %v9293_v42  ;;  %v9388_v42 = vld [vmem:[%s10181_s27 + $0x69c] ss:$28 sps:$4 sm:$0xff]  }
 0x31b   : > { %6031 = vmatpush1.bf16.msra.mxu1 %v9296_v36  ;;  %5962 = vmatprep.subr.bf16.mxu0 %v9301_v43  ;;  %v9391_v36 = vld [vmem:[%s10181_s27 + $0x85c] ss:$28 sps:$4 sm:$0xff]  }
 0x31c   : > { %6032 = vmatprep.subr.bf16.mxu1 %v9304_v46  ;;  %v9386_v43 = vld [vmem:[%s10181_s27 + $0x698] ss:$28 sps:$4 sm:$0xff]  }
 0x31d   : > { %v9389_v46 = vld [vmem:[%s10181_s27 + $0x858] ss:$28 sps:$4 sm:$0xff]  }
 0x31e   : > { %5963 = vmatpush2.bf16.msra.mxu0 %v9299_v47  ;;  %v9394_v47 = vld [vmem:[%s10181_s27 + $0x664] ss:$28 sps:$4 sm:$0xff]  }
 0x31f   : > { %6033 = vmatpush1.bf16.msra.mxu1 %v9302_v45  ;;  %5964 = vmatprep.subr.bf16.mxu0 %v9307_v40  ;;  %v9397_v45 = vld [vmem:[%s10181_s27 + $0x824] ss:$28 sps:$4 sm:$0xff]  }
 0x320   : > { %6034 = vmatprep.subr.bf16.mxu1 %v9310_v48  ;;  %v9392_v40 = vld [vmem:[%s10181_s27 + $0x660] ss:$28 sps:$4 sm:$0xff]   ;;  %v9400_v48 = vld [vmem:[%s10181_s27 + $0x62c] ss:$28 sps:$4 sm:$0xff]  }
 0x322   : > { %5965 = vmatpush2.bf16.msra.mxu0 %v9305_v49  ;;  %v9403_v49 = vld [vmem:[%s10181_s27 + $0x7ec] ss:$28 sps:$4 sm:$0xff]  }
 0x323   : > { %6035 = vmatpush1.bf16.msra.mxu1 %v9308_v50  ;;  %5966 = vmatprep.subr.bf16.mxu0 %v9313_v51  ;;  %v9398_v50 = vld [vmem:[%s10181_s27 + $0x628] ss:$28 sps:$4 sm:$0xff]  }
 0x324   : > { %6036 = vmatprep.subr.bf16.mxu1 %v9316_v52  ;;  %v9401_v51 = vld [vmem:[%s10181_s27 + $0x7e8] ss:$28 sps:$4 sm:$0xff]   ;;  %v9409_v52 = vld [vmem:[%s10181_s27 + $0x7b4] ss:$28 sps:$4 sm:$0xff]  }
 0x326   : > { %5967 = vmatpush2.bf16.msra.mxu0 %v9311_v55  ;;  %v9404_v55 = vld [vmem:[%s10181_s27 + $0x5f0] ss:$28 sps:$4 sm:$0xff]  }
 0x327   : > { %6037 = vmatpush1.bf16.msra.mxu1 %v9314_v56  ;;  %5968 = vmatprep.subr.bf16.mxu0 %v9319_v57  ;;  %v9407_v56 = vld [vmem:[%s10181_s27 + $0x7b0] ss:$28 sps:$4 sm:$0xff]   ;;  %v9412_v57 = vld [vmem:[%s10181_s27 + $0x5bc] ss:$28 sps:$4 sm:$0xff]  }
 0x328   : > { %6038 = vmatprep.subr.bf16.mxu1 %v9322_v58  ;;  %v9415_v58 = vld [vmem:[%s10181_s27 + $0x77c] ss:$28 sps:$4 sm:$0xff]  }
 0x32a   : > { %5969 = vmatpush2.bf16.msra.mxu0 %v9317_v59  ;;  %v9410_v59 = vld [vmem:[%s10181_s27 + $0x5b8] ss:$28 sps:$4 sm:$0xff]  }
 0x32b   : > { %6039 = vmatpush1.bf16.msra.mxu1 %v9320_v60  ;;  %5970 = vmatprep.subr.bf16.mxu0 %v9325_v62  ;;  %v9413_v60 = vld [vmem:[%s10181_s27 + $0x778] ss:$28 sps:$4 sm:$0xff]   ;;  %v9418_v62 = vld [vmem:[%s10181_s27 + $0x584] ss:$28 sps:$4 sm:$0xff]  }
 0x32c   : > { %6040 = vmatprep.subr.bf16.mxu1 %v9328_v63  ;;  %v9421_v63 = vld [vmem:[%s10181_s27 + $0x744] ss:$28 sps:$4 sm:$0xff]  }
 0x32e   : > { %5971 = vmatpush2.bf16.msra.mxu0 %v9323_v12  ;;  %v9416_v12 = vld [vmem:[%s10181_s27 + $0x580] ss:$28 sps:$4 sm:$0xff]  }
 0x32f   : > { %6041 = vmatpush1.bf16.msra.mxu1 %v9326_v1  ;;  %6069 = vmatprep.subr.bf16.mxu0 %v9337_v13  ;;  %v9419_v1 = vld [vmem:[%s10181_s27 + $0x740] ss:$28 sps:$4 sm:$0xff]   ;;  %v9427_v13 = vld [vmem:[%s10181_s27 + $0x70c] ss:$28 sps:$4 sm:$0xff]  }
 0x330   : > { %6042 = vmatprep.subr.bf16.mxu1 %v9334_v2  ;;  %v9424_v2 = vld [vmem:[%s10181_s27 + $0x54c] ss:$28 sps:$4 sm:$0xff]  }
 0x331   : > { %5973 = vmatmul.mubr.bf16.vlgmr.msra.gmra.mxu0 %v10758_v3 }
 0x332   : > { %6070 = vmatpush1.bf16.msra.mxu0 %v9335_v6  ;;  %6101 = vmatprep.mubr.bf16.mxu0 %v10659_v41  ;;  %v9358_v41 = vld [vmem:[%s10181_s27 + $0x274] ss:$28 sps:$4 sm:$0xff]   ;;  %v9425_v6 = vld [vmem:[%s10181_s27 + $0x708] ss:$28 sps:$4 sm:$0xff]  }
 0x333   : > { %6043 = vmatpush2.bf16.msra.mxu1 %v9332_v4  ;;  %6071 = vmatprep.subr.bf16.mxu0 %v9343_v7  ;;  %v9422_v4 = vld [vmem:[%s10181_s27 + $0x548] ss:$28 sps:$4 sm:$0xff]   ;;  %v9433_v7 = vld [vmem:[%s10181_s27 + $0xc14] ss:$28 sps:$4 sm:$0xff]  }
 0x334   : > { %6044 = vmatprep.subr.bf16.mxu1 %v9340_v21  ;;  %v9430_v21 = vld [vmem:[%s10181_s27 + $0xa54] ss:$28 sps:$4 sm:$0xff]  }
 0x336   : > { %6072 = vmatpush1.bf16.msra.mxu0 %v9341_v8  ;;  %v9431_v8 = vld [vmem:[%s10181_s27 + $0xc10] ss:$28 sps:$4 sm:$0xff]  }
 0x337   : > { %6045 = vmatpush2.bf16.msra.mxu1 %v9338_v27  ;;  %6073 = vmatprep.subr.bf16.mxu0 %v9349_v23  ;;  %v9428_v27 = vld [vmem:[%s10181_s27 + $0xa50] ss:$28 sps:$4 sm:$0xff]   ;;  %v9439_v23 = vld [vmem:[%s10181_s27 + $0xbdc] ss:$28 sps:$4 sm:$0xff]  }
 0x338   : > { %6046 = vmatprep.subr.bf16.mxu1 %v9346_v54  ;;  %v9436_v54 = vld [vmem:[%s10181_s27 + $0xa1c] ss:$28 sps:$4 sm:$0xff]  }
 0x33a   : > { %6074 = vmatpush1.bf16.msra.mxu0 %v9347_v10  ;;  %v9437_v10 = vld [vmem:[%s10181_s27 + $0xbd8] ss:$28 sps:$4 sm:$0xff]  }
 0x33b   : > { %6047 = vmatpush2.bf16.msra.mxu1 %v9344_v9  ;;  %6075 = vmatprep.subr.bf16.mxu0 %v9355_v14  ;;  %v9434_v9 = vld [vmem:[%s10181_s27 + $0xa18] ss:$28 sps:$4 sm:$0xff]   ;;  %v9445_v14 = vld [vmem:[%s10181_s27 + $0xba4] ss:$28 sps:$4 sm:$0xff]  }
 0x33c   : > { %6048 = vmatprep.subr.bf16.mxu1 %v9352_v11  ;;  %v9442_v11 = vld [vmem:[%s10181_s27 + $0x9e4] ss:$28 sps:$4 sm:$0xff]  }
 0x33e   : > { %6076 = vmatpush1.bf16.msra.mxu0 %v9353_v16  ;;  %v9443_v16 = vld [vmem:[%s10181_s27 + $0xba0] ss:$28 sps:$4 sm:$0xff]  }
 0x33f   : > { %6049 = vmatpush2.bf16.msra.mxu1 %v9350_v15  ;;  %6077 = vmatprep.subr.bf16.mxu0 %v9361_v17  ;;  %v9440_v15 = vld [vmem:[%s10181_s27 + $0x9e0] ss:$28 sps:$4 sm:$0xff]   ;;  %v9446_v17 = vld [vmem:[%s10181_s27 + $0x9a8] ss:$28 sps:$4 sm:$0xff]  }
 0x340   : > { %6050 = vmatprep.subr.bf16.mxu1 %v9358_v41  ;;  %v9451_v41 = vld [vmem:[%s10181_s27 + $0xb6c] ss:$28 sps:$4 sm:$0xff]  }
 0x342   : > { %6078 = vmatpush1.bf16.msra.mxu0 %v9359_v18  ;;  %v9454_v18 = vld [vmem:[%s10181_s27 + $0x974] ss:$28 sps:$4 sm:$0xff]  }
 0x343   : > { %6051 = vmatpush2.bf16.msra.mxu1 %v9356_v53  ;;  %6079 = vmatprep.subr.bf16.mxu0 %v9367_v20  ;;  %v9449_v53 = vld [vmem:[%s10181_s27 + $0xb68] ss:$28 sps:$4 sm:$0xff]   ;;  %v9452_v20 = vld [vmem:[%s10181_s27 + $0x970] ss:$28 sps:$4 sm:$0xff]  }
 0x344   : > { %6052 = vmatprep.subr.bf16.mxu1 %v9364_v19  ;;  %v9457_v19 = vld [vmem:[%s10181_s27 + $0xb34] ss:$28 sps:$4 sm:$0xff]  }
 0x346   : > { %6080 = vmatpush1.bf16.msra.mxu0 %v9365_v24  ;;  %v9460_v24 = vld [vmem:[%s10181_s27 + $0x93c] ss:$28 sps:$4 sm:$0xff]  }
 0x347   : > { %6053 = vmatpush2.bf16.msra.mxu1 %v9362_v22  ;;  %6081 = vmatprep.subr.bf16.mxu0 %v9373_v28  ;;  %v9455_v22 = vld [vmem:[%s10181_s27 + $0xb30] ss:$28 sps:$4 sm:$0xff]   ;;  %v9458_v28 = vld [vmem:[%s10181_s27 + $0x938] ss:$28 sps:$4 sm:$0xff]  }
 0x348   : > { %6054 = vmatprep.subr.bf16.mxu1 %v9370_v26  ;;  %v9463_v26 = vld [vmem:[%s10181_s27 + $0xafc] ss:$28 sps:$4 sm:$0xff]  }
 0x34a   : > { %6082 = vmatpush1.bf16.msra.mxu0 %v9371_v30  ;;  %v9466_v30 = vld [vmem:[%s10181_s27 + $0x904] ss:$28 sps:$4 sm:$0xff]  }
 0x34b   : > { %6055 = vmatpush2.bf16.msra.mxu1 %v9368_v29  ;;  %6083 = vmatprep.subr.bf16.mxu0 %v9379_v33  ;;  %v9461_v29 = vld [vmem:[%s10181_s27 + $0xaf8] ss:$28 sps:$4 sm:$0xff]   ;;  %v9464_v33 = vld [vmem:[%s10181_s27 + $0x900] ss:$28 sps:$4 sm:$0xff]  }
 0x34c   : > { %6056 = vmatprep.subr.bf16.mxu1 %v9376_v31  ;;  %v9469_v31 = vld [vmem:[%s10181_s27 + $0xac4] ss:$28 sps:$4 sm:$0xff]  }
 0x34e   : > { %6084 = vmatpush1.bf16.msra.mxu0 %v9377_v34  ;;  %v9472_v34 = vld [vmem:[%s10181_s27 + $0x8cc] ss:$28 sps:$4 sm:$0xff]  }
 0x34f   : > { %6057 = vmatpush2.bf16.msra.mxu1 %v9374_v44  ;;  %6085 = vmatprep.subr.bf16.mxu0 %v9382_v35  ;;  %v9467_v44 = vld [vmem:[%s10181_s27 + $0xac0] ss:$28 sps:$4 sm:$0xff]   ;;  %v9475_v35 = vld [vmem:[%s10181_s27 + $0xa8c] ss:$28 sps:$4 sm:$0xff]  }
 0x350   : > { %6112 = vmatprep.subr.bf16.mxu1 %v9385_v37  ;;  %v9470_v37 = vld [vmem:[%s10181_s27 + $0x8c8] ss:$28 sps:$4 sm:$0xff]  }
 0x352   : > { %6059 = vmatmul.mubr.bf16.vlgmr.msra.gmra.mxu1 %v10680_v61  ;;  %6086 = vmatpush2.bf16.msra.mxu0 %v9380_v38  ;;  %v9395_v61 = vld [vmem:[%s10181_s27 + $0x820] ss:$28 sps:$4 sm:$0xff]   ;;  %v9473_v38 = vld [vmem:[%s10181_s27 + $0xa88] ss:$28 sps:$4 sm:$0xff]  }
 0x353   : > { %6113 = vmatpush1.bf16.msra.mxu1 %v9383_v39  ;;  %6087 = vmatprep.subr.bf16.mxu0 %v9388_v42  ;;  %v9478_v39 = vld [vmem:[%s10181_s27 + $0x19c] ss:$28 sps:$4 sm:$0xff]  }
 0x354   : > { %6114 = vmatprep.subr.bf16.mxu1 %v9391_v36  ;;  %6144 = vmatprep.mubr.bf16.mxu1 %v10715_v25  ;;  %v9406_v25 = vld [vmem:[%s10181_s27 + $0x5f4] ss:$28 sps:$4 sm:$0xff]   ;;  %v9481_v42 = vld [vmem:[%s10181_s27 + $0x51c] ss:$28 sps:$4 sm:$0xff]  }
 0x355   : > { %v9476_v36 = vld [vmem:[%s10181_s27 + $0x198] ss:$28 sps:$4 sm:$0xff]  }
 0x356   : > { %6088 = vmatpush2.bf16.msra.mxu0 %v9386_v43  ;;  %v9479_v43 = vld [vmem:[%s10181_s27 + $0x518] ss:$28 sps:$4 sm:$0xff]  }
 0x357   : > { %6115 = vmatpush1.bf16.msra.mxu1 %v9389_v46  ;;  %6089 = vmatprep.subr.bf16.mxu0 %v9394_v47  ;;  %v9484_v46 = vld [vmem:[%s10181_s27 + $0x164] ss:$28 sps:$4 sm:$0xff]  }
 0x358   : > { %6116 = vmatprep.subr.bf16.mxu1 %v9397_v45  ;;  %v9487_v47 = vld [vmem:[%s10181_s27 + $0x4e4] ss:$28 sps:$4 sm:$0xff]  }
 0x359   : > { %v9482_v45 = vld [vmem:[%s10181_s27 + $0x160] ss:$28 sps:$4 sm:$0xff]  }
 0x35a   : > { %6090 = vmatpush2.bf16.msra.mxu0 %v9392_v40  ;;  %v9485_v40 = vld [vmem:[%s10181_s27 + $0x4e0] ss:$28 sps:$4 sm:$0xff]  }
 0x35b   : > { %6117 = vmatpush1.bf16.msra.mxu1 %v9395_v61  ;;  %6091 = vmatprep.subr.bf16.mxu0 %v9400_v48  ;;  %v9490_v61 = vld [vmem:[%s10181_s27 + $0x12c] ss:$28 sps:$4 sm:$0xff]  }
 0x35c   : > { %6118 = vmatprep.subr.bf16.mxu1 %v9403_v49  ;;  %v9493_v48 = vld [vmem:[%s10181_s27 + $0x4ac] ss:$28 sps:$4 sm:$0xff]  }
 0x35d   : > { %v9488_v49 = vld [vmem:[%s10181_s27 + $0x128] ss:$28 sps:$4 sm:$0xff]  }
 0x35e   : > { %6092 = vmatpush2.bf16.msra.mxu0 %v9398_v50  ;;  %v10873_v50 = vld [vmem:[#allocation2 + $0x4] ss:$28 sps:$4 sm:$0xff]  }
 0x35f   : > { %6119 = vmatpush1.bf16.msra.mxu1 %v9401_v51  ;;  %6093 = vmatprep.subr.bf16.mxu0 %v9406_v25  ;;  %v9496_v51 = vld [vmem:[%s10181_s27 + $0xf4] ss:$28 sps:$4 sm:$0xff]  }
 0x360   : > { %6120 = vmatprep.subr.bf16.mxu1 %v9409_v52  ;;  %v9499_v25 = vld [vmem:[%s10181_s27 + $0x474] ss:$28 sps:$4 sm:$0xff]  }
 0x361   : > { %v9494_v52 = vld [vmem:[%s10181_s27 + $0xf0] ss:$28 sps:$4 sm:$0xff]  }
 0x362   : > { %6094 = vmatpush2.bf16.msra.mxu0 %v9404_v55  ;;  %v9497_v55 = vld [vmem:[%s10181_s27 + $0x470] ss:$28 sps:$4 sm:$0xff]  }
 0x363   : > { %6121 = vmatpush1.bf16.msra.mxu1 %v9407_v56  ;;  %6095 = vmatprep.subr.bf16.mxu0 %v9412_v57  ;;  %v9502_v56 = vld [vmem:[%s10181_s27 + $0xbc] ss:$28 sps:$4 sm:$0xff]  }
 0x364   : > { %6122 = vmatprep.subr.bf16.mxu1 %v9415_v58  ;;  %v9505_v57 = vld [vmem:[%s10181_s27 + $0x43c] ss:$28 sps:$4 sm:$0xff]  }
 0x365   : > { %v9500_v58 = vld [vmem:[%s10181_s27 + $0xb8] ss:$28 sps:$4 sm:$0xff]  }
 0x366   : > { %6096 = vmatpush2.bf16.msra.mxu0 %v9410_v59  ;;  %v9503_v59 = vld [vmem:[%s10181_s27 + $0x438] ss:$28 sps:$4 sm:$0xff]  }
 0x367   : > { %6123 = vmatpush1.bf16.msra.mxu1 %v9413_v60  ;;  %6097 = vmatprep.subr.bf16.mxu0 %v9418_v62  ;;  %v9508_v60 = vld [vmem:[%s10181_s27 + $0x84] ss:$28 sps:$4 sm:$0xff]  }
 0x368   : > { %6124 = vmatprep.subr.bf16.mxu1 %v9421_v63  ;;  %v9511_v62 = vld [vmem:[%s10181_s27 + $0x404] ss:$28 sps:$4 sm:$0xff]  }
 0x369   : > { %v9506_v63 = vld [vmem:[%s10181_s27 + $0x80] ss:$28 sps:$4 sm:$0xff]  }
 0x36a   : > { %6098 = vmatpush2.bf16.msra.mxu0 %v9416_v12  ;;  %v9509_v12 = vld [vmem:[%s10181_s27 + $0x400] ss:$28 sps:$4 sm:$0xff]  }
 0x36b   : > { %6125 = vmatpush1.bf16.msra.mxu1 %v9419_v1  ;;  %6099 = vmatprep.subr.bf16.mxu0 %v9424_v2  ;;  %v9514_v1 = vld [vmem:[%s10181_s27 + $0x4c] ss:$28 sps:$4 sm:$0xff]  }
 0x36c   : > { %6126 = vmatprep.subr.bf16.mxu1 %v9427_v13  ;;  %v9517_v2 = vld [vmem:[%s10181_s27 + $0x3cc] ss:$28 sps:$4 sm:$0xff]  }
 0x36d   : > { %v9512_v13 = vld [vmem:[%s10181_s27 + $0x48] ss:$28 sps:$4 sm:$0xff]  }
 0x36e   : > { %6100 = vmatpush2.bf16.msra.mxu0 %v9422_v4  ;;  %v9515_v4 = vld [vmem:[%s10181_s27 + $0x3c8] ss:$28 sps:$4 sm:$0xff]  }
 0x36f   : > { %6127 = vmatpush1.bf16.msra.mxu1 %v9425_v6  ;;  %6155 = vmatprep.subr.bf16.mxu0 %v9433_v7  ;;  %v9520_v6 = vld [vmem:[%s10181_s27 + $0x14] ss:$28 sps:$4 sm:$0xff]  }
 0x370   : > { %6128 = vmatprep.subr.bf16.mxu1 %v9430_v21  ;;  %v9523_v21 = vld [vmem:[%s10181_s27 + $0x394] ss:$28 sps:$4 sm:$0xff]  }
 0x371   : > { %6102 = vmatmul.mubr.bf16.vlgmr.msra.gmra.mxu0 %v10684_v0  ;;  %v9448_v0 = vld [vmem:[%s10181_s27 + $0x9ac] ss:$28 sps:$4 sm:$0xff]  }
 0x372   : > { %6156 = vmatpush1.bf16.msra.mxu0 %v9431_v8  ;;  %6187 = vmatprep.mubr.bf16.mxu0 %v10009_v5  ;;  %v9518_v7 = vld [vmem:[%s10181_s27 + $0x10] ss:$28 sps:$4 sm:$0xff]   ;;  %v9526_v8 = vld [vmem:[%s10181_s27 + $0x35c] ss:$28 sps:$4 sm:$0xff]  }
 0x373   : > { %6129 = vmatpush2.bf16.msra.mxu1 %v9428_v27  ;;  %6157 = vmatprep.subr.bf16.mxu0 %v9439_v23  ;;  %v9521_v27 = vld [vmem:[%s10181_s27 + $0x390] ss:$28 sps:$4 sm:$0xff]   ;;  %v9524_v23 = vld [vmem:[%s10181_s27 + $0x358] ss:$28 sps:$4 sm:$0xff]  }
 0x374   : > { %6130 = vmatprep.subr.bf16.mxu1 %v9436_v54  ;;  %v9529_v54 = vld [vmem:[%s10181_s27 + $0x6dc] ss:$28 sps:$4 sm:$0xff]  }
 0x376   : > { %6158 = vmatpush1.bf16.msra.mxu0 %v9437_v10  ;;  %v9532_v10 = vld [vmem:[%s10181_s27 + $0x324] ss:$28 sps:$4 sm:$0xff]  }
 0x377   : > { %6131 = vmatpush2.bf16.msra.mxu1 %v9434_v9  ;;  %6159 = vmatprep.subr.bf16.mxu0 %v9445_v14  ;;  %v9527_v9 = vld [vmem:[%s10181_s27 + $0x6d8] ss:$28 sps:$4 sm:$0xff]   ;;  %v9530_v14 = vld [vmem:[%s10181_s27 + $0x320] ss:$28 sps:$4 sm:$0xff]  }
 0x378   : > { %6132 = vmatprep.subr.bf16.mxu1 %v9442_v11  ;;  %v9535_v11 = vld [vmem:[%s10181_s27 + $0x6a4] ss:$28 sps:$4 sm:$0xff]  }
 0x37a   : > { %6160 = vmatpush1.bf16.msra.mxu0 %v9443_v16  ;;  %v9538_v16 = vld [vmem:[%s10181_s27 + $0x2ec] ss:$28 sps:$4 sm:$0xff]  }
 0x37b   : > { %6133 = vmatpush2.bf16.msra.mxu1 %v9440_v15  ;;  %6161 = vmatprep.subr.bf16.mxu0 %v9451_v41  ;;  %v9533_v15 = vld [vmem:[%s10181_s27 + $0x6a0] ss:$28 sps:$4 sm:$0xff]   ;;  %v9536_v41 = vld [vmem:[%s10181_s27 + $0x2e8] ss:$28 sps:$4 sm:$0xff]  }
 0x37c   : > { %6134 = vmatprep.subr.bf16.mxu1 %v9448_v0  ;;  %v9541_v0 = vld [vmem:[%s10181_s27 + $0x66c] ss:$28 sps:$4 sm:$0xff]  }
 0x37e   : > { %6162 = vmatpush1.bf16.msra.mxu0 %v9449_v53  ;;  %v9544_v53 = vld [vmem:[%s10181_s27 + $0x2b4] ss:$28 sps:$4 sm:$0xff]  }
 0x37f   : > { %6135 = vmatpush2.bf16.msra.mxu1 %v9446_v17  ;;  %6163 = vmatprep.subr.bf16.mxu0 %v9457_v19  ;;  %v9539_v17 = vld [vmem:[%s10181_s27 + $0x668] ss:$28 sps:$4 sm:$0xff]   ;;  %v9542_v19 = vld [vmem:[%s10181_s27 + $0x2b0] ss:$28 sps:$4 sm:$0xff]  }
 0x380   : > { %6136 = vmatprep.subr.bf16.mxu1 %v9454_v18  ;;  %v9547_v18 = vld [vmem:[%s10181_s27 + $0x634] ss:$28 sps:$4 sm:$0xff]  }
 0x382   : > { %6164 = vmatpush1.bf16.msra.mxu0 %v9455_v22  ;;  %v9550_v22 = vld [vmem:[%s10181_s27 + $0x27c] ss:$28 sps:$4 sm:$0xff]  }
 0x383   : > { %6137 = vmatpush2.bf16.msra.mxu1 %v9452_v20  ;;  %6165 = vmatprep.subr.bf16.mxu0 %v9463_v26  ;;  %v9545_v20 = vld [vmem:[%s10181_s27 + $0x630] ss:$28 sps:$4 sm:$0xff]   ;;  %v9548_v26 = vld [vmem:[%s10181_s27 + $0x278] ss:$28 sps:$4 sm:$0xff]  }
 0x384   : > { %6138 = vmatprep.subr.bf16.mxu1 %v9460_v24  ;;  %v9553_v24 = vld [vmem:[%s10181_s27 + $0x5fc] ss:$28 sps:$4 sm:$0xff]  }
 0x386   : > { %6166 = vmatpush1.bf16.msra.mxu0 %v9461_v29  ;;  %v9556_v29 = vld [vmem:[%s10181_s27 + $0x244] ss:$28 sps:$4 sm:$0xff]  }
 0x387   : > { %6139 = vmatpush2.bf16.msra.mxu1 %v9458_v28  ;;  %6167 = vmatprep.subr.bf16.mxu0 %v9469_v31  ;;  %v9551_v28 = vld [vmem:[%s10181_s27 + $0x5f8] ss:$28 sps:$4 sm:$0xff]   ;;  %v9554_v31 = vld [vmem:[%s10181_s27 + $0x240] ss:$28 sps:$4 sm:$0xff]  }
 0x388   : > { %6140 = vmatprep.subr.bf16.mxu1 %v9466_v30  ;;  %v9559_v30 = vld [vmem:[%s10181_s27 + $0x5c4] ss:$28 sps:$4 sm:$0xff]  }
 0x38a   : > { %6168 = vmatpush1.bf16.msra.mxu0 %v9467_v44  ;;  %v9562_v44 = vld [vmem:[%s10181_s27 + $0x20c] ss:$28 sps:$4 sm:$0xff]  }
 0x38b   : > { %6141 = vmatpush2.bf16.msra.mxu1 %v9464_v33  ;;  %6169 = vmatprep.subr.bf16.mxu0 %v9475_v35  ;;  %v9557_v33 = vld [vmem:[%s10181_s27 + $0x5c0] ss:$28 sps:$4 sm:$0xff]   ;;  %v9560_v35 = vld [vmem:[%s10181_s27 + $0x208] ss:$28 sps:$4 sm:$0xff]  }
 0x38c   : > { %6142 = vmatprep.subr.bf16.mxu1 %v9472_v34  ;;  %v9565_v34 = vld [vmem:[%s10181_s27 + $0x58c] ss:$28 sps:$4 sm:$0xff]  }
 0x38e   : > { %6170 = vmatpush1.bf16.msra.mxu0 %v9473_v38  ;;  %v9568_v38 = vld [vmem:[%s10181_s27 + $0x1d4] ss:$28 sps:$4 sm:$0xff]  }
 0x38f   : > { %6143 = vmatpush2.bf16.msra.mxu1 %v9470_v37  ;;  %6198 = vmatprep.subr.bf16.mxu0 %v9478_v39  ;;  %v9563_v37 = vld [vmem:[%s10181_s27 + $0x588] ss:$28 sps:$4 sm:$0xff]   ;;  %v9571_v39 = vld [vmem:[%s10181_s27 + $0x554] ss:$28 sps:$4 sm:$0xff]  }
 0x390   : > { %6241 = vmatprep.subr.bf16.mxu1 %v9481_v42  ;;  %v9566_v42 = vld [vmem:[%s10181_s27 + $0x1d0] ss:$28 sps:$4 sm:$0xff]  }
 0x391   : > { %6188 = vmatmul.mubr.bf16.vlgmr.msra.gmra.mxu0 %v10723_v32  ;;  %v9491_v32 = vld [vmem:[%s10181_s27 + $0x4a8] ss:$28 sps:$4 sm:$0xff]  }
 0x392   : > { %6145 = vmatmul.mubr.bf16.vlgmr.msra.gmra.mxu1 %v10758_v3  ;;  %6199 = vmatpush1.bf16.msra.mxu0 %v9476_v36  ;;  %v10876_v3 = vld [vmem:[#allocation2 + $0xc] ss:$28 sps:$4 sm:$0xff]   ;;  %v9569_v36 = vld [vmem:[%s10181_s27 + $0x550] ss:$28 sps:$4 sm:$0xff]  }
 0x393   : > { %6242 = vmatpush1.bf16.msra.mxu1 %v9479_v43  ;;  %6200 = vmatprep.subr.bf16.mxu0 %v9484_v46  ;;  %v9574_v43 = vld [vmem:[%s10181_s27 + $0x89c] ss:$28 sps:$4 sm:$0xff]  }
 0x394   : > { %6243 = vmatprep.subr.bf16.mxu1 %v9487_v47  ;;  %6230 = vmatprep.mubr.bf16.mxu0 %v10873_v50  ;;  %v9577_v46 = vld [vmem:[%s10181_s27 + $0xc1c] ss:$28 sps:$4 sm:$0xff]  }
 0x395   : > { %6273 = vmatprep.mubr.bf16.mxu1 %v10876_v3  ;;  %v9572_v47 = vld [vmem:[%s10181_s27 + $0x898] ss:$28 sps:$4 sm:$0xff]  }
 0x396   : > { %6201 = vmatpush1.bf16.msra.mxu0 %v9482_v45  ;;  %v9575_v45 = vld [vmem:[%s10181_s27 + $0xc18] ss:$28 sps:$4 sm:$0xff]  }
 0x397   : > { %6244 = vmatpush1.bf16.msra.mxu1 %v9485_v40  ;;  %6202 = vmatprep.subr.bf16.mxu0 %v9490_v61  ;;  %v9580_v40 = vld [vmem:[%s10181_s27 + $0x864] ss:$28 sps:$4 sm:$0xff]  }
 0x398   : > { %6245 = vmatprep.subr.bf16.mxu1 %v9493_v48  ;;  %v9583_v61 = vld [vmem:[%s10181_s27 + $0xbe4] ss:$28 sps:$4 sm:$0xff]   ;;  %v10938_v48 = vld [vmem:[#allocation2] ss:$28 sps:$4 sm:$0xff]  }
 0x39a   : > { %6203 = vmatpush1.bf16.msra.mxu0 %v9488_v49  ;;  %v10941_v49 = vld [vmem:[#allocation2 + $0x8] ss:$28 sps:$4 sm:$0xff]  }
 0x39b   : > { %6246 = vmatpush1.bf16.msra.mxu1 %v9491_v32  ;;  %6204 = vmatprep.subr.bf16.mxu0 %v9496_v51  ;;  %v9578_v32 = vld [vmem:[%s10181_s27 + $0x860] ss:$28 sps:$4 sm:$0xff]  }
 0x39c   : > { %6247 = vmatprep.subr.bf16.mxu1 %v9499_v25  ;;  %v9581_v51 = vld [vmem:[%s10181_s27 + $0xbe0] ss:$28 sps:$4 sm:$0xff]   ;;  %v9586_v25 = vld [vmem:[%s10181_s27 + $0x82c] ss:$28 sps:$4 sm:$0xff]  }
 0x39e   : > { %6205 = vmatpush1.bf16.msra.mxu0 %v9494_v52  ;;  %v9589_v52 = vld [vmem:[%s10181_s27 + $0xbac] ss:$28 sps:$4 sm:$0xff]  }
 0x39f   : > { %6248 = vmatpush1.bf16.msra.mxu1 %v9497_v55  ;;  %6206 = vmatprep.subr.bf16.mxu0 %v9502_v56  ;;  %v10949_v55 = vld [vmem:[#allocation2 + $0x14] ss:$28 sps:$4 sm:$0xff]  }
 0x3a0   : > { %6249 = vmatprep.subr.bf16.mxu1 %v9505_v57  ;;  %v9584_v56 = vld [vmem:[%s10181_s27 + $0x828] ss:$28 sps:$4 sm:$0xff]  }
 0x3a1   : > { %v9587_v57 = vld [vmem:[%s10181_s27 + $0xba8] ss:$28 sps:$4 sm:$0xff]  }
 0x3a2   : > { %6207 = vmatpush1.bf16.msra.mxu0 %v9500_v58  ;;  %v9592_v58 = vld [vmem:[%s10181_s27 + $0x7f4] ss:$28 sps:$4 sm:$0xff]  }
 0x3a3   : > { %6250 = vmatpush1.bf16.msra.mxu1 %v9503_v59  ;;  %6208 = vmatprep.subr.bf16.mxu0 %v9508_v60  ;;  %v9595_v59 = vld [vmem:[%s10181_s27 + $0xb74] ss:$28 sps:$4 sm:$0xff]  }
 0x3a4   : > { %6251 = vmatprep.subr.bf16.mxu1 %v9511_v62  ;;  %v9593_v60 = vld [vmem:[%s10181_s27 + $0xb70] ss:$28 sps:$4 sm:$0xff]   ;;  %v9598_v62 = vld [vmem:[%s10181_s27 + $0x7bc] ss:$28 sps:$4 sm:$0xff]  }
 0x3a6   : > { %6209 = vmatpush1.bf16.msra.mxu0 %v9506_v63  ;;  %v9601_v63 = vld [vmem:[%s10181_s27 + $0xb3c] ss:$28 sps:$4 sm:$0xff]  }
 0x3a7   : > { %6252 = vmatpush1.bf16.msra.mxu1 %v9509_v12  ;;  %6210 = vmatprep.subr.bf16.mxu0 %v9514_v1  ;;  %v3767_v12 = vlaneseq  ;;  %v9596_v1 = vld [vmem:[%s10181_s27 + $0x7b8] ss:$28 sps:$4 sm:$0xff]  }
 0x3a8   : > { %6253 = vmatprep.subr.bf16.mxu1 %v9517_v2  ;;  %v9599_v2 = vld [vmem:[%s10181_s27 + $0xb38] ss:$28 sps:$4 sm:$0xff]  }
 0x3aa   : > { %6211 = vmatpush1.bf16.msra.mxu0 %v9512_v13 }
 0x3ab   : > { %6254 = vmatpush1.bf16.msra.mxu1 %v9515_v4  ;;  %6212 = vmatprep.subr.bf16.mxu0 %v9520_v6  ;;  %v9604_v4 = vld [vmem:[%s10181_s27 + $0x784] ss:$28 sps:$4 sm:$0xff]  }
 0x3ac   : > { %6255 = vmatprep.subr.bf16.mxu1 %v9523_v21  ;;  %v9607_v6 = vld [vmem:[%s10181_s27 + $0xb04] ss:$28 sps:$4 sm:$0xff]   ;;  %v10964_v21 = vshrl.u32 %v3767_v12, 7 }
 0x3ad   : > { %v9630_v12 = vld [vmem:[%s10181_s27 + $0x9e8] ss:$28 sps:$4 sm:$0xff]  }
 0x3ae   : > { %6213 = vmatpush1.bf16.msra.mxu0 %v9518_v7  ;;  %v9602_v7 = vld [vmem:[%s10181_s27 + $0x780] ss:$28 sps:$4 sm:$0xff]  }
 0x3af   : > { %6256 = vmatpush1.bf16.msra.mxu1 %v9521_v27  ;;  %6214 = vmatprep.subr.bf16.mxu0 %v9526_v8  ;;  %v9605_v27 = vld [vmem:[%s10181_s27 + $0xb00] ss:$28 sps:$4 sm:$0xff]  }
 0x3b0   : > { %6257 = vmatprep.subr.bf16.mxu1 %v9529_v54 }
 0x3b1   : > { %v5888_v8 = vpop.f32.mrf.mxu0 }
 0x3b2   : > { %6215 = vmatpush2.bf16.msra.mxu0 %v9524_v23  ;;  %v5931_v13 = vpop.f32.mrf.mxu1  ;;  %v9610_v23 = vld [vmem:[%s10181_s27 + $0x74c] ss:$28 sps:$4 sm:$0xff]  }
 0x3b3   : > { %6258 = vmatpush2.bf16.msra.mxu1 %v9527_v9  ;;  %6216 = vmatprep.subr.bf16.mxu0 %v9532_v10  ;;  %v9613_v9 = vld [vmem:[%s10181_s27 + $0xacc] ss:$28 sps:$4 sm:$0xff]   ;;  %v3769_v10 = vsub.s32 0, %v10964_v21 }
 0x3b4   : > { %6259 = vmatprep.subr.bf16.mxu1 %v9535_v11  ;;  %v5933_v54 = vpop.f32.mrf.mxu1  ;;  %v10973_v11 = vld [vmem:[%s299_s6] sm:$0xff] }
 0x3b6   : > { %6217 = vmatpush2.bf16.msra.mxu0 %v9530_v14  ;;  %v3773_v14 = vsub.s32 1, %v10964_v21 }
 0x3b7   : > { %6260 = vmatpush2.bf16.msra.mxu1 %v9533_v15  ;;  %6218 = vmatprep.subr.bf16.mxu0 %v9538_v16  ;;  %v9608_v15 = vld [vmem:[%s10181_s27 + $0x748] ss:$28 sps:$4 sm:$0xff]  }
 0x3b8   : > { %6261 = vmatprep.subr.bf16.mxu1 %v9541_v0  ;;  %v9611_v16 = vld [vmem:[%s10181_s27 + $0xac8] ss:$28 sps:$4 sm:$0xff]   ;;  %v5890_v0 = vpop.f32.mrf.mxu0 }
 0x3ba   : > { %6219 = vmatpush2.bf16.msra.mxu0 %v9536_v41  ;;  %v5935_v41 = vpop.f32.mrf.mxu1 }
 0x3bb   : > { %6262 = vmatpush2.bf16.msra.mxu1 %v9539_v17  ;;  %6220 = vmatprep.subr.bf16.mxu0 %v9544_v53  ;;  %v9616_v17 = vld [vmem:[%s10181_s27 + $0x714] ss:$28 sps:$4 sm:$0xff]  }
 0x3bc   : > { %6263 = vmatprep.subr.bf16.mxu1 %v9547_v18  ;;  %v9619_v53 = vld [vmem:[%s10181_s27 + $0xa94] ss:$28 sps:$4 sm:$0xff]   ;;  %v3770_v18 = vrot.slane %v10973_v11, %v3769_v10 }
 0x3bd   : > { %v9639_v10 = vld [vmem:[%s10181_s27 + $0xf8] ss:$28 sps:$4 sm:$0xff]  }
 0x3be   : > { %6221 = vmatpush2.bf16.msra.mxu0 %v9542_v19  ;;  %v3774_v19 = vrot.slane %v10973_v11, %v3773_v14  ;;  %v9642_v14 = vld [vmem:[%s10181_s27 + $0x97c] ss:$28 sps:$4 sm:$0xff]  }
 0x3bf   : > { %6264 = vmatpush2.bf16.msra.mxu1 %v9545_v20  ;;  %6222 = vmatprep.subr.bf16.mxu0 %v9550_v22  ;;  %v9614_v20 = vld [vmem:[%s10181_s27 + $0x710] ss:$28 sps:$4 sm:$0xff]  }
 0x3c0   : > { %6265 = vmatprep.subr.bf16.mxu1 %v9553_v24  ;;  %v9617_v22 = vld [vmem:[%s10181_s27 + $0xa90] ss:$28 sps:$4 sm:$0xff]   ;;  %v5892_v24 = vpop.f32.mrf.mxu0 }
 0x3c2   : > { %6223 = vmatpush2.bf16.msra.mxu0 %v9548_v26  ;;  %v5937_v26 = vpop.f32.mrf.mxu1 }
 0x3c3   : > { %6266 = vmatpush2.bf16.msra.mxu1 %v9551_v28  ;;  %6224 = vmatprep.subr.bf16.mxu0 %v9556_v29  ;;  %v9622_v28 = vld [vmem:[%s10181_s27 + $0xa5c] ss:$28 sps:$4 sm:$0xff]  }
 0x3c4   : > { %6267 = vmatprep.subr.bf16.mxu1 %v9559_v30  ;;  %v9623_v29 = vld [vmem:[%s10181_s27 + $0x360] ss:$28 sps:$4 sm:$0xff]   ;;  %v5889_v30 = vadd.f32 %v5888_v8, %v3770_v18 }
 0x3c6   : > { %6225 = vmatpush2.bf16.msra.mxu0 %v9554_v31 }
 0x3c7   : > { %6268 = vmatpush2.bf16.msra.mxu1 %v9557_v33  ;;  %6226 = vmatprep.subr.bf16.mxu0 %v9562_v44  ;;  %v5891_v33 = vadd.f32 %v5890_v0, %v3774_v19  ;;  %v9620_v44 = vld [vmem:[%s10181_s27 + $0xa58] ss:$28 sps:$4 sm:$0xff]  }
 0x3c8   : > { %6269 = vmatprep.subr.bf16.mxu1 %v9565_v34  ;;  %v9624_v34 = vld [vmem:[%s10181_s27 + $0x1a0] ss:$28 sps:$4 sm:$0xff]  }
 0x3ca   : > { %6227 = vmatpush2.bf16.msra.mxu0 %v9560_v35  ;;  %v5894_v35 = vpop.f32.mrf.mxu0 }
 0x3cb   : > { %6270 = vmatpush2.bf16.msra.mxu1 %v9563_v37  ;;  %6228 = vmatprep.subr.bf16.mxu0 %v9568_v38  ;;  %v9627_v37 = vld [vmem:[%s10181_s27 + $0xa24] ss:$28 sps:$4 sm:$0xff]  }
 0x3cc   : > { %6271 = vmatprep.subr.bf16.mxu1 %v9571_v39  ;;  %v9628_v38 = vld [vmem:[%s10181_s27 + $0x328] ss:$28 sps:$4 sm:$0xff]   ;;  %v5932_v39 = vadd.f32 %v5931_v13, %v5889_v30  ;;  %v9637_v13 = vld [vmem:[%s10181_s27 + $0x9b4] ss:$28 sps:$4 sm:$0xff]  }
 0x3cd   : > { %v9657_v30 = vld [vmem:[%s10181_s27 + $0x8d4] ss:$28 sps:$4 sm:$0xff]  }
 0x3ce   : > { %6229 = vmatpush2.bf16.msra.mxu0 %v9566_v42  ;;  %v5893_v42 = vadd.f32 %v5892_v24, %v3770_v18  ;;  %v9647_v18 = vld [vmem:[%s10181_s27 + $0x944] ss:$28 sps:$4 sm:$0xff]   ;;  %v9652_v24 = vld [vmem:[%s10181_s27 + $0x90c] ss:$28 sps:$4 sm:$0xff]  }
 0x3cf   : > { %6272 = vmatpush2.bf16.msra.mxu1 %v9569_v36  ;;  %6284 = vmatprep.subr.bf16.mxu0 %v9574_v43 }
 0x3d0   : > { %6327 = vmatprep.subr.bf16.mxu1 %v9577_v46  ;;  %v10990_v46 = vld [vmem:[#allocation2 + $0x18] ss:$28 sps:$4 sm:$0xff]  }
 0x3d1   : > { %6231 = vmatmul.mubr.bf16.vlgmr.msra.gmra.mxu0 %v10938_v48 }
 0x3d2   : > { %6274 = vmatmul.mubr.bf16.vlgmr.msra.gmra.mxu1 %v10941_v49  ;;  %6285 = vmatpush1.bf16.msra.mxu0 %v9572_v47  ;;  %v6017_v31 = vpop.f32.mrf.mxu1  ;;  %v5934_v47 = vadd.f32 %v5933_v54, %v5891_v33  ;;  %v9655_v33 = vld [vmem:[%s10181_s27 + $0x8d0] ss:$28 sps:$4 sm:$0xff]  }
 0x3d3   : > { %6328 = vmatpush1.bf16.msra.mxu1 %v9575_v45  ;;  %6286 = vmatprep.subr.bf16.mxu0 %v9580_v40  ;;  %v5895_v45 = vadd.f32 %v5894_v35, %v3774_v19  ;;  %v9648_v19 = vld [vmem:[%s10181_s27 + $0x248] ss:$28 sps:$4 sm:$0xff]   ;;  %v9662_v35 = vld [vmem:[%s10181_s27 + $0xa60] ss:$28 sps:$4 sm:$0xff]  }
 0x3d4   : > { %6329 = vmatprep.subr.bf16.mxu1 %v9583_v61  ;;  %6359 = vmatprep.mubr.bf16.mxu1 %v10009_v5  ;;  %v9590_v5 = vld [vmem:[%s10181_s27 + $0x7f0] ss:$28 sps:$4 sm:$0xff]   ;;  %v6019_v36 = vpop.f32.mrf.mxu1  ;;  %v9625_v61 = vld [vmem:[%s10181_s27 + $0xa20] ss:$28 sps:$4 sm:$0xff]  }
 0x3d5   : > { %6316 = vmatprep.mubr.bf16.mxu0 %v10949_v55 }
 0x3d6   : > { %6287 = vmatpush1.bf16.msra.mxu0 %v9578_v32  ;;  %v9629_v32 = vld [vmem:[%s10181_s27 + $0x168] ss:$28 sps:$4 sm:$0xff]  }
 0x3d7   : > { %6330 = vmatpush1.bf16.msra.mxu1 %v9581_v51  ;;  %6288 = vmatprep.subr.bf16.mxu0 %v9586_v25  ;;  %v9632_v25 = vld [vmem:[%s10181_s27 + $0x9ec] ss:$28 sps:$4 sm:$0xff]  }
 0x3d8   : > { %6331 = vmatprep.subr.bf16.mxu1 %v9589_v52  ;;  %v9633_v52 = vld [vmem:[%s10181_s27 + $0x2f0] ss:$28 sps:$4 sm:$0xff]  }
 0x3da   : > { %6289 = vmatpush1.bf16.msra.mxu0 %v9584_v56  ;;  %v5936_v56 = vadd.f32 %v5935_v41, %v5893_v42  ;;  %v9666_v42 = vld [vmem:[%s10181_s27 + $0xa28] ss:$28 sps:$4 sm:$0xff]  }
 0x3db   : > { %6332 = vmatpush1.bf16.msra.mxu1 %v9587_v57  ;;  %6290 = vmatprep.subr.bf16.mxu0 %v9592_v58 }
 0x3dc   : > { %6333 = vmatprep.subr.bf16.mxu1 %v9595_v59  ;;  %v6021_v59 = vpop.f32.mrf.mxu1 }
 0x3de   : > { %6291 = vmatpush1.bf16.msra.mxu0 %v9590_v5  ;;  %v6023_v8 = vpop.f32.mrf.mxu1 }
 0x3df   : > { %6334 = vmatpush1.bf16.msra.mxu1 %v9593_v60  ;;  %6292 = vmatprep.subr.bf16.mxu0 %v9598_v62  ;;  %v5938_v60 = vadd.f32 %v5937_v26, %v5895_v45  ;;  %v9653_v26 = vld [vmem:[%s10181_s27 + $0x210] ss:$28 sps:$4 sm:$0xff]  }
 0x3e0   : > { %6335 = vmatprep.subr.bf16.mxu1 %v9601_v63  ;;  %v9668_v45 = vld [vmem:[%s10181_s27 + $0x670] ss:$28 sps:$4 sm:$0xff]  }
 0x3e2   : > { %6293 = vmatpush1.bf16.msra.mxu0 %v9596_v1  ;;  %v9634_v1 = vld [vmem:[%s10181_s27 + $0x130] ss:$28 sps:$4 sm:$0xff]  }
 0x3e3   : > { %6336 = vmatpush1.bf16.msra.mxu1 %v9599_v2  ;;  %6294 = vmatprep.subr.bf16.mxu0 %v9604_v4  ;;  %v9638_v4 = vld [vmem:[%s10181_s27 + $0x2b8] ss:$28 sps:$4 sm:$0xff]  }
 0x3e4   : > { %6337 = vmatprep.subr.bf16.mxu1 %v9607_v6 }
 0x3e6   : > { %6295 = vmatpush1.bf16.msra.mxu0 %v9602_v7 }
 0x3e7   : > { %6338 = vmatpush1.bf16.msra.mxu1 %v9605_v27  ;;  %6296 = vmatprep.subr.bf16.mxu0 %v9610_v23 }
 0x3e8   : > { %6339 = vmatprep.subr.bf16.mxu1 %v9613_v9  ;;  %v9635_v9 = vld [vmem:[%s10181_s27 + $0x9b0] ss:$28 sps:$4 sm:$0xff]  }
 0x3ea   : > { %6297 = vmatpush1.bf16.msra.mxu0 %v9608_v15  ;;  %v9643_v15 = vld [vmem:[%s10181_s27 + $0x280] ss:$28 sps:$4 sm:$0xff]  }
 0x3eb   : > { %6340 = vmatpush1.bf16.msra.mxu1 %v9611_v16  ;;  %6298 = vmatprep.subr.bf16.mxu0 %v9616_v17  ;;  %v9640_v17 = vld [vmem:[%s10181_s27 + $0x978] ss:$28 sps:$4 sm:$0xff]  }
 0x3ec   : > { %6341 = vmatprep.subr.bf16.mxu1 %v9619_v53  ;;  %v9644_v53 = vld [vmem:[%s10181_s27 + $0xc0] ss:$28 sps:$4 sm:$0xff]  }
 0x3ee   : > { %6299 = vmatpush1.bf16.msra.mxu0 %v9614_v20  ;;  %v9645_v20 = vld [vmem:[%s10181_s27 + $0x940] ss:$28 sps:$4 sm:$0xff]  }
 0x3ef   : > { %6342 = vmatpush1.bf16.msra.mxu1 %v9617_v22  ;;  %6300 = vmatprep.subr.bf16.mxu0 %v9622_v28  ;;  %v9649_v22 = vld [vmem:[%s10181_s27 + $0x88] ss:$28 sps:$4 sm:$0xff]  }
 0x3f0   : > { %8324 = vmatprep.subr.bf16.mxu1 %v9623_v29  ;;  %v9650_v28 = vld [vmem:[%s10181_s27 + $0x908] ss:$28 sps:$4 sm:$0xff]   ;;  %v9654_v29 = vld [vmem:[%s10181_s27 + $0x50] ss:$28 sps:$4 sm:$0xff]  }
 0x3f1   : > { %v5974_v43 = vpop.f32.mrf.mxu0 }
 0x3f2   : > { %6360 = vmatmul.mubr.bf16.vlgmr.msra.gmra.mxu1 %v10990_v46  ;;  %v5975_v40 = vadd.f32 %v5974_v43, %v5932_v39  ;;  %6301 = vmatpush2.bf16.msra.mxu0 %v9620_v44  ;;  %v9659_v44 = vld [vmem:[%s10181_s27 + $0x18] ss:$28 sps:$4 sm:$0xff]   ;;  %v9664_v39 = vld [vmem:[%s10181_s27 + $0x6a8] ss:$28 sps:$4 sm:$0xff]  }
 0x3f3   : > { %8325 = vmatpush3.bf16.msra.mxu1 %v9624_v34  ;;  %v5976_v51 = vpop.f32.mrf.mxu0  ;;  %6302 = vmatprep.subr.bf16.mxu0 %v9627_v37  ;;  %v9660_v34 = vld [vmem:[%s10181_s27 + $0x6e0] ss:$28 sps:$4 sm:$0xff]   ;;  %v9665_v43 = vld [vmem:[%s10181_s27 + $0x4e8] ss:$28 sps:$4 sm:$0xff]  }
 0x3f4   : > { %8326 = vmatprep.subr.bf16.mxu1 %v9628_v38  ;;  %v6018_v57 = vadd.f32 %v6017_v31, %v5975_v40  ;;  %v5977_v58 = vadd.f32 %v5976_v51, %v5934_v47  ;;  %6402 = vmatprep.mubr.bf16.mxu1 %v10873_v50  ;;  %v9658_v31 = vld [vmem:[%s10181_s27 + $0x1d8] ss:$28 sps:$4 sm:$0xff]   ;;  %v9661_v37 = vld [vmem:[%s10181_s27 + $0x520] ss:$28 sps:$4 sm:$0xff]   ;;  %v9667_v47 = vld [vmem:[%s10181_s27 + $0x868] ss:$28 sps:$4 sm:$0xff]  }
 0x3f5   : > { %v5978_v5 = vpop.f32.mrf.mxu0  ;;  %v9663_v38 = vld [vmem:[%s10181_s27 + $0x8a0] ss:$28 sps:$4 sm:$0xff]   ;;  %v9670_v40 = vld [vmem:[%s10181_s27 + $0x9f0] ss:$28 sps:$4 sm:$0xff]   ;;  %v9674_v51 = vld [vmem:[%s10181_s27 + $0x9b8] ss:$28 sps:$4 sm:$0xff]  }
 0x3f6   : > { %v6020_v62 = vadd.f32 %v6019_v36, %v5977_v58  ;;  %v5979_v63 = vadd.f32 %v5978_v5, %v5936_v56  ;;  %6303 = vmatpush2.bf16.msra.mxu0 %v9625_v61  ;;  %v6534_v6 = vmax.f32 %v6018_v57, 0.0  ;;  %v11026_v36 = vld [vmem:[#allocation2 + $0x10] ss:$28 sps:$4 sm:$0xff]   ;;  %v9671_v61 = vld [vmem:[%s10181_s27 + $0x830] ss:$28 sps:$4 sm:$0xff]  }
 0x3f7   : > { %8327 = vmatpush3.bf16.msra.mxu1 %v9629_v32  ;;  %v5980_v2 = vpop.f32.mrf.mxu0  ;;  %6304 = vmatprep.subr.bf16.mxu0 %v9632_v25  ;;  %v9672_v32 = vld [vmem:[%s10181_s27 + $0x638] ss:$28 sps:$4 sm:$0xff]   ;;  %v9677_v56 = vld [vmem:[%s10181_s27 + $0x440] ss:$28 sps:$4 sm:$0xff]   ;;  %v9680_v58 = vld [vmem:[%s10181_s27 + $0x5c8] ss:$28 sps:$4 sm:$0xff]  }
 0x3f8   : > { %8328 = vmatprep.subr.bf16.mxu1 %v9633_v52  ;;  %v6535_v50 = vmax.f32 %v6020_v62, 0.0  ;;  %v6022_v7 = vadd.f32 %v6021_v59, %v5979_v63  ;;  %v5981_v27 = vadd.f32 %v5980_v2, %v5938_v60  ;;  %v9673_v25 = vld [vmem:[%s10181_s27 + $0x478] ss:$28 sps:$4 sm:$0xff]   ;;  %v9678_v52 = vld [vmem:[%s10181_s27 + $0x980] ss:$28 sps:$4 sm:$0xff]  }
 0x3f9   : > { %v9679_v57 = vld [vmem:[%s10181_s27 + $0x7c0] ss:$28 sps:$4 sm:$0xff]   ;;  %v9682_v59 = vld [vmem:[%s10181_s27 + $0x948] ss:$28 sps:$4 sm:$0xff]   ;;  %v9684_v62 = vld [vmem:[%s10181_s27 + $0x590] ss:$28 sps:$4 sm:$0xff]  }
 0x3fa   : > { %v8248_v54 = vpack.c.bf16 %v6535_v50, %v6534_v6  ;;  %v6024_v23 = vadd.f32 %v6023_v8, %v5981_v27  ;;  %6305 = vmatpush2.bf16.msra.mxu0 %v9630_v12  ;;  %v6541_v16 = vmax.f32 %v6022_v7, 0.0  ;;  %v9681_v5 = vld [vmem:[%s10181_s27 + $0x408] ss:$28 sps:$4 sm:$0xff]   ;;  %v9686_v63 = vld [vmem:[%s10181_s27 + $0x910] ss:$28 sps:$4 sm:$0xff]   ;;  %v10010_v7 = vmov 0.0  }
 0x3fb   : > { %8329 = vmatpush3.bf16.msra.mxu1 %v9634_v1  ;;  %6306 = vmatprep.subr.bf16.mxu0 %v9637_v13  ;;  %v9683_v60 = vld [vmem:[%s10181_s27 + $0x788] ss:$28 sps:$4 sm:$0xff]   ;;  %v9685_v12 = vld [vmem:[%s10181_s27 + $0x3d0] ss:$28 sps:$4 sm:$0xff]   ;;  %v9688_v2 = vld [vmem:[%s10181_s27 + $0x558] ss:$28 sps:$4 sm:$0xff]  }
 0x3fc   : > { %8330 = vmatprep.subr.bf16.mxu1 %v9638_v4  ;;  %6592 = vst [vmem:[#allocation2] sm:$0xff] %v8248_v54  ;;  %v6542_v0 = vmax.f32 %v6024_v23, 0.0  ;;  %v9687_v1 = vld [vmem:[%s10181_s27 + $0x750] ss:$28 sps:$4 sm:$0xff]   ;;  %v9690_v13 = vld [vmem:[%s10181_s27 + $0x8d8] ss:$28 sps:$4 sm:$0xff]  }
 0x3fd   : > { %v9689_v4 = vld [vmem:[%s10181_s27 + $0x398] ss:$28 sps:$4 sm:$0xff]   ;;  %v9692_v50 = vld [vmem:[%s10181_s27 + $0xc20] ss:$28 sps:$4 sm:$0xff]   ;;  %v9693_v27 = vld [vmem:[%s10181_s27 + $0xbe8] ss:$28 sps:$4 sm:$0xff]  }
 0x3fe   : > { %v8252_v41 = vpack.c.bf16 %v6542_v0, %v6541_v16  ;;  %6307 = vmatpush2.bf16.msra.mxu0 %v9635_v9  ;;  %v9691_v6 = vld [vmem:[%s10181_s27 + $0x718] ss:$28 sps:$4 sm:$0xff]   ;;  %v9694_v8 = vld [vmem:[%s10181_s27 + $0xbb0] ss:$28 sps:$4 sm:$0xff]   ;;  %v9696_v23 = vld [vmem:[%s10181_s27 + $0xb40] ss:$28 sps:$4 sm:$0xff]  }
 0x3ff   : > { %8331 = vmatpush3.bf16.msra.mxu1 %v9639_v10  ;;  %6308 = vmatprep.subr.bf16.mxu0 %v9642_v14  ;;  %v9695_v54 = vld [vmem:[%s10181_s27 + $0xb78] ss:$28 sps:$4 sm:$0xff]   ;;  %v3777_v14 = vsub.s32 2, %v10964_v21 }
 0x400   : > { %8332 = vmatprep.subr.bf16.mxu1 %v9643_v15  ;;  %6596 = vst [vmem:[#allocation2 + $0x1c] sm:$0xff] %v8252_v41  ;;  %v9698_v15 = vld [vmem:[%s10181_s27 + $0xad0] ss:$28 sps:$4 sm:$0xff]   ;;  %v3781_v41 = vsub.s32 3, %v10964_v21 }
 0x402   : > { %6309 = vmatpush2.bf16.msra.mxu0 %v9640_v17  ;;  %v3778_v17 = vrot.slane %v10973_v11, %v3777_v14 }
 0x403   : > { %8333 = vmatpush3.bf16.msra.mxu1 %v9644_v53  ;;  %6310 = vmatprep.subr.bf16.mxu0 %v9647_v18  ;;  %v9699_v53 = vld [vmem:[%s10181_s27 + $0xa98] ss:$28 sps:$4 sm:$0xff]  }
 0x404   : > { %8334 = vmatprep.subr.bf16.mxu1 %v9648_v19 }
 0x406   : > { %6311 = vmatpush2.bf16.msra.mxu0 %v9645_v20  ;;  %v3782_v20 = vrot.slane %v10973_v11, %v3781_v41 }
 0x407   : > { %8335 = vmatpush3.bf16.msra.mxu1 %v9649_v22  ;;  %6312 = vmatprep.subr.bf16.mxu0 %v9652_v24 }
 0x408   : > { %8336 = vmatprep.subr.bf16.mxu1 %v9653_v26 }
 0x40a   : > { %6313 = vmatpush2.bf16.msra.mxu0 %v9650_v28 }
 0x40b   : > { %8337 = vmatpush3.bf16.msra.mxu1 %v9654_v29  ;;  %6314 = vmatprep.subr.bf16.mxu0 %v9657_v30 }
 0x40c   : > { %8338 = vmatprep.subr.bf16.mxu1 %v9658_v31 }
 0x40e   : > { %6315 = vmatpush2.bf16.msra.mxu0 %v9655_v33 }
 0x40f   : > { %8339 = vmatpush3.bf16.msra.mxu1 %v9659_v44  ;;  %8346 = vmatprep.subr.bf16.mxu0 %v9660_v34 }
 0x410   : > { %8368 = vmatprep.subr.bf16.mxu1 %v9662_v35 }
 0x411   : > { %6317 = vmatmul.mubr.bf16.vlgmr.msra.gmra.mxu0 %v11026_v36 }
 0x412   : > { %6403 = vmatmul.mubr.bf16.vlgmr.msra.gmra.mxu1 %v10938_v48  ;;  %8347 = vmatpush3.bf16.msra.mxu0 %v9661_v37  ;;  %v9669_v48 = vld [vmem:[%s10181_s27 + $0x4b0] ss:$28 sps:$4 sm:$0xff]   ;;  %v6060_v9 = vpop.f32.mrf.mxu1 }
 0x413   : > { %8369 = vmatpush3.bf16.msra.mxu1 %v9663_v38  ;;  %8348 = vmatprep.subr.bf16.mxu0 %v9664_v39  ;;  %v6061_v22 = vadd.f32 %v6060_v9, %v3778_v17 }
 0x414   : > { %8370 = vmatprep.subr.bf16.mxu1 %v9666_v42  ;;  %6443 = vmatprep.mubr.bf16.mxu0 %v10876_v3  ;;  %v9675_v3 = vld [vmem:[%s10181_s27 + $0x7f8] ss:$28 sps:$4 sm:$0xff]   ;;  %v6062_v16 = vpop.f32.mrf.mxu1 }
 0x415   : > { %6484 = vmatprep.mubr.bf16.mxu1 %v10949_v55  ;;  %v9676_v55 = vld [vmem:[%s10181_s27 + $0x600] ss:$28 sps:$4 sm:$0xff]   ;;  %v6063_v28 = vadd.f32 %v6062_v16, %v3782_v20 }
 0x416   : > { %8349 = vmatpush3.bf16.msra.mxu0 %v9665_v43  ;;  %v6064_v18 = vpop.f32.mrf.mxu1 }
 0x417   : > { %8371 = vmatpush3.bf16.msra.mxu1 %v9667_v47  ;;  %8350 = vmatprep.subr.bf16.mxu0 %v9668_v45  ;;  %v6065_v33 = vadd.f32 %v6064_v18, %v3778_v17 }
 0x418   : > { %8372 = vmatprep.subr.bf16.mxu1 %v9670_v40  ;;  %v6066_v24 = vpop.f32.mrf.mxu1 }
 0x419   : > { %v6067_v38 = vadd.f32 %v6066_v24, %v3782_v20 }
 0x41a   : > { %8351 = vmatpush3.bf16.msra.mxu0 %v9669_v48 }
 0x41b   : > { %8373 = vmatpush3.bf16.msra.mxu1 %v9671_v61  ;;  %8352 = vmatprep.subr.bf16.mxu0 %v9672_v32 }
 0x41c   : > { %8374 = vmatprep.subr.bf16.mxu1 %v9674_v51 }
 0x41e   : > { %8353 = vmatpush3.bf16.msra.mxu0 %v9673_v25 }
 0x41f   : > { %8375 = vmatpush3.bf16.msra.mxu1 %v9675_v3  ;;  %8354 = vmatprep.subr.bf16.mxu0 %v9676_v55 }
 0x420   : > { %8376 = vmatprep.subr.bf16.mxu1 %v9678_v52 }
 0x422   : > { %8355 = vmatpush3.bf16.msra.mxu0 %v9677_v56 }
 0x423   : > { %8377 = vmatpush3.bf16.msra.mxu1 %v9679_v57  ;;  %8356 = vmatprep.subr.bf16.mxu0 %v9680_v58 }
 0x424   : > { %8378 = vmatprep.subr.bf16.mxu1 %v9682_v59 }
 0x426   : > { %8357 = vmatpush3.bf16.msra.mxu0 %v9681_v5 }
 0x427   : > { %8379 = vmatpush3.bf16.msra.mxu1 %v9683_v60  ;;  %8358 = vmatprep.subr.bf16.mxu0 %v9684_v62  ;;  %v3785_v62 = vsub.s32 4, %v10964_v21 }
 0x428   : > { %8380 = vmatprep.subr.bf16.mxu1 %v9686_v63  ;;  %v3789_v63 = vsub.s32 5, %v10964_v21 }
 0x42a   : > { %8359 = vmatpush3.bf16.msra.mxu0 %v9685_v12 }
 0x42b   : > { %8381 = vmatpush3.bf16.msra.mxu1 %v9687_v1  ;;  %8360 = vmatprep.subr.bf16.mxu0 %v9688_v2  ;;  %v3786_v2 = vrot.slane %v10973_v11, %v3785_v62 }
 0x42c   : > { %8382 = vmatprep.subr.bf16.mxu1 %v9690_v13  ;;  %v3790_v13 = vrot.slane %v10973_v11, %v3789_v63 }
 0x42e   : > { %8361 = vmatpush3.bf16.msra.mxu0 %v9689_v4 }
 0x42f   : > { %8383 = vmatpush3.bf16.msra.mxu1 %v9691_v6  ;;  %8480 = vmatprep.subr.bf16.mxu0 %v10010_v7 }
 0x431   : > { %6444 = vmatmul.mubr.bf16.vlgmr.msra.gmra.mxu0 %v10941_v49  ;;  %v9697_v49 = vld [vmem:[%s10181_s27 + $0xb08] ss:$28 sps:$4 sm:$0xff]   ;;  %v6103_v10 = vpop.f32.mrf.mxu0 }
 0x432   : > { %6485 = vmatmul.mubr.bf16.vlgmr.msra.gmra.mxu1 %v11026_v36  ;;  %8481 = vmatpush3.bf16.msra.mxu0 %v9692_v50  ;;  %v6104_v29 = vadd.f32 %v6103_v10, %v6061_v22 }
 0x433   : > { %8496 = vmatprep.mubr.msk.bf16.mxu0 %vm10011_vm2, %v10010_v7  ;;  %8482 = vmatprep.subr.bf16.mxu0 %v10010_v7  ;;  %v6105_v0 = vpop.f32.mrf.mxu0 }
 0x434   : > { %v6106_v44 = vadd.f32 %v6105_v0, %v6063_v28 }
 0x435   : > { %v6107_v19 = vpop.f32.mrf.mxu0 }
 0x436   : > { %8483 = vmatpush3.bf16.msra.mxu0 %v9693_v27  ;;  %v6108_v39 = vadd.f32 %v6107_v19, %v6065_v33 }
 0x437   : > { %8484 = vmatprep.subr.bf16.mxu0 %v10010_v7  ;;  %v6109_v26 = vpop.f32.mrf.mxu0 }
 0x438   : > { %v6110_v45 = vadd.f32 %v6109_v26, %v6067_v38 }
 0x43a   : > { %8485 = vmatpush3.bf16.msra.mxu0 %v9694_v8 }
 0x43b   : > { %8486 = vmatprep.subr.bf16.mxu0 %v10010_v7 }
 0x43e   : > { %8487 = vmatpush3.bf16.msra.mxu0 %v9695_v54 }
 0x43f   : > { %8488 = vmatprep.subr.bf16.mxu0 %v10010_v7 }
 0x442   : > { %8489 = vmatpush3.bf16.msra.mxu0 %v9696_v23 }
 0x443   : > { %8490 = vmatprep.subr.bf16.mxu0 %v10010_v7 }
 0x446   : > { %8491 = vmatpush3.bf16.msra.mxu0 %v9697_v49 }
 0x447   : > { %8492 = vmatprep.subr.bf16.mxu0 %v10010_v7 }
 0x44a   : > { %8493 = vmatpush3.bf16.msra.mxu0 %v9698_v15 }
 0x44b   : > { %8494 = vmatprep.subr.bf16.mxu0 %v10010_v7 }
 0x44e   : > { %8495 = vmatpush3.bf16.msra.mxu0 %v9699_v53 }
 0x451   : > { %v6189_v31 = vpop.f32.mrf.mxu0  ;;  %8497 = vmatmul.mubr.bf16.vlgmr.msra.gmra.mxu0 %v10990_v46 }
 0x452   : > { %v6146_v30 = vpop.f32.mrf.mxu1 }
 0x453   : > { %v6147_v34 = vadd.f32 %v6146_v30, %v6104_v29  ;;  %v6191_v37 = vpop.f32.mrf.mxu0 }
 0x454   : > { %v6148_v35 = vpop.f32.mrf.mxu1 }
 0x455   : > { %v6190_v42 = vadd.f32 %v6189_v31, %v6147_v34  ;;  %v6149_v36 = vadd.f32 %v6148_v35, %v6106_v44  ;;  %v6193_v47 = vpop.f32.mrf.mxu0 }
 0x456   : > { %v6150_v43 = vpop.f32.mrf.mxu1 }
 0x457   : > { %v6192_v40 = vadd.f32 %v6191_v37, %v6149_v36  ;;  %v6151_v48 = vadd.f32 %v6150_v43, %v6108_v39  ;;  %v6536_v32 = vmax.f32 %v6190_v42, 0.0  ;;  %v6195_v46 = vpop.f32.mrf.mxu0 }
 0x458   : > { %v6152_v61 = vpop.f32.mrf.mxu1 }
 0x459   : > { %v6537_v51 = vmax.f32 %v6192_v40, 0.0  ;;  %v6194_v25 = vadd.f32 %v6193_v47, %v6151_v48  ;;  %v6153_v3 = vadd.f32 %v6152_v61, %v6110_v45  ;;  %v3793_v40 = vsub.s32 6, %v10964_v21 }
 0x45b   : > { %v8249_v55 = vpack.c.bf16 %v6537_v51, %v6536_v32  ;;  %v6196_v52 = vadd.f32 %v6195_v46, %v6153_v3  ;;  %v6543_v56 = vmax.f32 %v6194_v25, 0.0  ;;  %v3794_v32 = vrot.slane %v10973_v11, %v3793_v40 }
 0x45d   : > { %6593 = vst [vmem:[#allocation2 + $0x8] sm:$0xff] %v8249_v55  ;;  %v6544_v57 = vmax.f32 %v6196_v52, 0.0 }
 0x45f   : > { %v8253_v58 = vpack.c.bf16 %v6544_v57, %v6543_v56 }
 0x461   : > { %6597 = vst [vmem:[#allocation2 + $0x24] sm:$0xff] %v8253_v58 }
 0x491   : > { %v6232_v5 = vpop.f32.mrf.mxu0 }
 0x492   : > { %v6275_v59 = vpop.f32.mrf.mxu1  ;;  %v6233_v50 = vadd.f32 %v6232_v5, %v3786_v2 }
 0x493   : > { %v6234_v12 = vpop.f32.mrf.mxu0 }
 0x494   : > { %v6277_v60 = vpop.f32.mrf.mxu1  ;;  %v6235_v27 = vadd.f32 %v6234_v12, %v3790_v13  ;;  %v6276_v54 = vadd.f32 %v6275_v59, %v6233_v50 }
 0x495   : > { %v6236_v4 = vpop.f32.mrf.mxu0 }
 0x496   : > { %v6279_v1 = vpop.f32.mrf.mxu1  ;;  %v6237_v23 = vadd.f32 %v6236_v4, %v3786_v2  ;;  %v6278_v10 = vadd.f32 %v6277_v60, %v6235_v27 }
 0x497   : > { %v6238_v8 = vpop.f32.mrf.mxu0 }
 0x498   : > { %v6281_v6 = vpop.f32.mrf.mxu1  ;;  %v6239_v14 = vadd.f32 %v6238_v8, %v3790_v13  ;;  %v6280_v0 = vadd.f32 %v6279_v1, %v6237_v23 }
 0x49a   : > { %v6282_v19 = vadd.f32 %v6281_v6, %v6239_v14 }
 0x4b2   : > { %v6361_v7 = vpop.f32.mrf.mxu1 }
 0x4b4   : > { %v6363_v49 = vpop.f32.mrf.mxu1 }
 0x4b6   : > { %v6365_v53 = vpop.f32.mrf.mxu1 }
 0x4b8   : > { %v6367_v31 = vpop.f32.mrf.mxu1 }
 0x4d1   : > { %v6318_v9 = vpop.f32.mrf.mxu0 }
 0x4d2   : > { %v6319_v15 = vadd.f32 %v6318_v9, %v6276_v54  ;;  %v8340_v38 = vpop.f32.mrf.mxu1 }
 0x4d3   : > { %v6320_v16 = vpop.f32.mrf.mxu0 }
 0x4d4   : > { %v6362_v41 = vadd.f32 %v6361_v7, %v6319_v15  ;;  %v6321_v17 = vadd.f32 %v6320_v16, %v6278_v10  ;;  %v8341_v39 = vpop.f32.mrf.mxu1 }
 0x4d5   : > { %v6322_v18 = vpop.f32.mrf.mxu0  ;;  %v8342_v51 = vadd.f32 %v8341_v39, %v8340_v38 }
 0x4d6   : > { %v6364_v20 = vadd.f32 %v6363_v49, %v6321_v17  ;;  %v6323_v22 = vadd.f32 %v6322_v18, %v6280_v0  ;;  %v6538_v26 = vmax.f32 %v6362_v41, 0.0  ;;  %v8343_v42 = vpop.f32.mrf.mxu1 }
 0x4d7   : > { %v6324_v24 = vpop.f32.mrf.mxu0  ;;  %v6405_v55 = vadd.f32 %v8342_v51, %v3794_v32 }
 0x4d8   : > { %v6539_v28 = vmax.f32 %v6364_v20, 0.0  ;;  %v6366_v29 = vadd.f32 %v6365_v53, %v6323_v22  ;;  %v6325_v30 = vadd.f32 %v6324_v24, %v6282_v19  ;;  %v8344_v43 = vpop.f32.mrf.mxu1 }
 0x4d9   : > { %v8345_v52 = vadd.f32 %v8344_v43, %v8343_v42 }
 0x4da   : > { %v8250_v33 = vpack.c.bf16 %v6539_v28, %v6538_v26  ;;  %v6368_v44 = vadd.f32 %v6367_v31, %v6325_v30  ;;  %v6545_v34 = vmax.f32 %v6366_v29, 0.0 }
 0x4db   : > { %v6408_v5 = vadd.f32 %v8345_v52, %v3794_v32 }
 0x4dc   : > { %6594 = vst [vmem:[#allocation2 + $0x10] sm:$0xff] %v8250_v33  ;;  %v6546_v35 = vmax.f32 %v6368_v44, 0.0 }
 0x4de   : > { %v8254_v37 = vpack.c.bf16 %v6546_v35, %v6545_v34 }
 0x4e0   : > { %6598 = vst [vmem:[#allocation2 + $0x2c] sm:$0xff] %v8254_v37 }
 0x4f1   : > { %v8362_v36 = vpop.f32.mrf.mxu0 }
 0x4f2   : > { %v8384_v45 = vpop.f32.mrf.mxu1 }
 0x4f3   : > { %v8363_v47 = vpop.f32.mrf.mxu0 }
 0x4f4   : > { %v8385_v61 = vpop.f32.mrf.mxu1  ;;  %v8364_v25 = vadd.f32 %v8363_v47, %v8362_v36 }
 0x4f5   : > { %v8365_v48 = vpop.f32.mrf.mxu0  ;;  %v8386_v57 = vadd.f32 %v8385_v61, %v8384_v45 }
 0x4f6   : > { %v8387_v46 = vpop.f32.mrf.mxu1  ;;  %v6446_v56 = vadd.f32 %v8364_v25, %v6405_v55 }
 0x4f7   : > { %v8366_v3 = vpop.f32.mrf.mxu0 }
 0x4f8   : > { %v8367_v58 = vadd.f32 %v8366_v3, %v8365_v48  ;;  %v8388_v59 = vpop.f32.mrf.mxu1  ;;  %v6487_v63 = vadd.f32 %v8386_v57, %v6446_v56 }
 0x4f9   : > { %v8389_v62 = vadd.f32 %v8388_v59, %v8387_v46 }
 0x4fa   : > { %v6449_v60 = vadd.f32 %v8367_v58, %v6408_v5 }
 0x4fc   : > { %v6490_v13 = vadd.f32 %v8389_v62, %v6449_v60 }
 0x511   : > { %v6527_v12 = vpop.f32.mrf.mxu0 }
 0x512   : > { %v6528_v21 = vadd.f32 %v6527_v12, %v6487_v63 }
 0x513   : > { %v8498_v1 = vpop.f32.mrf.mxu0 }
 0x514   : > { %v6540_v2 = vmax.f32 %v6528_v21, 0.0 }
 0x515   : > { %v6530_v11 = vpop.f32.mrf.mxu0 }
 0x516   : > { %v8251_v4 = vpack.c.bf16 %v6540_v2, %v6540_v2  ;;  %v6531_v6 = vadd.f32 %v6530_v11, %v6490_v13 }
 0x517   : > { %v8499_v50 = vpop.f32.mrf.mxu0 }
 0x518   : > { %6595 = vst [vmem:[#allocation2 + $0x18] sm:$0xf] %v8251_v4  ;;  %v6547_v7 = vmax.f32 %v6531_v6, 0.0 }
 0x51a   : > { %v8255_v27 = vpack.c.bf16 %v6547_v7, %v6547_v7 }
 0x51c   : > { %6599 = vst [vmem:[#allocation2 + $0x34] sm:$0xf] %v8255_v27 }
 0x51d PF: > { %p8171_p8 = scmp.ne.s32.totalorder %s9985_s21, 3 }
 0x51f   : > { %6603 = sbr.rel (%p8171_p8) target bundleno = 1588 (0x634), region = 72 }
 0x524   : > { %v9707_v8 = vld [vmem:[#allocation9 + $0x78] sm:$0xff]   ;;  %v9711_v9 = vld [vmem:[#allocation9 + $0x70] sm:$0xff]   ;;  %v9715_v16 = vld [vmem:[#allocation9 + $0x68] sm:$0xff]   ;;  %v10012_v48 = vmov 0.0   ;;  %vm10013_vm3 = vmmov 0  }
 0x525   : > { %v9708_v54 = vld [vmem:[#allocation9 + $0xf8] sm:$0xff]   ;;  %8399 = vmatprep.subr.bf16.mxu0 %v9707_v8  ;;  %v9712_v10 = vld [vmem:[#allocation9 + $0xf0] sm:$0xff]   ;;  %v9716_v0 = vld [vmem:[#allocation9 + $0xe8] sm:$0xff]  }
 0x526   : > { %v9709_v23 = vld [vmem:[#allocation9 + $0x38] sm:$0xff]   ;;  %8421 = vmatprep.subr.bf16.mxu1 %v9708_v54  ;;  %v9713_v14 = vld [vmem:[#allocation9 + $0x30] sm:$0xff]   ;;  %v9717_v41 = vld [vmem:[#allocation9 + $0x28] sm:$0xff]  }
 0x527   : > { %v9710_v49 = vld [vmem:[#allocation9 + $0xb8] sm:$0xff]   ;;  %8400 = vmatpush3.bf16.msra.mxu0 %v9709_v23  ;;  %v9714_v15 = vld [vmem:[#allocation9 + $0xb0] sm:$0xff]   ;;  %v9718_v17 = vld [vmem:[#allocation9 + $0xa8] sm:$0xff]  }
 0x528   : > { %8422 = vmatpush3.bf16.msra.mxu1 %v9710_v49  ;;  %8401 = vmatprep.subr.bf16.mxu0 %v9711_v9  ;;  %v9719_v53 = vld [vmem:[#allocation9 + $0x60] sm:$0xff]   ;;  %v9723_v22 = vld [vmem:[#allocation9 + $0x58] sm:$0xff]   ;;  %v9727_v29 = vld [vmem:[#allocation9 + $0x50] sm:$0xff]  }
 0x529   : > { %8423 = vmatprep.subr.bf16.mxu1 %v9712_v10  ;;  %v9720_v18 = vld [vmem:[#allocation9 + $0xe0] sm:$0xff]   ;;  %v9724_v24 = vld [vmem:[#allocation9 + $0xd8] sm:$0xff]   ;;  %v9728_v30 = vld [vmem:[#allocation9 + $0xd0] sm:$0xff]  }
 0x52a   : > { %v9721_v19 = vld [vmem:[#allocation9 + $0x20] sm:$0xff]   ;;  %v9725_v26 = vld [vmem:[#allocation9 + $0x18] sm:$0xff]   ;;  %v9729_v31 = vld [vmem:[#allocation9 + $0x10] sm:$0xff]  }
 0x52b   : > { %8402 = vmatpush3.bf16.msra.mxu0 %v9713_v14  ;;  %v9722_v20 = vld [vmem:[#allocation9 + $0xa0] sm:$0xff]   ;;  %v9726_v28 = vld [vmem:[#allocation9 + $0x98] sm:$0xff]   ;;  %v9730_v33 = vld [vmem:[#allocation9 + $0x90] sm:$0xff]  }
 0x52c   : > { %8424 = vmatpush3.bf16.msra.mxu1 %v9714_v15  ;;  %8403 = vmatprep.subr.bf16.mxu0 %v9715_v16  ;;  %v9731_v44 = vld [vmem:[#allocation9 + $0x48] sm:$0xff]   ;;  %v9735_v38 = vld [vmem:[#allocation9 + $0x40] sm:$0xff]   ;;  %v9744_v40 = vld [vmem:[#allocation2 + $0xc] ss:$28 sps:$4 sm:$0xff]  }
 0x52d   : > { %8425 = vmatprep.subr.bf16.mxu1 %v9716_v0  ;;  %v9732_v34 = vld [vmem:[#allocation9 + $0xc8] sm:$0xff]   ;;  %v9736_v39 = vld [vmem:[#allocation9 + $0xc0] sm:$0xff]   ;;  %v9745_v61 = vld [vmem:[#allocation9 + $0x178] sm:$0xff]   ;;  %7176 = vmatprep.mubr.bf16.mxu1 %v9744_v40 }
 0x52e   : > { %v9733_v35 = vld [vmem:[#allocation9 + $0x8] sm:$0xff]   ;;  %v9737_v42 = vld [vmem:[#allocation9] sm:$0xff]   ;;  %v9746_v32 = vld [vmem:[#allocation9 + $0x138] sm:$0xff]  }
 0x52f   : > { %8404 = vmatpush3.bf16.msra.mxu0 %v9717_v41  ;;  %v9734_v37 = vld [vmem:[#allocation9 + $0x88] sm:$0xff]   ;;  %v9738_v36 = vld [vmem:[#allocation9 + $0x80] sm:$0xff]   ;;  %v9747_v51 = vld [vmem:[#allocation9 + $0x1b8] sm:$0xff]  }
 0x530   : > { %8426 = vmatpush3.bf16.msra.mxu1 %v9718_v17  ;;  %8405 = vmatprep.subr.bf16.mxu0 %v9719_v53  ;;  %v9739_v43 = vld [vmem:[#allocation2] ss:$28 sps:$4 sm:$0xff]   ;;  %v9742_v45 = vld [vmem:[#allocation2 + $0x8] ss:$28 sps:$4 sm:$0xff]   ;;  %v9757_v5 = vld [vmem:[#allocation9 + $0x158] sm:$0xff]  }
 0x531   : > { %8427 = vmatprep.subr.bf16.mxu1 %v9720_v18  ;;  %v9741_v47 = vld [vmem:[#allocation2 + $0x4] ss:$28 sps:$4 sm:$0xff]   ;;  %v9754_v57 = vld [vmem:[#allocation9 + $0x160] sm:$0xff]   ;;  %v9758_v60 = vld [vmem:[#allocation9 + $0x118] sm:$0xff]  }
 0x532   : > { %7135 = vmatprep.mubr.bf16.mxu0 %v9741_v47  ;;  %v9748_v25 = vld [vmem:[#allocation9 + $0x170] sm:$0xff]   ;;  %v9751_v55 = vld [vmem:[#allocation9 + $0x168] sm:$0xff]   ;;  %v9755_v58 = vld [vmem:[#allocation9 + $0x120] sm:$0xff]  }
 0x533   : > { %8406 = vmatpush3.bf16.msra.mxu0 %v9721_v19  ;;  %v9749_v3 = vld [vmem:[#allocation9 + $0x130] sm:$0xff]   ;;  %v9752_v52 = vld [vmem:[#allocation9 + $0x128] sm:$0xff]   ;;  %v9756_v59 = vld [vmem:[#allocation9 + $0x1a0] sm:$0xff]  }
 0x534   : > { %8428 = vmatpush3.bf16.msra.mxu1 %v9722_v20  ;;  %8407 = vmatprep.subr.bf16.mxu0 %v9723_v22  ;;  %v9750_v46 = vld [vmem:[#allocation9 + $0x1b0] sm:$0xff]   ;;  %v9753_v56 = vld [vmem:[#allocation9 + $0x1a8] sm:$0xff]   ;;  %v9759_v62 = vld [vmem:[#allocation9 + $0x198] sm:$0xff]  }
 0x535   : > { %8429 = vmatprep.subr.bf16.mxu1 %v9724_v24  ;;  %v9760_v63 = vld [vmem:[#allocation9 + $0x150] sm:$0xff]   ;;  %v9763_v1 = vld [vmem:[#allocation9 + $0x148] sm:$0xff]   ;;  %v9766_v11 = vld [vmem:[#allocation9 + $0x140] sm:$0xff]  }
 0x536   : > { %v9761_v12 = vld [vmem:[#allocation9 + $0x110] sm:$0xff]   ;;  %v9764_v2 = vld [vmem:[#allocation9 + $0x108] sm:$0xff]   ;;  %v9771_v4 = vld [vmem:[#allocation2 + $0x14] ss:$28 sps:$4 sm:$0xff]  }
 0x537   : > { %8408 = vmatpush3.bf16.msra.mxu0 %v9725_v26  ;;  %v9762_v21 = vld [vmem:[#allocation9 + $0x190] sm:$0xff]   ;;  %v9765_v13 = vld [vmem:[#allocation9 + $0x188] sm:$0xff]   ;;  %v9767_v6 = vld [vmem:[#allocation9 + $0x100] sm:$0xff]  }
 0x538   : > { %8430 = vmatpush3.bf16.msra.mxu1 %v9726_v28  ;;  %8409 = vmatprep.subr.bf16.mxu0 %v9727_v29  ;;  %v9768_v50 = vld [vmem:[#allocation9 + $0x180] sm:$0xff]   ;;  %v9769_v7 = vld [vmem:[#allocation2 + $0x10] ss:$28 sps:$4 sm:$0xff]  }
 0x539   : > { %8431 = vmatprep.subr.bf16.mxu1 %v9728_v30  ;;  %v9772_v27 = vld [vmem:[#allocation2 + $0x18] ss:$28 sps:$4 sm:$0xff]  }
 0x53a   : > { %v8172_v15 = vld [vmem:[#allocation11] ss:$0 sm:$0xff] }
 0x53b   : > { %8410 = vmatpush3.bf16.msra.mxu0 %v9729_v31 }
 0x53c   : > { %8432 = vmatpush3.bf16.msra.mxu1 %v9730_v33  ;;  %8411 = vmatprep.subr.bf16.mxu0 %v9731_v44 }
 0x53d   : > { %8433 = vmatprep.subr.bf16.mxu1 %v9732_v34 }
 0x53f   : > { %8412 = vmatpush3.bf16.msra.mxu0 %v9733_v35 }
 0x540   : > { %8434 = vmatpush3.bf16.msra.mxu1 %v9734_v37  ;;  %8413 = vmatprep.subr.bf16.mxu0 %v9735_v38 }
 0x541   : > { %8435 = vmatprep.subr.bf16.mxu1 %v9736_v39 }
 0x543   : > { %8414 = vmatpush3.bf16.msra.mxu0 %v9737_v42 }
 0x544   : > { %8436 = vmatpush3.bf16.msra.mxu1 %v9738_v36  ;;  %8443 = vmatprep.subr.bf16.mxu0 %v9745_v61 }
 0x545   : > { %8500 = vmatprep.subr.bf16.mxu1 %v10012_v48 }
 0x546   : > { %7136 = vmatmul.mubr.bf16.vlgmr.msra.gmra.mxu0 %v9739_v43 }
 0x547   : > { %7177 = vmatmul.mubr.bf16.vlgmr.msra.gmra.mxu1 %v9742_v45  ;;  %8444 = vmatpush3.bf16.msra.mxu0 %v9746_v32 }
 0x548   : > { %8516 = vmatprep.mubr.msk.bf16.mxu1 %vm10013_vm3, %v10012_v48  ;;  %8501 = vmatpush3.bf16.msra.mxu1 %v9747_v51 }
 0x549   : > { %8445 = vmatprep.subr.bf16.mxu0 %v9748_v25  ;;  %8502 = vmatprep.subr.bf16.mxu1 %v10012_v48 }
 0x54a   : > { %7217 = vmatprep.mubr.bf16.mxu0 %v9771_v4 }
 0x54b   : > { %8446 = vmatpush3.bf16.msra.mxu0 %v9749_v3 }
 0x54c   : > { %8503 = vmatpush3.bf16.msra.mxu1 %v9750_v46  ;;  %8447 = vmatprep.subr.bf16.mxu0 %v9751_v55 }
 0x54d   : > { %8504 = vmatprep.subr.bf16.mxu1 %v10012_v48 }
 0x54f   : > { %8448 = vmatpush3.bf16.msra.mxu0 %v9752_v52 }
 0x550   : > { %8505 = vmatpush3.bf16.msra.mxu1 %v9753_v56  ;;  %8449 = vmatprep.subr.bf16.mxu0 %v9754_v57 }
 0x551   : > { %8506 = vmatprep.subr.bf16.mxu1 %v10012_v48 }
 0x553   : > { %8450 = vmatpush3.bf16.msra.mxu0 %v9755_v58 }
 0x554   : > { %8507 = vmatpush3.bf16.msra.mxu1 %v9756_v59  ;;  %8451 = vmatprep.subr.bf16.mxu0 %v9757_v5 }
 0x555   : > { %8508 = vmatprep.subr.bf16.mxu1 %v10012_v48 }
 0x557   : > { %8452 = vmatpush3.bf16.msra.mxu0 %v9758_v60 }
 0x558   : > { %8509 = vmatpush3.bf16.msra.mxu1 %v9759_v62  ;;  %8453 = vmatprep.subr.bf16.mxu0 %v9760_v63 }
 0x559   : > { %8510 = vmatprep.subr.bf16.mxu1 %v10012_v48 }
 0x55b   : > { %8454 = vmatpush3.bf16.msra.mxu0 %v9761_v12 }
 0x55c   : > { %8511 = vmatpush3.bf16.msra.mxu1 %v9762_v21  ;;  %8455 = vmatprep.subr.bf16.mxu0 %v9763_v1 }
 0x55d   : > { %8512 = vmatprep.subr.bf16.mxu1 %v10012_v48 }
 0x55f   : > { %8456 = vmatpush3.bf16.msra.mxu0 %v9764_v2 }
 0x560   : > { %8513 = vmatpush3.bf16.msra.mxu1 %v9765_v13  ;;  %8457 = vmatprep.subr.bf16.mxu0 %v9766_v11 }
 0x561   : > { %8514 = vmatprep.subr.bf16.mxu1 %v10012_v48 }
 0x563   : > { %8458 = vmatpush3.bf16.msra.mxu0 %v9767_v6 }
 0x564   : > { %8515 = vmatpush3.bf16.msra.mxu1 %v9768_v50 }
 0x566   : > { %7218 = vmatmul.mubr.bf16.vlgmr.msra.gmra.mxu0 %v9769_v7 }
 0x567   : > { %8517 = vmatmul.mubr.bf16.vlgmr.msra.gmra.mxu1 %v9772_v27 }
 0x606   : > { %v8415_v8 = vpop.f32.mrf.mxu0 }
 0x607   : > { %v8437_v54 = vpop.f32.mrf.mxu1 }
 0x608   : > { %v8416_v23 = vpop.f32.mrf.mxu0 }
 0x609   : > { %v8438_v49 = vpop.f32.mrf.mxu1  ;;  %v8417_v10 = vadd.f32 %v8416_v23, %v8415_v8 }
 0x60a   : > { %v8418_v9 = vpop.f32.mrf.mxu0  ;;  %v8439_v41 = vadd.f32 %v8438_v49, %v8437_v54 }
 0x60b   : > { %v8440_v14 = vpop.f32.mrf.mxu1  ;;  %v7138_v0 = vadd.f32 %v8417_v10, %v8172_v15 }
 0x60c   : > { %v8419_v16 = vpop.f32.mrf.mxu0 }
 0x60d   : > { %v8420_v17 = vadd.f32 %v8419_v16, %v8418_v9  ;;  %v8441_v53 = vpop.f32.mrf.mxu1  ;;  %v7179_v22 = vadd.f32 %v8439_v41, %v7138_v0 }
 0x60e   : > { %v8442_v26 = vadd.f32 %v8441_v53, %v8440_v14 }
 0x60f   : > { %v7141_v24 = vadd.f32 %v8420_v17, %v8172_v15 }
 0x611   : > { %v7182_v34 = vadd.f32 %v8442_v26, %v7141_v24 }
 0x626   : > { %v8459_v18 = vpop.f32.mrf.mxu0 }
 0x627   : > { %v7260_v19 = vpop.f32.mrf.mxu1 }
 0x628   : > { %v8460_v20 = vpop.f32.mrf.mxu0 }
 0x629   : > { %v8461_v28 = vadd.f32 %v8460_v20, %v8459_v18  ;;  %v8518_v29 = vpop.f32.mrf.mxu1 }
 0x62a   : > { %v8462_v30 = vpop.f32.mrf.mxu0 }
 0x62b   : > { %v7220_v31 = vadd.f32 %v8461_v28, %v7179_v22  ;;  %v7263_v33 = vpop.f32.mrf.mxu1 }
 0x62c   : > { %v8463_v44 = vpop.f32.mrf.mxu0 }
 0x62d   : > { %v7261_v35 = vadd.f32 %v7260_v19, %v7220_v31  ;;  %v8464_v37 = vadd.f32 %v8463_v44, %v8462_v30  ;;  %v8519_v38 = vpop.f32.mrf.mxu1 }
 0x62f   : > { %7267 = vst [vmem:[#allocation12] sm:$0xff] %v7261_v35  ;;  %v7223_v39 = vadd.f32 %v8464_v37, %v7182_v34 }
 0x631   : > { %v7264_v42 = vadd.f32 %v7263_v33, %v7223_v39 }
 0x633   : > { %7268 = vst [vmem:[#allocation12 + $0x8] sm:$0xff] %v7264_v42 }
 0x634 PF: > { %p8570_p6 = scmp.eq.s32.totalorder %s10076_s24, 3  ;;  %s10014_s21 = smov [#allocation12]  }
 0x635   : > { %s7278_s25 = sshll.u32 %s10014_s21, 4  ;;  %s7279_s25 = int_to_ptr.vmem [resolvable:$true] %s7278_s25 }
 0x636   : > { %s9907_s9 = scalar_lea.vmem %s7279_s25, 256  ;;  %p9914_p11 = scmp.lt.s32.totalorder %s7279_s25, %s7279_s25 }
 0x637   : > { %p9908_p10 = scmp.ne.s32.totalorder %s7279_s25, %s9907_s9  ;;  %p9915_p7 = scmp.lt.s32.totalorder %s9907_s9, %s9907_s9 }
 0x639   : > { %p9909_p1 = pnand %p9908_p10, %p8570_p6  ;;  %p9916_p12 = por %p9915_p7, %p9914_p11 }
 0x63b   : > { %p9910_p0 = pneg %p9909_p1 }
 0x63d   : > { %p9917_p2 = pnand %p9916_p12, %p9910_p0 }
 0x63f   : > { %9920 = shalt.err (!%p9917_p2)
}
 0x640   : > { %s10015_s14 = smov 128   ;;  %s10016_s10 = smov 8  }
 0x641   : > { %8543 = dma.vmem_to_hbm [thread:$0]  (%p8570_p6), %s7279_s25, 256, %s11115_s5, [#allocation5], %s10015_s14, %s10015_s14, %s10016_s10  }
 0x642   : > { %9968 = dma.done.wait (%p8570_p6), [#allocation5], 256  }
 0x643   : > { %9970 = vsyncadd (%p8570_p6), [#allocation5], 4294967040 }
 0x644 PF: > { %s21_s23 = sadd.s32 1, %s9993_s23   ;;  %s11129_s18 = smov %s9977_s19 }
 0x645   : > { %p18_p3 = scmp.ge.s32.totalorder %s21_s23, 6   ;;  %s11130_s19 = smov %s9981_s20 }
 0x646   : > { %s11131_s20 = smov %s10124_s16  ;;  %s11132_s21 = smov %s9989_s22 }
 0x647   : > { %s11133_s22 = smov %s11135_s30  ;;  %20 = sbr.rel (!%p18_p3) target bundleno = 9 (0x9), region = 115 }
 0x64c   :  { %7294 = vsyncpa [#allocation4], 1 }
 0x64d   :  { %7296 = vsyncpa [#allocation4 + $0x1], 1 }
 0x64e   :  { %7297 = vsyncpa [#allocation7], 1 }
 0x64f   :  { %7299 = vsyncpa [#allocation7 + $0x1], 1 }
 0x650   :  { %7300 = vsyncpa [#allocation10], 1 }
 0x651   :  { %7301 = vsyncpa [#allocation5], 1 }
 0x652   :  { %7303 = vsyncpa [#allocation5 + $0x1], 1 }

</bundles_post_ra>
